<compile_context>
chip_gen: v7x
topology: tpu7x:2x2x1
jax: 0.10.0
libtpu: 0.0.40
codegen_flags: <defaults>
</compile_context>

<pallas_src>
import functools

import jax
import jax.numpy as jnp
from jax.experimental import pallas as pl
from jax.experimental.pallas import tpu as pltpu


def _pair(v):
    if isinstance(v, (tuple, list)):
        return int(v[0]), int(v[1])
    return int(v), int(v)


def _round_up(x, m):
    return ((x + m - 1) // m) * m


def _pick_row_tile(oh, ow, target_rows=1024):
    """Output-row tile: ~target_rows GEMM rows, (toh*OW) % 8 == 0 (or full
    extent), preferring tiles that divide OH exactly (no overshoot rows)."""
    toh_max = max(1, min(oh, max(1, target_rows // max(ow, 1))))
    # 1st pass: divides OH evenly and keeps the output block 8-row aligned.
    for cand in range(toh_max, 0, -1):
        if oh % cand == 0 and ((cand * ow) % 8 == 0 or cand == oh):
            return cand
    # 2nd pass: 8-row aligned, allow overshoot (rows OH..OHp-1 sliced off).
    for cand in range(toh_max, 0, -1):
        if (cand * ow) % 8 == 0:
            return cand
    return oh  # single full-extent tile


def _conv_kernel(x_ref, w_ref, o_ref, *, kh, kw, sh, sw, toh, ow, hq):
    """One (group, batch, output-row-tile) step of the fused im2col conv.

    x_ref: (P*Hq, Wq, Cgp)    bf16  polyphase padded input (P = sh*sw phases)
    w_ref: (KH*KW, Cgp, Cop)  bf16  per-group weights, (kh, kw) major
    o_ref: (TOH*OW, Cop)      f32   output row-tile (lane-dense)
    """
    t = pl.program_id(2)
    oh0 = t * toh                       # first output row of this tile
    cgp = x_ref.shape[-1]
    cop = w_ref.shape[-1]

    acc = jnp.zeros((toh * ow, cop), dtype=jnp.float32)
    # Static unrolled loop over kernel taps: KH*KW shifted (rows x Cgp) @
    # (Cgp x Cop) partial GEMMs accumulated in f32 (reduction stays inside the
    # grid step, so no cross-step scratch accumulator is needed).
    for i in range(kh):
        for j in range(kw):
            p = (i % sh) * sw + (j % sw)          # polyphase index
            row0 = p * hq + (i // sh)             # static row offset of this tap
            a = x_ref[pl.ds(row0 + oh0, toh), pl.ds(j // sw, ow), :]
            acc = acc + jnp.dot(
                a.reshape(toh * ow, cgp),
                w_ref[i * kw + j],
                preferred_element_type=jnp.float32,
            )
    o_ref[...] = acc


@functools.partial(jax.jit, static_argnames=("stride", "padding", "groups"))
def conv2d_function(x, weight, *, stride=1, padding=0, groups=1):
    """Equivalent of F.conv2d(x, weight, bias=None, stride, padding, groups).

    x:      (N, Cin, H, W)              float32, NCHW
    weight: (Cout, Cin//groups, KH, KW) float32, OIHW
    returns (N, Cout, OH, OW)           float32, NCHW
    """
    sh, sw = _pair(stride)
    ph, pw = _pair(padding)

    N, Cin, H, W = x.shape
    Cout, Cin_g, KH, KW = weight.shape
    G = int(groups)
    assert Cin == Cin_g * G and Cout % G == 0
    Cout_g = Cout // G

    OH = (H + 2 * ph - KH) // sh + 1
    OW = (W + 2 * pw - KW) // sw + 1
    assert OH > 0 and OW > 0

    # Lane-dense channel padding (128 lanes / vreg, unmasked MXU + stores).
    Cgp = _round_up(Cin_g, 128)
    Cop = _round_up(Cout_g, 128)

    # Output-row tile (see _pick_row_tile docstring).
    toh = _pick_row_tile(OH, OW)
    n_t = pl.cdiv(OH, toh)
    OHp = n_t * toh

    # Polyphase (space-to-depth by stride) extents. Wq is rounded to a multiple
    # of 8 so in-kernel column windows stay tile-aligned.
    Hq = max(-(-(H + 2 * ph) // sh), OHp + (KH - 1) // sh)
    Wq = _round_up(max(-(-(W + 2 * pw) // sw), OW + (KW - 1) // sw), 8)
    P = sh * sw

    # ---- glue: NCHW -> grouped NHWC bf16, zero-pad, polyphase rearrange -----
    xg = x.reshape(N, G, Cin_g, H, W).transpose(0, 1, 3, 4, 2)
    xg = xg.astype(jnp.bfloat16)
    xg = jnp.pad(
        xg,
        ((0, 0), (0, 0),
         (ph, Hq * sh - H - ph),
         (pw, Wq * sw - W - pw),
         (0, Cgp - Cin_g)),
    )
    if sh == 1 and sw == 1:
        # Fast path: P == 1, the polyphase rearrange is a pure (free) reshape.
        xp = xg.reshape(N * G, Hq, Wq, Cgp)
    else:
        # (N,G,Hq,sh,Wq,sw,C) -> (N,G,sh,sw,Hq,Wq,C) -> (N*G, P*Hq, Wq, C)
        xp = xg.reshape(N, G, Hq, sh, Wq, sw, Cgp)
        xp = xp.transpose(0, 1, 3, 5, 2, 4, 6).reshape(N * G, P * Hq, Wq, Cgp)

    # ---- glue: OIHW -> (G, KH*KW, Cin_g_pad, Cout_g_pad) bf16 ---------------
    wg = weight.reshape(G, Cout_g, Cin_g, KH, KW).transpose(0, 3, 4, 2, 1)
    wg = wg.astype(jnp.bfloat16)
    wg = jnp.pad(wg, ((0, 0), (0, 0), (0, 0),
                      (0, Cgp - Cin_g), (0, Cop - Cout_g)))
    wg = wg.reshape(G, KH * KW, Cgp, Cop)

    kernel = functools.partial(
        _conv_kernel, kh=KH, kw=KW, sh=sh, sw=sw, toh=toh, ow=OW, hq=Hq)

    flops = 2 * N * G * OHp * OW * KH * KW * Cgp * Cop
    bytes_accessed = xp.size * 2 + wg.size * 2 + N * G * OHp * OW * Cop * 4

    # NOTE: the whole padded (per-batch, per-group) image is kept VMEM-resident
    # across its row tiles (its block index does not depend on the row-tile
    # grid axis, so it is DMA'd once per (n, g)); for this model's layer sizes
    # that is <= a few MB.
    # TODO(synk): for very large spatial extents, switch the input to
    # row-slab blocks (with halo duplication in the wrapper) to bound VMEM.
    out = pl.pallas_call(
        kernel,
        out_shape=jax.ShapeDtypeStruct((N * G, OHp * OW, Cop), jnp.float32),
        grid_spec=pltpu.PrefetchScalarGridSpec(
            num_scalar_prefetch=0,
            grid=(G, N, n_t),
            in_specs=[
                pl.BlockSpec((None, P * Hq, Wq, Cgp),
                             lambda g, n, t: (n * G + g, 0, 0, 0)),
                pl.BlockSpec((None, KH * KW, Cgp, Cop),
                             lambda g, n, t: (g, 0, 0, 0)),
            ],
            out_specs=pl.BlockSpec((None, toh * OW, Cop),
                                   lambda g, n, t: (n * G + g, t, 0)),
        ),
        compiler_params=pltpu.CompilerParams(
            dimension_semantics=("parallel", "parallel", "parallel"),
            vmem_limit_bytes=48 * 1024 * 1024,
        ),
        cost_estimate=pl.CostEstimate(
            flops=flops, transcendentals=0, bytes_accessed=bytes_accessed),
    )(xp, wg)

    # Strip padding, back to NCHW (group-major output channels, as in PyTorch).
    out = out.reshape(N, G, OHp, OW, Cop)[:, :, :OH, :, :Cout_g]
    out = out.transpose(0, 1, 4, 2, 3).reshape(N, Cout, OH, OW)
    return out


def _check(x, weight, *, stride, padding, groups):
    out = conv2d_function(x, weight, stride=stride, padding=padding, groups=groups)
    out = jax.block_until_ready(out)

    # Tight reference: same bf16 operand rounding, f32 accumulation.
    ref_bf16 = jax.lax.conv_general_dilated(
        x.astype(jnp.bfloat16).astype(jnp.float32),
        weight.astype(jnp.bfloat16).astype(jnp.float32),
        window_strides=(stride, stride),
        padding=((padding, padding), (padding, padding)),
        dimension_numbers=("NCHW", "OIHW", "NCHW"),
        feature_group_count=groups,
        precision=jax.lax.Precision.HIGHEST,
    )
    assert out.shape == ref_bf16.shape
    assert jnp.allclose(out, ref_bf16, atol=2e-3, rtol=2e-3), \
        "mismatch vs bf16 reference conv"

    # Loose sanity check against the full-f32 module semantics.
    ref_f32 = jax.lax.conv_general_dilated(
        x, weight,
        window_strides=(stride, stride),
        padding=((padding, padding), (padding, padding)),
        dimension_numbers=("NCHW", "OIHW", "NCHW"),
        feature_group_count=groups,
        precision=jax.lax.Precision.HIGHEST,
    )
    assert jnp.allclose(out, ref_f32, atol=0.3, rtol=0.1), \
        "drift vs f32 reference too large"


if __name__ == "__main__":
    key = jax.random.PRNGKey(0)
    k_x, k_w = jax.random.split(key)

    # Small shapes consistent with the module's forward.
    N, Cin, H, W = 2, 4, 16, 16
    Cout, KH, KW = 8, 3, 3

    x = jax.random.normal(k_x, (N, Cin, H, W), dtype=jnp.float32)

    # Config 1: stride 1, padding 1, groups 1 (the common 3x3 "same" conv).
    w1 = jax.random.normal(k_w, (Cout, Cin, KH, KW), dtype=jnp.float32)
    _check(x, w1, stride=1, padding=1, groups=1)

    # Config 2: stride 2, padding 1, groups 2 (exercises the polyphase + group path).
    w2 = jax.random.normal(k_w, (Cout, Cin // 2, KH, KW), dtype=jnp.float32)
    _check(x, w2, stride=2, padding=1, groups=2)

    print("KERNEL_OK")
</pallas_src>

<mosaic_0001>
module attributes {stable_mosaic.version = 11 : i64} {
  func.func @_conv_kernel(%arg0: i32, %arg1: i32, %arg2: i32, %arg3: memref<1x18x24x128xbf16, #tpu.memory_space<vmem>>, %arg4: memref<1x9x128x128xbf16, #tpu.memory_space<vmem>>, %arg5: memref<1x256x128xf32, #tpu.memory_space<vmem>>) attributes {dimension_semantics = [#tpu.dimension_semantics<parallel>, #tpu.dimension_semantics<parallel>, #tpu.dimension_semantics<parallel>], iteration_bounds = array<i64: 1, 2, 1>, scalar_prefetch = 0 : i64, scratch_operands = 0 : i64, tpu.core_type = #tpu.core_type<tc>, window_params = [{transform_indices = @transform_0, window_bounds = array<i64: 1, 18, 24, 128>}, {transform_indices = @transform_1, window_bounds = array<i64: 1, 9, 128, 128>}, {transform_indices = @transform_2, window_bounds = array<i64: 1, 256, 128>}]} {
    %c16_i32 = arith.constant 16 : i32
    %0 = arith.muli %arg2, %c16_i32 : i32
    %cst = arith.constant 0.000000e+00 : f32
    %1 = vector.broadcast %cst : f32 to vector<256x128xf32>
    %c0_i32 = arith.constant 0 : i32
    %2 = arith.addi %c0_i32, %0 : i32
    %c0 = arith.constant 0 : index
    %3 = arith.index_cast %2 : i32 to index
    %c0_0 = arith.constant 0 : index
    %c0_1 = arith.constant 0 : index
    %4 = vector.load %arg3[%c0, %3, %c0_0, %c0_1] : memref<1x18x24x128xbf16, #tpu.memory_space<vmem>>, vector<1x16x16x128xbf16>
    %5 = vector.shape_cast %4 : vector<1x16x16x128xbf16> to vector<16x16x128xbf16>
    %6 = vector.shape_cast %5 : vector<16x16x128xbf16> to vector<256x128xbf16>
    %c0_2 = arith.constant 0 : index
    %c0_3 = arith.constant 0 : index
    %c0_4 = arith.constant 0 : index
    %c0_5 = arith.constant 0 : index
    %7 = vector.load %arg4[%c0_2, %c0_3, %c0_4, %c0_5] : memref<1x9x128x128xbf16, #tpu.memory_space<vmem>>, vector<1x1x128x128xbf16>
    %8 = vector.shape_cast %7 : vector<1x1x128x128xbf16> to vector<128x128xbf16>
    %cst_6 = arith.constant dense<0.000000e+00> : vector<256x128xf32>
    %9 = tpu.matmul %6, %8, %cst_6 {dimension_numbers = #tpu.dot_dimension_numbers<[1], [0], [0], [1], [0, 0, 1, 1], [], []>} : vector<256x128xbf16>, vector<128x128xbf16>, vector<256x128xf32> -> vector<256x128xf32>
    %10 = arith.addf %1, %9 : vector<256x128xf32>
    %c0_i32_7 = arith.constant 0 : i32
    %11 = arith.addi %c0_i32_7, %0 : i32
    %c0_8 = arith.constant 0 : index
    %12 = arith.index_cast %11 : i32 to index
    %c1 = arith.constant 1 : index
    %c0_9 = arith.constant 0 : index
    %13 = vector.load %arg3[%c0_8, %12, %c1, %c0_9] : memref<1x18x24x128xbf16, #tpu.memory_space<vmem>>, vector<1x16x16x128xbf16>
    %14 = vector.shape_cast %13 : vector<1x16x16x128xbf16> to vector<16x16x128xbf16>
    %15 = vector.shape_cast %14 : vector<16x16x128xbf16> to vector<256x128xbf16>
    %c0_10 = arith.constant 0 : index
    %c1_11 = arith.constant 1 : index
    %c0_12 = arith.constant 0 : index
    %c0_13 = arith.constant 0 : index
    %16 = vector.load %arg4[%c0_10, %c1_11, %c0_12, %c0_13] : memref<1x9x128x128xbf16, #tpu.memory_space<vmem>>, vector<1x1x128x128xbf16>
    %17 = vector.shape_cast %16 : vector<1x1x128x128xbf16> to vector<128x128xbf16>
    %cst_14 = arith.constant dense<0.000000e+00> : vector<256x128xf32>
    %18 = tpu.matmul %15, %17, %cst_14 {dimension_numbers = #tpu.dot_dimension_numbers<[1], [0], [0], [1], [0, 0, 1, 1], [], []>} : vector<256x128xbf16>, vector<128x128xbf16>, vector<256x128xf32> -> vector<256x128xf32>
    %19 = arith.addf %10, %18 : vector<256x128xf32>
    %c0_i32_15 = arith.constant 0 : i32
    %20 = arith.addi %c0_i32_15, %0 : i32
    %c0_16 = arith.constant 0 : index
    %21 = arith.index_cast %20 : i32 to index
    %c2 = arith.constant 2 : index
    %c0_17 = arith.constant 0 : index
    %22 = vector.load %arg3[%c0_16, %21, %c2, %c0_17] : memref<1x18x24x128xbf16, #tpu.memory_space<vmem>>, vector<1x16x16x128xbf16>
    %23 = vector.shape_cast %22 : vector<1x16x16x128xbf16> to vector<16x16x128xbf16>
    %24 = vector.shape_cast %23 : vector<16x16x128xbf16> to vector<256x128xbf16>
    %c0_18 = arith.constant 0 : index
    %c2_19 = arith.constant 2 : index
    %c0_20 = arith.constant 0 : index
    %c0_21 = arith.constant 0 : index
    %25 = vector.load %arg4[%c0_18, %c2_19, %c0_20, %c0_21] : memref<1x9x128x128xbf16, #tpu.memory_space<vmem>>, vector<1x1x128x128xbf16>
    %26 = vector.shape_cast %25 : vector<1x1x128x128xbf16> to vector<128x128xbf16>
    %cst_22 = arith.constant dense<0.000000e+00> : vector<256x128xf32>
    %27 = tpu.matmul %24, %26, %cst_22 {dimension_numbers = #tpu.dot_dimension_numbers<[1], [0], [0], [1], [0, 0, 1, 1], [], []>} : vector<256x128xbf16>, vector<128x128xbf16>, vector<256x128xf32> -> vector<256x128xf32>
    %28 = arith.addf %19, %27 : vector<256x128xf32>
    %c1_i32 = arith.constant 1 : i32
    %29 = arith.addi %c1_i32, %0 : i32
    %c0_23 = arith.constant 0 : index
    %30 = arith.index_cast %29 : i32 to index
    %c0_24 = arith.constant 0 : index
    %c0_25 = arith.constant 0 : index
    %31 = vector.load %arg3[%c0_23, %30, %c0_24, %c0_25] : memref<1x18x24x128xbf16, #tpu.memory_space<vmem>>, vector<1x16x16x128xbf16>
    %32 = vector.shape_cast %31 : vector<1x16x16x128xbf16> to vector<16x16x128xbf16>
    %33 = vector.shape_cast %32 : vector<16x16x128xbf16> to vector<256x128xbf16>
    %c0_26 = arith.constant 0 : index
    %c3 = arith.constant 3 : index
    %c0_27 = arith.constant 0 : index
    %c0_28 = arith.constant 0 : index
    %34 = vector.load %arg4[%c0_26, %c3, %c0_27, %c0_28] : memref<1x9x128x128xbf16, #tpu.memory_space<vmem>>, vector<1x1x128x128xbf16>
    %35 = vector.shape_cast %34 : vector<1x1x128x128xbf16> to vector<128x128xbf16>
    %cst_29 = arith.constant dense<0.000000e+00> : vector<256x128xf32>
    %36 = tpu.matmul %33, %35, %cst_29 {dimension_numbers = #tpu.dot_dimension_numbers<[1], [0], [0], [1], [0, 0, 1, 1], [], []>} : vector<256x128xbf16>, vector<128x128xbf16>, vector<256x128xf32> -> vector<256x128xf32>
    %37 = arith.addf %28, %36 : vector<256x128xf32>
    %c1_i32_30 = arith.constant 1 : i32
    %38 = arith.addi %c1_i32_30, %0 : i32
    %c0_31 = arith.constant 0 : index
    %39 = arith.index_cast %38 : i32 to index
    %c1_32 = arith.constant 1 : index
    %c0_33 = arith.constant 0 : index
    %40 = vector.load %arg3[%c0_31, %39, %c1_32, %c0_33] : memref<1x18x24x128xbf16, #tpu.memory_space<vmem>>, vector<1x16x16x128xbf16>
    %41 = vector.shape_cast %40 : vector<1x16x16x128xbf16> to vector<16x16x128xbf16>
    %42 = vector.shape_cast %41 : vector<16x16x128xbf16> to vector<256x128xbf16>
    %c0_34 = arith.constant 0 : index
    %c4 = arith.constant 4 : index
    %c0_35 = arith.constant 0 : index
    %c0_36 = arith.constant 0 : index
    %43 = vector.load %arg4[%c0_34, %c4, %c0_35, %c0_36] : memref<1x9x128x128xbf16, #tpu.memory_space<vmem>>, vector<1x1x128x128xbf16>
    %44 = vector.shape_cast %43 : vector<1x1x128x128xbf16> to vector<128x128xbf16>
    %cst_37 = arith.constant dense<0.000000e+00> : vector<256x128xf32>
    %45 = tpu.matmul %42, %44, %cst_37 {dimension_numbers = #tpu.dot_dimension_numbers<[1], [0], [0], [1], [0, 0, 1, 1], [], []>} : vector<256x128xbf16>, vector<128x128xbf16>, vector<256x128xf32> -> vector<256x128xf32>
    %46 = arith.addf %37, %45 : vector<256x128xf32>
    %c1_i32_38 = arith.constant 1 : i32
    %47 = arith.addi %c1_i32_38, %0 : i32
    %c0_39 = arith.constant 0 : index
    %48 = arith.index_cast %47 : i32 to index
    %c2_40 = arith.constant 2 : index
    %c0_41 = arith.constant 0 : index
    %49 = vector.load %arg3[%c0_39, %48, %c2_40, %c0_41] : memref<1x18x24x128xbf16, #tpu.memory_space<vmem>>, vector<1x16x16x128xbf16>
    %50 = vector.shape_cast %49 : vector<1x16x16x128xbf16> to vector<16x16x128xbf16>
    %51 = vector.shape_cast %50 : vector<16x16x128xbf16> to vector<256x128xbf16>
    %c0_42 = arith.constant 0 : index
    %c5 = arith.constant 5 : index
    %c0_43 = arith.constant 0 : index
    %c0_44 = arith.constant 0 : index
    %52 = vector.load %arg4[%c0_42, %c5, %c0_43, %c0_44] : memref<1x9x128x128xbf16, #tpu.memory_space<vmem>>, vector<1x1x128x128xbf16>
    %53 = vector.shape_cast %52 : vector<1x1x128x128xbf16> to vector<128x128xbf16>
    %cst_45 = arith.constant dense<0.000000e+00> : vector<256x128xf32>
    %54 = tpu.matmul %51, %53, %cst_45 {dimension_numbers = #tpu.dot_dimension_numbers<[1], [0], [0], [1], [0, 0, 1, 1], [], []>} : vector<256x128xbf16>, vector<128x128xbf16>, vector<256x128xf32> -> vector<256x128xf32>
    %55 = arith.addf %46, %54 : vector<256x128xf32>
    %c2_i32 = arith.constant 2 : i32
    %56 = arith.addi %c2_i32, %0 : i32
    %c0_46 = arith.constant 0 : index
    %57 = arith.index_cast %56 : i32 to index
    %c0_47 = arith.constant 0 : index
    %c0_48 = arith.constant 0 : index
    %58 = vector.load %arg3[%c0_46, %57, %c0_47, %c0_48] : memref<1x18x24x128xbf16, #tpu.memory_space<vmem>>, vector<1x16x16x128xbf16>
    %59 = vector.shape_cast %58 : vector<1x16x16x128xbf16> to vector<16x16x128xbf16>
    %60 = vector.shape_cast %59 : vector<16x16x128xbf16> to vector<256x128xbf16>
    %c0_49 = arith.constant 0 : index
    %c6 = arith.constant 6 : index
    %c0_50 = arith.constant 0 : index
    %c0_51 = arith.constant 0 : index
    %61 = vector.load %arg4[%c0_49, %c6, %c0_50, %c0_51] : memref<1x9x128x128xbf16, #tpu.memory_space<vmem>>, vector<1x1x128x128xbf16>
    %62 = vector.shape_cast %61 : vector<1x1x128x128xbf16> to vector<128x128xbf16>
    %cst_52 = arith.constant dense<0.000000e+00> : vector<256x128xf32>
    %63 = tpu.matmul %60, %62, %cst_52 {dimension_numbers = #tpu.dot_dimension_numbers<[1], [0], [0], [1], [0, 0, 1, 1], [], []>} : vector<256x128xbf16>, vector<128x128xbf16>, vector<256x128xf32> -> vector<256x128xf32>
    %64 = arith.addf %55, %63 : vector<256x128xf32>
    %c2_i32_53 = arith.constant 2 : i32
    %65 = arith.addi %c2_i32_53, %0 : i32
    %c0_54 = arith.constant 0 : index
    %66 = arith.index_cast %65 : i32 to index
    %c1_55 = arith.constant 1 : index
    %c0_56 = arith.constant 0 : index
    %67 = vector.load %arg3[%c0_54, %66, %c1_55, %c0_56] : memref<1x18x24x128xbf16, #tpu.memory_space<vmem>>, vector<1x16x16x128xbf16>
    %68 = vector.shape_cast %67 : vector<1x16x16x128xbf16> to vector<16x16x128xbf16>
    %69 = vector.shape_cast %68 : vector<16x16x128xbf16> to vector<256x128xbf16>
    %c0_57 = arith.constant 0 : index
    %c7 = arith.constant 7 : index
    %c0_58 = arith.constant 0 : index
    %c0_59 = arith.constant 0 : index
    %70 = vector.load %arg4[%c0_57, %c7, %c0_58, %c0_59] : memref<1x9x128x128xbf16, #tpu.memory_space<vmem>>, vector<1x1x128x128xbf16>
    %71 = vector.shape_cast %70 : vector<1x1x128x128xbf16> to vector<128x128xbf16>
    %cst_60 = arith.constant dense<0.000000e+00> : vector<256x128xf32>
    %72 = tpu.matmul %69, %71, %cst_60 {dimension_numbers = #tpu.dot_dimension_numbers<[1], [0], [0], [1], [0, 0, 1, 1], [], []>} : vector<256x128xbf16>, vector<128x128xbf16>, vector<256x128xf32> -> vector<256x128xf32>
    %73 = arith.addf %64, %72 : vector<256x128xf32>
    %c2_i32_61 = arith.constant 2 : i32
    %74 = arith.addi %c2_i32_61, %0 : i32
    %c0_62 = arith.constant 0 : index
    %75 = arith.index_cast %74 : i32 to index
    %c2_63 = arith.constant 2 : index
    %c0_64 = arith.constant 0 : index
    %76 = vector.load %arg3[%c0_62, %75, %c2_63, %c0_64] : memref<1x18x24x128xbf16, #tpu.memory_space<vmem>>, vector<1x16x16x128xbf16>
    %77 = vector.shape_cast %76 : vector<1x16x16x128xbf16> to vector<16x16x128xbf16>
    %78 = vector.shape_cast %77 : vector<16x16x128xbf16> to vector<256x128xbf16>
    %c0_65 = arith.constant 0 : index
    %c8 = arith.constant 8 : index
    %c0_66 = arith.constant 0 : index
    %c0_67 = arith.constant 0 : index
    %79 = vector.load %arg4[%c0_65, %c8, %c0_66, %c0_67] : memref<1x9x128x128xbf16, #tpu.memory_space<vmem>>, vector<1x1x128x128xbf16>
    %80 = vector.shape_cast %79 : vector<1x1x128x128xbf16> to vector<128x128xbf16>
    %cst_68 = arith.constant dense<0.000000e+00> : vector<256x128xf32>
    %81 = tpu.matmul %78, %80, %cst_68 {dimension_numbers = #tpu.dot_dimension_numbers<[1], [0], [0], [1], [0, 0, 1, 1], [], []>} : vector<256x128xbf16>, vector<128x128xbf16>, vector<256x128xf32> -> vector<256x128xf32>
    %82 = arith.addf %73, %81 : vector<256x128xf32>
    %c0_69 = arith.constant 0 : index
    %c0_70 = arith.constant 0 : index
    %c0_71 = arith.constant 0 : index
    %83 = vector.load %arg5[%c0_69, %c0_70, %c0_71] : memref<1x256x128xf32, #tpu.memory_space<vmem>>, vector<1x256x128xf32>
    %84 = vector.shape_cast %83 : vector<1x256x128xf32> to vector<256x128xf32>
    %85 = vector.shape_cast %82 : vector<256x128xf32> to vector<1x256x128xf32>
    tpu.vector_store %arg5[%c0_69, %c0_70, %c0_71], %85 {strides = array<i32>} : memref<1x256x128xf32, #tpu.memory_space<vmem>>, vector<1x256x128xf32>,
    return
  }
  func.func @transform_0(%arg0: i32, %arg1: i32, %arg2: i32) -> (i32, i32, i32, i32) {
    %c1_i32 = arith.constant 1 : i32
    %0 = arith.muli %arg1, %c1_i32 : i32
    %1 = arith.addi %0, %arg0 : i32
    %c0_i32 = arith.constant 0 : i32
    %c0_i32_0 = arith.constant 0 : i32
    %c0_i32_1 = arith.constant 0 : i32
    %c0_i32_2 = arith.constant 0 : i32
    return %1, %c0_i32, %c0_i32_0, %c0_i32_1 : i32, i32, i32, i32
  }
  func.func @transform_1(%arg0: i32, %arg1: i32, %arg2: i32) -> (i32, i32, i32, i32) {
    %c0_i32 = arith.constant 0 : i32
    %c0_i32_0 = arith.constant 0 : i32
    %c0_i32_1 = arith.constant 0 : i32
    %c0_i32_2 = arith.constant 0 : i32
    return %arg0, %c0_i32, %c0_i32_0, %c0_i32_1 : i32, i32, i32, i32
  }
  func.func @transform_2(%arg0: i32, %arg1: i32, %arg2: i32) -> (i32, i32, i32) {
    %c1_i32 = arith.constant 1 : i32
    %0 = arith.muli %arg1, %c1_i32 : i32
    %1 = arith.addi %0, %arg0 : i32
    %c0_i32 = arith.constant 0 : i32
    %c0_i32_0 = arith.constant 0 : i32
    return %1, %arg2, %c0_i32 : i32, i32, i32
  }
}

</mosaic_0001>

<bundles_post_ra>
// kernel: conv2d_function.1
= control target key start
LH: loop header
LB: loop body
LE: loop exit
PB: predicated region body
PF: predicated region fallthrough
CT: control target
= control target key end

     0   :  { %s6940_s9 = smov 0   ;;  %s6942_s10 = smov 0   ;;  %s8769_s0 = inlined_call_operand.vmem [shape: bf16[2,18,24,128], index: 0, kind: input, shape index: {}]   ;;  %s8770_s1 = inlined_call_operand.vmem [shape: bf16[1,9,128,128], index: 1, kind: input, shape index: {}]   ;;  %s8771_s2 = inlined_call_operand.vmem [shape: f32[2,256,128], index: 2, kind: output, shape index: {}]  }
   0x1   :  { %s6944_s11 = smov 0  }
   0x2 LB: > { %s27_s12 = sadd.s32 1, %s6919_s10  ;;  %p5175_p0 = scmp.ge.s32.totalorder %s6923_s11, 1  ;;  %s6923_s11 = sphi %s6944_s11, %s12_s11   ;;  %s6919_s10 = sphi %s6942_s10, %s8839_s10   ;;  %s6915_s9 = sphi %s6940_s9, %s8838_s9  }
   0x3   : > { %p29_p1 = scmp.ge.s32.totalorder %s27_s12, 2  ;;  %p149_p2 = scmp.lt.s32.totalorder %s6923_s11, 3 }
   0x5   : > { %s8841_s12 = smov (%p29_p1, %s27_s12), 0  ;;  %p150_p3 = pnand %p5175_p0, %p149_p2 }
   0x7   : > { %153 = sbr.rel (%p150_p3) target bundleno = 584 (0x248), region = 28 }
   0xe   : > { %v6711_v0 = vld [vmem:[%s8770_s1 + $0x40] sm:$0xff]   ;;  %p183_p4 = scmp.lt.s32.totalorder %s6915_s9, 1  ;;  %v6713_v2 = vld [vmem:[%s8770_s1 + $0x48] sm:$0xff]   ;;  %v6715_v4 = vld [vmem:[%s8770_s1 + $0x50] sm:$0xff]   ;;  %vm275_vm0 = vsmask.f32 3328 }
   0xf   : > { %v6712_v1 = vld [vmem:[%s8770_s1 + $0x100] sm:$0xff]   ;;  %5982 = vmatprep.subr.bf16.mxu1 %v6711_v0  ;;  %v6714_v3 = vld [vmem:[%s8770_s1 + $0x108] sm:$0xff]   ;;  %v6716_v5 = vld [vmem:[%s8770_s1 + $0x110] sm:$0xff]   ;;  %vm276_vm1 = vsmask.f32 7440  ;;  %vm1305_vm3 = vcmask 1042432  }
  0x10   : > { %6174 = vmatprep.subr.bf16.mxu0 %v6712_v1  ;;  %5983 = vmatpush3.bf16.msra.mxu1 %v6711_v0  ;;  %s8843_s9 = smov (!%p183_p4, %s6915_s9), 1  ;;  %v6717_v6 = vld [vmem:[%s8770_s1 + $0x58] sm:$0xff]   ;;  %v6719_v8 = vld [vmem:[%s8770_s1 + $0x60] sm:$0xff]   ;;  %v6721_v10 = vld [vmem:[%s8770_s1 + $0x68] sm:$0xff]   ;;  %vm1306_vm4 = vcmask 1046532  }
  0x11   : > { %6175 = vmatpush3.bf16.msra.mxu0 %v6712_v1  ;;  %5984 = vmatprep.subr.bf16.mxu1 %v6713_v2  ;;  %v6718_v7 = vld [vmem:[%s8770_s1 + $0x118] sm:$0xff]   ;;  %s6686_s29 = smul.u32 216, %s8843_s9  ;;  %v6720_v9 = vld [vmem:[%s8770_s1 + $0x120] sm:$0xff]   ;;  %v6722_v11 = vld [vmem:[%s8770_s1 + $0x128] sm:$0xff]  }
  0x12   : > { %6176 = vmatprep.subr.bf16.mxu0 %v6714_v3  ;;  %v6723_v25 = vld [vmem:[%s8770_s1 + $0x70] sm:$0xff]   ;;  %v6725_v36 = vld [vmem:[%s8770_s1 + $0x78] sm:$0xff]   ;;  %vm7026_vm2 = vmor %vm275_vm0, %vm276_vm1 }
  0x13   : > { %s6994_s8 = scalar_lea.vmem %s8769_s0, %s6686_s29  ;;  %v6724_v30 = vld [vmem:[%s8770_s1 + $0x130] sm:$0xff]   ;;  %v6726_v51 = vld [vmem:[%s8770_s1 + $0x138] sm:$0xff]   ;;  %vm7272_vm5 = vmor %vm1305_vm3, %vm1306_vm4 }
  0x14   : > { %5985 = vmatpush3.bf16.msra.mxu1 %v6713_v2  ;;  %v211_v12 = vld [vmem:[%s6994_s8] sm:$0xf]  ;;  %v212_v13 = vld [vmem:[%s6994_s8 + $0x4] sm:$0xf]  ;;  %v259_v14 = vld [vmem:[%s6994_s8 + $0x8] sm:$0x1] }
  0x15   : > { %6177 = vmatpush3.bf16.msra.mxu0 %v6714_v3  ;;  %5986 = vmatprep.subr.bf16.mxu1 %v6715_v4  ;;  %v279_v15 = vshrl.u32 %v211_v12, 16  ;;  %v282_v16 = vshll.u32 %v211_v12, 16  ;;  %v288_v17 = vshll.u32 %v212_v13, 16  ;;  %v292_v18 = vshrl.u32 %v212_v13, 16  ;;  %v5371_v20 = vld [vmem:[%s6994_s8 + $0xc] sm:$0xf] }
  0x16   : > { %6178 = vmatprep.subr.bf16.mxu0 %v6716_v5  ;;  %v298_v19 = vshll.u32 %v259_v14, 16  ;;  %v7007_v23 = vld [vmem:[%s6994_s8 + $0x10] sm:$0xf]  ;;  %v7010_v24 = vld [vmem:[%s6994_s8 + $0x14] sm:$0x1]  ;;  %v2181_v29 = vshrl.u32 %v5371_v20, 16 }
  0x17   : > { %v281_v21 = vrot.slane %v279_v15, 4  ;;  %v284_v22 = vrot.slane %v282_v16, 5  ;;  %v290_v26 = vrot.slane %v288_v17, 5  ;;  %v294_v27 = vrot.slane %v292_v18, 4  ;;  %v213_v35 = vld [vmem:[%s6994_s8 + $0xc] sm:$0xf] }
  0x18   : > { %5987 = vmatpush3.bf16.msra.mxu1 %v6715_v4  ;;  %v300_v28 = vrot.slane %v298_v19, 5  ;;  %v2184_v32 = vshll.u32 %v5371_v20, 16  ;;  %v2190_v33 = vshll.u32 %v7007_v23, 16  ;;  %v2194_v34 = vshrl.u32 %v7007_v23, 16  ;;  %v214_v42 = vld [vmem:[%s6994_s8 + $0x10] sm:$0xf] }
  0x19   : > { %6179 = vmatpush3.bf16.msra.mxu0 %v6716_v5  ;;  %5988 = vmatprep.subr.bf16.mxu1 %v6717_v6  ;;  %v285_v31 = vor.u32 %v284_v22, %v281_v21  ;;  %v295_v38 = vor.u32 %v294_v27, %v290_v26  ;;  %v2183_v39 = vrot.slane %v2181_v29, 4  ;;  %v2200_v40 = vshll.u32 %v7010_v24, 16  ;;  %v260_v55 = vld [vmem:[%s6994_s8 + $0x14] sm:$0x1]  ;;  %v5374_v57 = vld [vmem:[%s6994_s8 + $0x18] sm:$0xf] }
  0x1a   : > { %6180 = vmatprep.subr.bf16.mxu0 %v6718_v7  ;;  %v2955_v41 = vrot.slane %v7010_v24, 5  ;;  %v2186_v44 = vrot.slane %v2184_v32, 5  ;;  %v2192_v45 = vrot.slane %v2190_v33, 5  ;;  %v2196_v46 = vrot.slane %v2194_v34, 4  ;;  %v7043_v62 = vld [vmem:[%s6994_s8 + $0x1c] sm:$0xf] }
  0x1b   : > { %v286_v43 = vrot.slane %v285_v31, 4  ;;  %v296_v47 = vrot.slane %v295_v38, 4  ;;  %v2202_v48 = vrot.slane %v2200_v40, 5  ;;  %v303_v49 = vshrl.u32 %v213_v35, 16  ;;  %v6727_v3 = vld [vmem:[%s8770_s1] sm:$0xff]  }
  0x1c   : > { %5989 = vmatpush3.bf16.msra.mxu1 %v6717_v6  ;;  %v306_v50 = vshll.u32 %v213_v35, 16  ;;  %v2187_v53 = vor.u32 %v2186_v44, %v2183_v39  ;;  %v2197_v54 = vor.u32 %v2196_v46, %v2192_v45  ;;  %v312_v56 = vshll.u32 %v214_v42, 16  ;;  %v7051_v4 = vld [vmem:[%s8770_s1 + $0x140] sm:$0xff]   ;;  %v215_v21 = vld [vmem:[%s6994_s8 + $0x18] sm:$0xf]  ;;  %v6730_v46 = vld [vmem:[%s8770_s1 + $0x8] sm:$0xff]  }
  0x1d   : > { %6181 = vmatpush3.bf16.msra.mxu0 %v6718_v7  ;;  %5990 = vmatprep.subr.bf16.mxu1 %v6719_v8  ;;  %v291_v52 = vsel %vm7026_vm2, %v286_v43, %v290_v26  ;;  %v301_v58 = vsel %vm7026_vm2, %v296_v47, %v300_v28  ;;  %v305_v59 = vrot.slane %v303_v49, 4  ;;  %v316_v61 = vshrl.u32 %v214_v42, 16  ;;  %v216_v28 = vld [vmem:[%s6994_s8 + $0x1c] sm:$0xf]  ;;  %v261_v33 = vld [vmem:[%s6994_s8 + $0x20] sm:$0x1] }
  0x1e   : > { %6182 = vmatprep.subr.bf16.mxu0 %v6720_v9  ;;  %v308_v60 = vrot.slane %v306_v50, 5  ;;  %v5195_v63 = vcombine.low %v291_v52, %v301_v58  ;;  %v2188_v0 = vrot.slane %v2187_v53, 4  ;;  %v2198_v1 = vrot.slane %v2197_v54, 4  ;;  %v5377_v39 = vld [vmem:[%s6994_s8 + $0x24] sm:$0xf] }
  0x1f   : > { %v314_v2 = vrot.slane %v312_v56, 5  ;;  %v318_v6 = vrot.slane %v316_v61, 4  ;;  %v322_v7 = vshll.u32 %v260_v55, 16  ;;  %v2208_v12 = vshll.u32 %v5374_v57, 16  ;;  %v217_v52 = vld [vmem:[%s6994_s8 + $0x24] sm:$0xf] }
  0x20   : > { %5991 = vmatpush3.bf16.msra.mxu1 %v6719_v8  ;;  %v309_v5 = vor.u32 %v308_v60, %v305_v59  ;;  %v7054_v8 = vld [vmem:[%s6994_s8 + $0x20] sm:$0x1]  ;;  %5998 = vmatprep.mubr.bf16.mxu1 %v5195_v63  ;;  %v2214_v19 = vshll.u32 %v7043_v62, 16  ;;  %v2218_v20 = vshrl.u32 %v7043_v62, 16  ;;  %v2959_v27 = vrot.slane %v7043_v62, 5  ;;  %v6729_v63 = vld [vmem:[%s8770_s1 + $0x148] sm:$0xff]  }
  0x21   : > { %6183 = vmatpush3.bf16.msra.mxu0 %v6720_v9  ;;  %5992 = vmatprep.subr.bf16.mxu1 %v6721_v10  ;;  %v2193_v9 = vsel %vm7026_vm2, %v2188_v0, %v2192_v45  ;;  %v319_v15 = vor.u32 %v318_v6, %v314_v2  ;;  %v324_v16 = vrot.slane %v322_v7, 5  ;;  %v2210_v18 = vrot.slane %v2208_v12, 5  ;;  %v7079_v45 = vld [vmem:[%s6994_s8 + $0x28] sm:$0xf] }
  0x22   : > { %6184 = vmatprep.subr.bf16.mxu0 %v6722_v11  ;;  %v310_v14 = vrot.slane %v309_v5, 4  ;;  %v2224_v26 = vshll.u32 %v7054_v8, 16  ;;  %v2220_v31 = vrot.slane %v2218_v20, 4  ;;  %v2962_v32 = vrot.slane %v7054_v8, 5  ;;  %v218_v5 = vld [vmem:[%s6994_s8 + $0x28] sm:$0xf] }
  0x23   : > { %v327_v38 = vshrl.u32 %v215_v21, 16  ;;  %v330_v44 = vshll.u32 %v215_v21, 16  ;;  %v340_v49 = vshrl.u32 %v216_v28, 16  ;;  %v346_v50 = vshll.u32 %v261_v33, 16  ;;  %v7110_v33 = vld [vmem:[%s6994_s8 + $0x34] sm:$0xf] }
  0x24   : > { %5993 = vmatpush3.bf16.msra.mxu1 %v6721_v10  ;;  %v2203_v10 = vsel %vm7026_vm2, %v2198_v1, %v2202_v48  ;;  %v315_v22 = vsel %vm7026_vm2, %v310_v14, %v314_v2  ;;  %v2226_v35 = vrot.slane %v2224_v26, 5  ;;  %v336_v48 = vshll.u32 %v216_v28, 16 }
  0x25   : > { %6185 = vmatpush3.bf16.msra.mxu0 %v6722_v11  ;;  %5994 = vmatprep.subr.bf16.mxu1 %v6723_v25  ;;  %v2205_v11 = vshrl.u32 %v5374_v57, 16  ;;  %v5435_v13 = vcombine.low %v2193_v9, %v2203_v10  ;;  %v329_v47 = vrot.slane %v327_v38, 4  ;;  %v332_v55 = vrot.slane %v330_v44, 5 }
  0x26   : > { %6186 = vmatprep.subr.bf16.mxu0 %v6724_v30  ;;  %v2229_v56 = vshrl.u32 %v5377_v39, 16  ;;  %v338_v57 = vrot.slane %v336_v48, 5  ;;  %v342_v58 = vrot.slane %v340_v49, 4  ;;  %v348_v59 = vrot.slane %v346_v50, 5  ;;  %v6732_v48 = vld [vmem:[%s8770_s1 + $0x158] sm:$0xff]  }
  0x27   : > { %v2207_v17 = vrot.slane %v2205_v11, 4  ;;  %6190 = vmatprep.mubr.bf16.mxu0 %v5435_v13  ;;  %v2232_v60 = vshll.u32 %v5377_v39, 16  ;;  %v333_v0 = vor.u32 %v332_v55, %v329_v47  ;;  %v2238_v2 = vshll.u32 %v7079_v45, 16  ;;  %v262_v11 = vld [vmem:[%s6994_s8 + $0x2c] sm:$0x1] }
  0x28   : > { %5995 = vmatpush3.bf16.msra.mxu1 %v6723_v25  ;;  %v320_v25 = vrot.slane %v319_v15, 4  ;;  %v2231_v1 = vrot.slane %v2229_v56, 4  ;;  %v343_v7 = vor.u32 %v342_v58, %v338_v57  ;;  %v2242_v10 = vshrl.u32 %v7079_v45, 16 }
  0x29   : > { %6187 = vmatpush3.bf16.msra.mxu0 %v6724_v30  ;;  %5996 = vmatprep.subr.bf16.mxu1 %v6725_v36  ;;  %v2211_v29 = vor.u32 %v2210_v18, %v2207_v17  ;;  %v2216_v30 = vrot.slane %v2214_v19, 5  ;;  %v2234_v9 = vrot.slane %v2232_v60, 5  ;;  %v334_v12 = vrot.slane %v333_v0, 4  ;;  %v6739_v60 = vld [vmem:[%s8770_s1 + $0x20] sm:$0xff]  }
  0x2a   : > { %6188 = vmatprep.subr.bf16.mxu0 %v6726_v51  ;;  %v325_v34 = vsel %vm7026_vm2, %v320_v25, %v324_v16  ;;  %v2240_v13 = vrot.slane %v2238_v2, 5  ;;  %v351_v15 = vshrl.u32 %v217_v52, 16  ;;  %v5380_v16 = vld [vmem:[%s6994_s8 + $0x30] sm:$0xf]  ;;  %v344_v17 = vrot.slane %v343_v7, 4 }
  0x2b   : > { %v5196_v40 = vcombine.low %v315_v22, %v325_v34  ;;  %v2212_v42 = vrot.slane %v2211_v29, 4  ;;  %v2221_v43 = vor.u32 %v2220_v31, %v2216_v30  ;;  %v2235_v18 = vor.u32 %v2234_v9, %v2231_v1  ;;  %v6736_v34 = vld [vmem:[%s8770_s1 + $0x18] sm:$0xff]  }
  0x2c   : > { %5997 = vmatpush3.bf16.msra.mxu1 %v6725_v36  ;;  %v7075_v36 = vrot.slane %v2959_v27, 4  ;;  %v2244_v19 = vrot.slane %v2242_v10, 4  ;;  %v354_v20 = vshll.u32 %v217_v52, 16  ;;  %v339_v21 = vsel %vm7026_vm2, %v334_v12, %v338_v57  ;;  %v263_v2 = vld [vmem:[%s6994_s8 + $0x38] sm:$0x1] }
  0x2d   : > { %6189 = vmatpush3.bf16.msra.mxu0 %v6726_v51  ;;  %6030 = vmatprep.subr.bf16.mxu1 %v6727_v3  ;;  %v7085_v51 = vld [vmem:[%s6994_s8 + $0x2c] sm:$0x1]  ;;  %v2217_v53 = vsel %vm7026_vm2, %v2212_v42, %v2216_v30  ;;  %v2222_v54 = vrot.slane %v2221_v43, 4  ;;  %v353_v25 = vrot.slane %v351_v15, 4  ;;  %v360_v26 = vshll.u32 %v218_v5, 16 }
  0x2e   : > { %6222 = vmatprep.subr.bf16.mxu0 %v7051_v4  ;;  %v2248_v14 = vshll.u32 %v7085_v51, 16  ;;  %v349_v28 = vsel %vm7026_vm2, %v344_v17, %v348_v59  ;;  %v2236_v29 = vrot.slane %v2235_v18, 4  ;;  %v2245_v30 = vor.u32 %v2244_v19, %v2240_v13  ;;  %v220_v59 = vld [vmem:[%s6994_s8 + $0x34] sm:$0xf]  ;;  %v5383_v9 = vld [vmem:[%s6994_s8 + $0x3c] sm:$0xf] }
  0x2f   : > { %5999 = vmatmul.mubr.bf16.vlgmr.msra.gmra.mrb[0].mxu1 %v5196_v40  ;;  %v2227_v61 = vsel %vm7026_vm2, %v2222_v54, %v2226_v35  ;;  %v356_v31 = vrot.slane %v354_v20, 5  ;;  %v5197_v35 = vcombine.low %v339_v21, %v349_v28  ;;  %v362_v38 = vrot.slane %v360_v26, 5  ;;  %v219_v54 = vld [vmem:[%s6994_s8 + $0x30] sm:$0xf]  ;;  %v7144_v19 = vld [vmem:[%s6994_s8 + $0x40] sm:$0xf] }
  0x30   : > { %6031 = vmatpush3.bf16.msra.mxu1 %v6727_v3  ;;  %v6733_v3 = vld [vmem:[%s8770_s1 + $0x10] sm:$0xff]   ;;  %v5436_v6 = vcombine.low %v2217_v53, %v2227_v61  ;;  %v2250_v22 = vrot.slane %v2248_v14, 5  ;;  %v364_v39 = vshrl.u32 %v218_v5, 16  ;;  %v370_v40 = vshll.u32 %v262_v11, 16  ;;  %v6741_v14 = vld [vmem:[%s8770_s1 + $0x28] sm:$0xff]   ;;  %v6734_v20 = vld [vmem:[%s8770_s1 + $0x160] sm:$0xff]  }
  0x31   : > { %6032 = vmatprep.subr.bf16.mxu1 %v6730_v46  ;;  %v2241_v42 = vsel %vm7026_vm2, %v2236_v29, %v2240_v13  ;;  %v2246_v43 = vrot.slane %v2245_v30, 4  ;;  %v357_v44 = vor.u32 %v356_v31, %v353_v25  ;;  %v2253_v47 = vshrl.u32 %v5380_v16, 16  ;;  %6002 = vmatprep.mubr.bf16.mxu1 %v5197_v35  ;;  %v7152_v28 = vld [vmem:[%s6994_s8 + $0x44] sm:$0x1]  ;;  %v6743_v35 = vld [vmem:[%s8770_s1 + $0x30] sm:$0xff]  }
  0x32   : > { %6191 = vmatmul.mubr.bf16.vlgmr.msra.gmra.mrb[0].mxu0 %v5436_v6  ;;  %v366_v49 = vrot.slane %v364_v39, 4  ;;  %v372_v50 = vrot.slane %v370_v40, 5  ;;  %v2256_v52 = vshll.u32 %v5380_v16, 16  ;;  %v2262_v53 = vshll.u32 %v7110_v33, 16 }
  0x33   : > { %6223 = vmatpush3.bf16.msra.mxu0 %v7051_v4  ;;  %v6731_v4 = vld [vmem:[%s8770_s1 + $0x150] sm:$0xff]   ;;  %v2251_v55 = vsel %vm7026_vm2, %v2246_v43, %v2250_v22  ;;  %v358_v56 = vrot.slane %v357_v44, 4  ;;  %v2255_v57 = vrot.slane %v2253_v47, 4  ;;  %v2266_v58 = vshrl.u32 %v7110_v33, 16 }
  0x34   : > { %6033 = vmatpush3.bf16.msra.mxu1 %v6730_v46  ;;  %6224 = vmatprep.subr.bf16.mxu0 %v6729_v63  ;;  %v7121_v46 = vld [vmem:[%s6994_s8 + $0x38] sm:$0x1]  ;;  %v5437_v61 = vcombine.low %v2241_v42, %v2251_v55  ;;  %v2258_v0 = vrot.slane %v2256_v52, 5  ;;  %v2264_v1 = vrot.slane %v2262_v53, 5  ;;  %v375_v7 = vshrl.u32 %v219_v54, 16 }
  0x35   : > { %6034 = vmatprep.subr.bf16.mxu1 %v6733_v3  ;;  %v363_v5 = vsel %vm7026_vm2, %v358_v56, %v362_v38  ;;  %v2272_v6 = vshll.u32 %v7121_v46, 16  ;;  %v378_v12 = vshll.u32 %v219_v54, 16  ;;  %v384_v13 = vshll.u32 %v220_v59, 16  ;;  %v222_v55 = vld [vmem:[%s6994_s8 + $0x40] sm:$0xf] }
  0x36   : > { %6194 = vmatprep.mubr.bf16.mxu0 %v5437_v61  ;;  %v2259_v11 = vor.u32 %v2258_v0, %v2255_v57  ;;  %v377_v17 = vrot.slane %v375_v7, 4  ;;  %v388_v18 = vshrl.u32 %v220_v59, 16  ;;  %v2277_v40 = vshrl.u32 %v5383_v9, 16 }
  0x37   : > { %6225 = vmatpush3.bf16.msra.mxu0 %v6729_v63  ;;  %v367_v63 = vor.u32 %v366_v49, %v362_v38  ;;  %v2274_v16 = vrot.slane %v2272_v6, 5  ;;  %v380_v25 = vrot.slane %v378_v12, 5  ;;  %v386_v26 = vrot.slane %v384_v13, 5 }
  0x38   : > { %6035 = vmatpush3.bf16.msra.mxu1 %v6733_v3  ;;  %6226 = vmatprep.subr.bf16.mxu0 %v6731_v4  ;;  %v2268_v3 = vrot.slane %v2266_v58, 4  ;;  %v2260_v22 = vrot.slane %v2259_v11, 4  ;;  %v390_v31 = vrot.slane %v388_v18, 4  ;;  %v2280_v42 = vshll.u32 %v5383_v9, 16  ;;  %v5386_v9 = vld [vmem:[%s6994_s8 + $0x48] sm:$0xf] }
  0x39   : > { %6036 = vmatprep.subr.bf16.mxu1 %v6736_v34  ;;  %v368_v10 = vrot.slane %v367_v63, 4  ;;  %v381_v39 = vor.u32 %v380_v25, %v377_v17  ;;  %v2286_v49 = vshll.u32 %v7144_v19, 16  ;;  %v2279_v53 = vrot.slane %v2277_v40, 4  ;;  %v264_v63 = vld [vmem:[%s6994_s8 + $0x44] sm:$0x1] }
  0x3a   : > { %v2269_v15 = vor.u32 %v2268_v3, %v2264_v1  ;;  %v2265_v38 = vsel %vm7026_vm2, %v2260_v22, %v2264_v1  ;;  %v391_v44 = vor.u32 %v390_v31, %v386_v26  ;;  %v2282_v54 = vrot.slane %v2280_v42, 5  ;;  %v7185_v22 = vld [vmem:[%s6994_s8 + $0x50] sm:$0x1]  ;;  %v6738_v31 = vld [vmem:[%s8770_s1 + $0x178] sm:$0xff]  }
  0x3b   : > { %6227 = vmatpush3.bf16.msra.mxu0 %v6731_v4  ;;  %v373_v21 = vsel %vm7026_vm2, %v368_v10, %v372_v50  ;;  %v394_v4 = vshll.u32 %v263_v2, 16  ;;  %v382_v52 = vrot.slane %v381_v39, 4  ;;  %v2288_v57 = vrot.slane %v2286_v49, 5  ;;  %v6745_v2 = vld [vmem:[%s8770_s1 + $0x38] sm:$0xff]  }
  0x3c   : > { %6037 = vmatpush3.bf16.msra.mxu1 %v6736_v34  ;;  %6228 = vmatprep.subr.bf16.mxu0 %v6732_v48  ;;  %v5198_v29 = vcombine.low %v363_v5, %v373_v21  ;;  %v2270_v30 = vrot.slane %v2269_v15, 4  ;;  %v221_v34 = vld [vmem:[%s6994_s8 + $0x3c] sm:$0xf]  ;;  %v392_v56 = vrot.slane %v391_v44, 4  ;;  %v2290_v58 = vshrl.u32 %v7144_v19, 16  ;;  %v6737_v15 = vld [vmem:[%s8770_s1 + $0x170] sm:$0xff]  }
  0x3d   : > { %6038 = vmatprep.subr.bf16.mxu1 %v6739_v60  ;;  %v396_v47 = vrot.slane %v394_v4, 5  ;;  %v2296_v59 = vshll.u32 %v7152_v28, 16  ;;  %v2283_v61 = vor.u32 %v2282_v54, %v2279_v53  ;;  %v399_v0 = vshrl.u32 %v221_v34, 16  ;;  %v7196_v4 = vld [vmem:[%s8770_s1 + $0x80] sm:$0xff]   ;;  %v224_v53 = vld [vmem:[%s6994_s8 + $0x4c] sm:$0xf] }
  0x3e   : > { %6003 = vmatmul.mubr.bf16.gmra.mrb[4].mxu1 %v5198_v29  ;;  %v2275_v43 = vsel %vm7026_vm2, %v2270_v30, %v2274_v16  ;;  %v402_v1 = vshll.u32 %v221_v34, 16  ;;  %v2292_v3 = vrot.slane %v2290_v58, 4  ;;  %v408_v7 = vshll.u32 %v222_v55, 16  ;;  %v223_v30 = vld [vmem:[%s6994_s8 + $0x48] sm:$0xf] }
  0x3f   : > { %6229 = vmatpush3.bf16.msra.mxu0 %v6732_v48  ;;  %v5438_v50 = vcombine.low %v2265_v38, %v2275_v43  ;;  %v6735_v48 = vld [vmem:[%s8770_s1 + $0x168] sm:$0xff]   ;;  %v397_v5 = vsel %vm7026_vm2, %v392_v56, %v396_v47  ;;  %v2298_v6 = vrot.slane %v2296_v59, 5  ;;  %v2284_v11 = vrot.slane %v2283_v61, 4  ;;  %v265_v54 = vld [vmem:[%s6994_s8 + $0x50] sm:$0x1] }
  0x40   : > { %6039 = vmatpush3.bf16.msra.mxu1 %v6739_v60  ;;  %6230 = vmatprep.subr.bf16.mxu0 %v6734_v20  ;;  %v387_v60 = vsel %vm7026_vm2, %v382_v52, %v386_v26  ;;  %v401_v12 = vrot.slane %v399_v0, 4  ;;  %v404_v13 = vrot.slane %v402_v1, 5  ;;  %v2293_v16 = vor.u32 %v2292_v3, %v2288_v57  ;;  %v5389_v58 = vld [vmem:[%s6994_s8 + $0x54] sm:$0xf]  ;;  %v7210_v0 = vld [vmem:[%s6994_s8 + $0x58] sm:$0xf] }
  0x41   : > { %6040 = vmatprep.subr.bf16.mxu1 %v6741_v14  ;;  %6195 = vmatmul.mubr.bf16.gmra.mrb[4].mxu0 %v5438_v50  ;;  %v5199_v10 = vcombine.low %v387_v60, %v397_v5  ;;  %v410_v17 = vrot.slane %v408_v7, 5  ;;  %v412_v18 = vshrl.u32 %v222_v55, 16  ;;  %v418_v21 = vshll.u32 %v264_v63, 16 }
  0x42   : > { %v405_v25 = vor.u32 %v404_v13, %v401_v12  ;;  %v2301_v26 = vshrl.u32 %v5386_v9, 16  ;;  %v2304_v29 = vshll.u32 %v5386_v9, 16  ;;  %v2294_v34 = vrot.slane %v2293_v16, 4 }
  0x43   : > { %6231 = vmatpush3.bf16.msra.mxu0 %v6734_v20  ;;  %6006 = vmatprep.mubr.bf16.mxu1 %v5199_v10  ;;  %v2289_v20 = vsel %vm7026_vm2, %v2284_v11, %v2288_v57  ;;  %v420_v38 = vrot.slane %v418_v21, 5  ;;  %v2320_v52 = vshll.u32 %v7185_v22, 16  ;;  %v423_v61 = vshrl.u32 %v223_v30, 16 }
  0x44   : > { %6041 = vmatpush3.bf16.msra.mxu1 %v6741_v14  ;;  %v7179_v14 = vld [vmem:[%s6994_s8 + $0x4c] sm:$0xf]  ;;  %6232 = vmatprep.subr.bf16.mxu0 %v6735_v48  ;;  %v406_v40 = vrot.slane %v405_v25, 4  ;;  %v2303_v42 = vrot.slane %v2301_v26, 4  ;;  %v2306_v43 = vrot.slane %v2304_v29, 5  ;;  %v2299_v47 = vsel %vm7026_vm2, %v2294_v34, %v2298_v6  ;;  %v7215_v6 = vld [vmem:[%s8770_s1 + $0x180] sm:$0xff]  }
  0x45   : > { %6042 = vmatprep.subr.bf16.mxu1 %v6743_v35  ;;  %v2310_v39 = vshll.u32 %v7179_v14, 16  ;;  %v2314_v44 = vshrl.u32 %v7179_v14, 16  ;;  %v5439_v55 = vcombine.low %v2289_v20, %v2299_v47  ;;  %v2322_v60 = vrot.slane %v2320_v52, 5  ;;  %v7222_v20 = vld [vmem:[%s6994_s8 + $0x5c] sm:$0x1] }
  0x46   : > { %v2307_v56 = vor.u32 %v2306_v43, %v2303_v42  ;;  %v426_v63 = vshll.u32 %v223_v30, 16  ;;  %v436_v3 = vshrl.u32 %v224_v53, 16  ;;  %v425_v9 = vrot.slane %v423_v61, 4  ;;  %v226_v43 = vld [vmem:[%s6994_s8 + $0x58] sm:$0xf] }
  0x47   : > { %6233 = vmatpush3.bf16.msra.mxu0 %v6735_v48  ;;  %v2312_v50 = vrot.slane %v2310_v39, 5  ;;  %v411_v48 = vsel %vm7026_vm2, %v406_v40, %v410_v17  ;;  %v2316_v57 = vrot.slane %v2314_v44, 4  ;;  %6198 = vmatprep.mubr.bf16.mxu0 %v5439_v55  ;;  %v442_v11 = vshll.u32 %v265_v54, 16  ;;  %v5392_v52 = vld [vmem:[%s6994_s8 + $0x60] sm:$0xf] }
  0x48   : > { %6043 = vmatpush3.bf16.msra.mxu1 %v6743_v35  ;;  %v414_v35 = vrot.slane %v412_v18, 4  ;;  %6234 = vmatprep.subr.bf16.mxu0 %v6737_v15  ;;  %v2308_v1 = vrot.slane %v2307_v56, 4  ;;  %v428_v10 = vrot.slane %v426_v63, 5  ;;  %v438_v18 = vrot.slane %v436_v3, 4 }
  0x49   : > { %6044 = vmatprep.subr.bf16.mxu1 %v6745_v2  ;;  %v2317_v5 = vor.u32 %v2316_v57, %v2312_v50  ;;  %v444_v21 = vrot.slane %v442_v11, 5  ;;  %v2325_v25 = vshrl.u32 %v5389_v58, 16  ;;  %v2328_v29 = vshll.u32 %v5389_v58, 16 }
  0x4a   : > { %v415_v49 = vor.u32 %v414_v35, %v410_v17  ;;  %v2313_v13 = vsel %vm7026_vm2, %v2308_v1, %v2312_v50  ;;  %v429_v17 = vor.u32 %v428_v10, %v425_v9  ;;  %v2334_v30 = vshll.u32 %v7210_v0, 16  ;;  %v225_v35 = vld [vmem:[%s6994_s8 + $0x54] sm:$0xf]  ;;  %v266_v50 = vld [vmem:[%s6994_s8 + $0x5c] sm:$0x1] }
  0x4b   : > { %6235 = vmatpush3.bf16.msra.mxu0 %v6737_v15  ;;  %v2318_v15 = vrot.slane %v2317_v5, 4  ;;  %v2338_v34 = vshrl.u32 %v7210_v0, 16  ;;  %v2327_v42 = vrot.slane %v2325_v25, 4  ;;  %v447_v55 = vshrl.u32 %v225_v35, 16  ;;  %v7250_v25 = vld [vmem:[%s6994_s8 + $0x60] sm:$0xf] }
  0x4c   : > { %6045 = vmatpush3.bf16.msra.mxu1 %v6745_v2  ;;  %v416_v59 = vrot.slane %v415_v49, 4  ;;  %v432_v2 = vshll.u32 %v224_v53, 16  ;;  %6236 = vmatprep.subr.bf16.mxu0 %v6738_v31  ;;  %v430_v39 = vrot.slane %v429_v17, 4  ;;  %v2336_v44 = vrot.slane %v2334_v30, 5  ;;  %v7246_v17 = vld [vmem:[%s6994_s8 + $0x68] sm:$0x1] }
  0x4d   : > { %6078 = vmatprep.subr.bf16.mxu1 %v7196_v4  ;;  %v2323_v26 = vsel %vm7026_vm2, %v2318_v15, %v2322_v60  ;;  %v2340_v47 = vrot.slane %v2338_v34, 4  ;;  %v2344_v49 = vshll.u32 %v7222_v20, 16  ;;  %v7237_v60 = vld [vmem:[%s6994_s8 + $0x64] sm:$0xf]  ;;  %v449_v63 = vrot.slane %v447_v55, 4 }
  0x4e   : > { %v421_v7 = vsel %vm7026_vm2, %v416_v59, %v420_v38  ;;  %v434_v16 = vrot.slane %v432_v2, 5  ;;  %v5440_v38 = vcombine.low %v2313_v13, %v2323_v26  ;;  %v456_v59 = vshll.u32 %v226_v43, 16 }
  0x4f   : > { %v5200_v12 = vcombine.low %v411_v48, %v421_v7  ;;  %6237 = vmatpush3.bf16.msra.mxu0 %v6738_v31  ;;  %v2330_v31 = vrot.slane %v2328_v29, 5  ;;  %v450_v48 = vshll.u32 %v225_v35, 16  ;;  %v2341_v57 = vor.u32 %v2340_v47, %v2336_v44  ;;  %v7253_v35 = vld [vmem:[%s6994_s8 + $0x64] sm:$0xf] }
  0x50   : > { %6270 = vmatprep.subr.bf16.mxu0 %v7215_v6  ;;  %v439_v40 = vor.u32 %v438_v18, %v434_v16  ;;  %6199 = vmatmul.mubr.bf16.gmra.mrb[8].mxu0 %v5440_v38  ;;  %v435_v53 = vsel %vm7026_vm2, %v430_v39, %v434_v16  ;;  %v2346_v58 = vrot.slane %v2344_v49, 5  ;;  %v460_v5 = vshrl.u32 %v226_v43, 16  ;;  %v267_v43 = vld [vmem:[%s6994_s8 + $0x68] sm:$0x1] }
  0x51   : > { %6007 = vmatmul.mubr.bf16.gmra.mrb[8].mxu1 %v5200_v12  ;;  %v2331_v56 = vor.u32 %v2330_v31, %v2327_v42  ;;  %v452_v1 = vrot.slane %v450_v48, 5  ;;  %v2342_v7 = vrot.slane %v2341_v57, 4  ;;  %v458_v9 = vrot.slane %v456_v59, 5 }
  0x52   : > { %v440_v54 = vrot.slane %v439_v40, 4  ;;  %v462_v11 = vrot.slane %v460_v5, 4  ;;  %v466_v12 = vshll.u32 %v266_v50, 16  ;;  %v2349_v13 = vshrl.u32 %v5392_v52, 16  ;;  %v5459_v50 = vld [vmem:[%s6994_s8 + $0xc] sm:$0xe] }
  0x53   : > { %v2332_v3 = vrot.slane %v2331_v56, 4  ;;  %v453_v10 = vor.u32 %v452_v1, %v449_v63  ;;  %v2347_v16 = vsel %vm7026_vm2, %v2342_v7, %v2346_v58  ;;  %v2352_v18 = vshll.u32 %v5392_v52, 16  ;;  %v7268_v5 = vld [vmem:[%s6994_s8 + $0x6c] sm:$0xf] }
  0x54   : > { %v445_v61 = vsel %vm7026_vm2, %v440_v54, %v444_v21  ;;  %v2358_v21 = vshll.u32 %v7237_v60, 16  ;;  %v463_v30 = vor.u32 %v462_v11, %v458_v9  ;;  %v468_v34 = vrot.slane %v466_v12, 5 }
  0x55   : > { %v5201_v2 = vcombine.low %v435_v53, %v445_v61  ;;  %v2337_v15 = vsel %vm7026_vm2, %v2332_v3, %v2336_v44  ;;  %v454_v29 = vrot.slane %v453_v10, 4  ;;  %v2351_v38 = vrot.slane %v2349_v13, 4 }
  0x56   : > { %v5441_v26 = vcombine.low %v2337_v15, %v2347_v16  ;;  %v2354_v39 = vrot.slane %v2352_v18, 5  ;;  %v2360_v40 = vrot.slane %v2358_v21, 5  ;;  %v2362_v42 = vshrl.u32 %v7237_v60, 16  ;;  %v7280_v21 = vld [vmem:[%s6994_s8 + $0x70] sm:$0xf] }
  0x57   : > { %6010 = vmatprep.mubr.bf16.mxu1 %v5201_v2  ;;  %v459_v31 = vsel %vm7026_vm2, %v454_v29, %v458_v9  ;;  %v464_v44 = vrot.slane %v463_v30, 4  ;;  %v2368_v47 = vshll.u32 %v7246_v17, 16  ;;  %v471_v49 = vshrl.u32 %v7250_v25, 16  ;;  %v6829_v9 = vld [vmem:[%s6994_s8 + $0xb4] sm:$0xff]  }
  0x58   : > { %6202 = vmatprep.mubr.bf16.mxu0 %v5441_v26  ;;  %v2355_v52 = vor.u32 %v2354_v39, %v2351_v38  ;;  %v2364_v53 = vrot.slane %v2362_v42, 4  ;;  %v474_v54 = vshll.u32 %v7250_v25, 16  ;;  %v480_v55 = vshll.u32 %v7253_v35, 16 }
  0x59   : > { %v469_v48 = vsel %vm7026_vm2, %v464_v44, %v468_v34  ;;  %v2370_v56 = vrot.slane %v2368_v47, 5  ;;  %v473_v57 = vrot.slane %v471_v49, 4  ;;  %v484_v58 = vshrl.u32 %v7253_v35, 16  ;;  %v7291_v47 = vld [vmem:[%s6994_s8 + $0x78] sm:$0xf] }
  0x5a   : > { %v5202_v59 = vcombine.low %v459_v31, %v469_v48  ;;  %v2356_v61 = vrot.slane %v2355_v52, 4  ;;  %v2365_v63 = vor.u32 %v2364_v53, %v2360_v40  ;;  %v476_v1 = vrot.slane %v474_v54, 5  ;;  %v7302_v54 = vld [vmem:[%s6994_s8 + $0x7c] sm:$0xf] }
  0x5b   : > { %v482_v2 = vrot.slane %v480_v55, 5  ;;  %v486_v3 = vrot.slane %v484_v58, 4  ;;  %v490_v7 = vshll.u32 %v267_v43, 16  ;;  %v5475_v10 = vrot.slane %v5459_v50, 9  ;;  %v269_v58 = vld [vmem:[%s6994_s8 + $0x80] sm:$0x1] }
  0x5c   : > { %6011 = vmatmul.mubr.bf16.gmra.mrb[12].mxu1 %v5202_v59  ;;  %v2361_v11 = vsel %vm7026_vm2, %v2356_v61, %v2360_v40  ;;  %v2366_v12 = vrot.slane %v2365_v63, 4  ;;  %v477_v13 = vor.u32 %v476_v1, %v473_v57  ;;  %v2952_v15 = vrot.slane %v7007_v23, 5  ;;  %v268_v40 = vld [vmem:[%s6994_s8 + $0x74] sm:$0x1]  ;;  %v5460_v23 = vld [vmem:[%s6994_s8 + $0x18] sm:$0xe] }
  0x5d   : > { %v487_v16 = vor.u32 %v486_v3, %v482_v2  ;;  %v492_v18 = vrot.slane %v490_v7, 5  ;;  %v495_v26 = vshrl.u32 %v7268_v5, 16  ;;  %v498_v29 = vshll.u32 %v7268_v5, 16 }
  0x5e   : > { %v2371_v30 = vsel %vm7026_vm2, %v2366_v12, %v2370_v56  ;;  %v478_v34 = vrot.slane %v477_v13, 4  ;;  %v2953_v38 = vsel %vm7272_vm5, %v5475_v10, %v2952_v15  ;;  %v2954_v39 = vrot.slane %v2952_v15, 4  ;;  %v5461_v13 = vld [vmem:[%s6994_s8 + $0x24] sm:$0xe] }
  0x5f   : > { %v5442_v42 = vcombine.low %v2361_v11, %v2371_v30  ;;  %v488_v43 = vrot.slane %v487_v16, 4  ;;  %v497_v31 = vrot.slane %v495_v26, 4  ;;  %v500_v44 = vrot.slane %v498_v29, 5  ;;  %v7324_v16 = vld [vmem:[%s6994_s8 + $0x84] sm:$0xf]  ;;  %v6742_v29 = vld [vmem:[%s8770_s1 + $0x188] sm:$0xff]  }
  0x60   : > { %v483_v49 = vsel %vm7026_vm2, %v478_v34, %v482_v2  ;;  %v2956_v50 = vsel %vm7272_vm5, %v2954_v39, %v2955_v41  ;;  %v504_v52 = vshll.u32 %v7280_v21, 16  ;;  %v508_v53 = vshrl.u32 %v7280_v21, 16 }
  0x61   : > { %6203 = vmatmul.mubr.bf16.gmra.mrb[12].mxu0 %v5442_v42  ;;  %v493_v55 = vsel %vm7026_vm2, %v488_v43, %v492_v18  ;;  %v5507_v48 = vcombine.low %v2953_v38, %v2956_v50  ;;  %v501_v56 = vor.u32 %v500_v44, %v497_v31  ;;  %v514_v57 = vshll.u32 %v268_v40, 16  ;;  %v7332_v40 = vld [vmem:[%s6994_s8 + $0x88] sm:$0xf]  ;;  %v270_v31 = vld [vmem:[%s6994_s8 + $0x8c] sm:$0x1] }
  0x62   : > { %v5203_v59 = vcombine.low %v483_v49, %v493_v55  ;;  %v506_v24 = vrot.slane %v504_v52, 5  ;;  %v510_v61 = vrot.slane %v508_v53, 4  ;;  %v5476_v63 = vrot.slane %v5460_v23, 9 }
  0x63   : > { %6238 = vmatprep.mubr.bf16.mxu0 %v5507_v48  ;;  %v502_v41 = vrot.slane %v501_v56, 4  ;;  %v516_v1 = vrot.slane %v514_v57, 5  ;;  %v2963_v2 = vsel %vm7272_vm5, %v7075_v36, %v2962_v32  ;;  %v519_v3 = vshrl.u32 %v7291_v47, 16 }
  0x64   : > { %6014 = vmatprep.mubr.bf16.mxu1 %v5203_v59  ;;  %v511_v7 = vor.u32 %v510_v61, %v506_v24  ;;  %v2960_v10 = vsel %vm7272_vm5, %v5476_v63, %v2959_v27  ;;  %v522_v11 = vshll.u32 %v7291_v47, 16  ;;  %v528_v12 = vshll.u32 %v7302_v54, 16 }
  0x65   : > { %v507_v8 = vsel %vm7026_vm2, %v502_v41, %v506_v24  ;;  %v5508_v15 = vcombine.low %v2960_v10, %v2963_v2  ;;  %v521_v32 = vrot.slane %v519_v3, 4  ;;  %v532_v36 = vshrl.u32 %v7302_v54, 16  ;;  %v7353_v2 = vld [vmem:[%s6994_s8 + $0x90] sm:$0xf]  ;;  %v7356_v3 = vld [vmem:[%s6994_s8 + $0x94] sm:$0xf] }
  0x66   : > { %v512_v62 = vrot.slane %v511_v7, 4  ;;  %v524_v18 = vrot.slane %v522_v11, 5  ;;  %v530_v26 = vrot.slane %v528_v12, 5  ;;  %v538_v27 = vshll.u32 %v269_v58, 16 }
  0x67   : > { %v534_v30 = vrot.slane %v532_v36, 4  ;;  %v5477_v34 = vrot.slane %v5461_v13, 9  ;;  %v2966_v38 = vrot.slane %v7079_v45, 5  ;;  %v2969_v39 = vrot.slane %v7085_v51, 5  ;;  %v5462_v45 = vld [vmem:[%s6994_s8 + $0x30] sm:$0xe] }
  0x68   : > { %v517_v23 = vsel %vm7026_vm2, %v512_v62, %v516_v1  ;;  %v525_v42 = vor.u32 %v524_v18, %v521_v32  ;;  %v540_v43 = vrot.slane %v538_v27, 5  ;;  %v543_v44 = vshrl.u32 %v7324_v16, 16  ;;  %v271_v62 = vld [vmem:[%s6994_s8 + $0x98] sm:$0x1] }
  0x69   : > { %v5204_v49 = vcombine.low %v507_v8, %v517_v23  ;;  %6239 = vmatmul.mubr.bf16.vlgmr.msra.gmra.mrb[0].mxu0 %v5508_v15  ;;  %v535_v50 = vor.u32 %v534_v30, %v530_v26  ;;  %v2967_v52 = vsel %vm7272_vm5, %v5477_v34, %v2966_v38  ;;  %v2968_v53 = vrot.slane %v2966_v38, 4  ;;  %v6746_v30 = vld [vmem:[%s8770_s1 + $0x198] sm:$0xff]  }
  0x6a   : > { %6271 = vmatpush3.bf16.msra.mxu0 %v7215_v6  ;;  %v526_v51 = vrot.slane %v525_v42, 4  ;;  %v545_v55 = vrot.slane %v543_v44, 4  ;;  %v546_v48 = vshll.u32 %v7324_v16, 16  ;;  %v552_v56 = vshll.u32 %v7332_v40, 16  ;;  %v6744_v6 = vld [vmem:[%s8770_s1 + $0x190] sm:$0xff]  }
  0x6b   : > { %6015 = vmatmul.mubr.bf16.gmra.mrb[16].mxu1 %v5204_v49  ;;  %v536_v57 = vrot.slane %v535_v50, 4  ;;  %v2970_v58 = vsel %vm7272_vm5, %v2968_v53, %v2969_v39  ;;  %v556_v59 = vshrl.u32 %v7332_v40, 16  ;;  %v562_v24 = vshll.u32 %v270_v31, 16  ;;  %6272 = vmatprep.subr.bf16.mxu0 %v6742_v29  ;;  %v5463_v38 = vld [vmem:[%s6994_s8 + $0x3c] sm:$0xe] }
  0x6c   : > { %v531_v61 = vsel %vm7026_vm2, %v526_v51, %v530_v26  ;;  %v5509_v63 = vcombine.low %v2967_v52, %v2970_v58  ;;  %v548_v41 = vrot.slane %v546_v48, 5  ;;  %v554_v1 = vrot.slane %v552_v56, 5  ;;  %v7374_v31 = vld [vmem:[%s6994_s8 + $0x9c] sm:$0xf]  ;;  %v7383_v48 = vld [vmem:[%s6994_s8 + $0xa0] sm:$0xf] }
  0x6d   : > { %v541_v7 = vsel %vm7026_vm2, %v536_v57, %v540_v43  ;;  %v558_v10 = vrot.slane %v556_v59, 4  ;;  %v564_v11 = vrot.slane %v562_v24, 5  ;;  %v5478_v12 = vrot.slane %v5462_v45, 9  ;;  %v6750_v56 = vld [vmem:[%s8770_s1 + $0x1a0] sm:$0xff]  }
  0x6e   : > { %v5205_v13 = vcombine.low %v531_v61, %v541_v7  ;;  %6242 = vmatprep.mubr.bf16.mxu0 %v5509_v63  ;;  %v549_v8 = vor.u32 %v548_v41, %v545_v55  ;;  %v2973_v15 = vrot.slane %v7110_v33, 5  ;;  %v2976_v32 = vrot.slane %v7121_v46, 5  ;;  %6273 = vmatpush3.bf16.msra.mxu0 %v6742_v29  ;;  %v272_v61 = vld [vmem:[%s6994_s8 + $0xa4] sm:$0x1] }
  0x6f   : > { %v559_v36 = vor.u32 %v558_v10, %v554_v1  ;;  %v567_v18 = vshrl.u32 %v7353_v2, 16  ;;  %v570_v26 = vshll.u32 %v7353_v2, 16  ;;  %v576_v27 = vshll.u32 %v7356_v3, 16  ;;  %6274 = vmatprep.subr.bf16.mxu0 %v6744_v6 }
  0x70   : > { %6018 = vmatprep.mubr.bf16.mxu1 %v5205_v13  ;;  %v550_v34 = vrot.slane %v549_v8, 4  ;;  %v2974_v33 = vsel %vm7272_vm5, %v5478_v12, %v2973_v15  ;;  %v2975_v46 = vrot.slane %v2973_v15, 4  ;;  %v580_v29 = vshrl.u32 %v7356_v3, 16  ;;  %v5464_v15 = vld [vmem:[%s6994_s8 + $0x48] sm:$0xe] }
  0x71   : > { %v560_v39 = vrot.slane %v559_v36, 4  ;;  %v569_v23 = vrot.slane %v567_v18, 4  ;;  %v572_v42 = vrot.slane %v570_v26, 5  ;;  %v578_v43 = vrot.slane %v576_v27, 5  ;;  %v7408_v27 = vld [vmem:[%s6994_s8 + $0xa8] sm:$0xf] }
  0x72   : > { %v555_v44 = vsel %vm7026_vm2, %v550_v34, %v554_v1  ;;  %v2977_v49 = vsel %vm7272_vm5, %v2975_v46, %v2976_v32  ;;  %v582_v50 = vrot.slane %v580_v29, 4  ;;  %v586_v52 = vshll.u32 %v271_v62, 16  ;;  %6275 = vmatpush3.bf16.msra.mxu0 %v6744_v6  ;;  %v6754_v32 = vld [vmem:[%s8770_s1 + $0x1a8] sm:$0xff]  }
  0x73   : > { %v565_v53 = vsel %vm7026_vm2, %v560_v39, %v564_v11  ;;  %v5510_v45 = vcombine.low %v2974_v33, %v2977_v49  ;;  %v573_v51 = vor.u32 %v572_v42, %v569_v23  ;;  %v5479_v55 = vrot.slane %v5463_v38, 9  ;;  %6276 = vmatprep.subr.bf16.mxu0 %v6746_v30  ;;  %v7411_v29 = vld [vmem:[%s6994_s8 + $0xac] sm:$0xf] }
  0x74   : > { %v5206_v57 = vcombine.low %v555_v44, %v565_v53  ;;  %v583_v58 = vor.u32 %v582_v50, %v578_v43  ;;  %v588_v59 = vrot.slane %v586_v52, 5  ;;  %v2980_v24 = vrot.slane %v7144_v19, 5  ;;  %v5465_v53 = vld [vmem:[%s6994_s8 + $0x54] sm:$0xe] }
  0x75   : > { %6243 = vmatmul.mubr.bf16.gmra.mrb[4].mxu0 %v5510_v45  ;;  %v574_v6 = vrot.slane %v573_v51, 4  ;;  %v2983_v63 = vrot.slane %v7152_v28, 5  ;;  %v591_v41 = vshrl.u32 %v7374_v31, 16  ;;  %v594_v1 = vshll.u32 %v7374_v31, 16  ;;  %v6758_v45 = vld [vmem:[%s8770_s1 + $0x1b0] sm:$0xff]  }
  0x76   : > { %6019 = vmatmul.mubr.bf16.gmra.mrb[20].mxu1 %v5206_v57  ;;  %v584_v7 = vrot.slane %v583_v58, 4  ;;  %v2981_v10 = vsel %vm7272_vm5, %v5479_v55, %v2980_v24  ;;  %v2982_v11 = vrot.slane %v2980_v24, 4  ;;  %v600_v12 = vshll.u32 %v7383_v48, 16  ;;  %6277 = vmatpush3.bf16.msra.mxu0 %v6746_v30 }
  0x77   : > { %v579_v19 = vsel %vm7026_vm2, %v574_v6, %v578_v43  ;;  %v593_v13 = vrot.slane %v591_v41, 4  ;;  %v596_v28 = vrot.slane %v594_v1, 5  ;;  %v604_v8 = vshrl.u32 %v7383_v48, 16  ;;  %6278 = vmatprep.subr.bf16.mxu0 %v6750_v56  ;;  %v273_v43 = vld [vmem:[%s6994_s8 + $0xb0] sm:$0x1] }
  0x78   : > { %v589_v36 = vsel %vm7026_vm2, %v584_v7, %v588_v59  ;;  %v2984_v62 = vsel %vm7272_vm5, %v2982_v11, %v2983_v63  ;;  %v602_v18 = vrot.slane %v600_v12, 5  ;;  %v610_v26 = vshll.u32 %v272_v61, 16  ;;  %v7431_v41 = vld [vmem:[%s6994_s8 + $0xb4] sm:$0xf]  ;;  %v7436_v12 = vld [vmem:[%s6994_s8 + $0xb8] sm:$0xf] }
  0x79   : > { %v5207_v30 = vcombine.low %v579_v19, %v589_v36  ;;  %v5511_v34 = vcombine.low %v2981_v10, %v2984_v62  ;;  %v597_v33 = vor.u32 %v596_v28, %v593_v13  ;;  %v606_v46 = vrot.slane %v604_v8, 4  ;;  %v274_v19 = vld [vmem:[%s6994_s8 + $0xbc] sm:$0x1] }
  0x7a   : > { %v612_v38 = vrot.slane %v610_v26, 5  ;;  %v5480_v39 = vrot.slane %v5464_v15, 9  ;;  %v2987_v23 = vrot.slane %v7179_v14, 5  ;;  %v2990_v42 = vrot.slane %v7185_v22, 5  ;;  %6279 = vmatpush3.bf16.msra.mxu0 %v6750_v56  ;;  %v6762_v13 = vld [vmem:[%s8770_s1 + $0x1b8] sm:$0xff]  }
  0x7b   : > { %6022 = vmatprep.mubr.bf16.mxu1 %v5207_v30  ;;  %6246 = vmatprep.mubr.bf16.mxu0 %v5511_v34  ;;  %v598_v44 = vrot.slane %v597_v33, 4  ;;  %v607_v49 = vor.u32 %v606_v46, %v602_v18  ;;  %v615_v50 = vshrl.u32 %v7408_v27, 16  ;;  %v618_v52 = vshll.u32 %v7408_v27, 16  ;;  %v5466_v30 = vld [vmem:[%s6994_s8 + $0x60] sm:$0xe] }
  0x7c   : > { %v2988_v14 = vsel %vm7272_vm5, %v5480_v39, %v2987_v23  ;;  %v2989_v22 = vrot.slane %v2987_v23, 4  ;;  %v624_v51 = vshll.u32 %v7411_v29, 16  ;;  %v628_v55 = vshrl.u32 %v7411_v29, 16  ;;  %6280 = vmatprep.subr.bf16.mxu0 %v6754_v32  ;;  %v5396_v39 = vld [vmem:[%s6994_s8 + $0x70] sm:$0xf] }
  0x7d   : > { %v603_v56 = vsel %vm7026_vm2, %v598_v44, %v602_v18  ;;  %v608_v57 = vrot.slane %v607_v49, 4  ;;  %v617_v58 = vrot.slane %v615_v50, 4  ;;  %v620_v59 = vrot.slane %v618_v52, 5  ;;  %v7458_v44 = vld [vmem:[%s8770_s1 + $0x1c0] sm:$0xff]  }
  0x7e   : > { %v2991_v24 = vsel %vm7272_vm5, %v2989_v22, %v2990_v42  ;;  %v626_v61 = vrot.slane %v624_v51, 5  ;;  %v630_v6 = vrot.slane %v628_v55, 4  ;;  %v634_v63 = vshll.u32 %v273_v43, 16  ;;  %6281 = vmatpush3.bf16.msra.mxu0 %v6754_v32  ;;  %v5467_v43 = vld [vmem:[%s6994_s8 + $0x6c] sm:$0xe] }
  0x7f   : > { %v613_v1 = vsel %vm7026_vm2, %v608_v57, %v612_v38  ;;  %v5512_v7 = vcombine.low %v2988_v14, %v2991_v24  ;;  %v621_v10 = vor.u32 %v620_v59, %v617_v58  ;;  %v5481_v11 = vrot.slane %v5465_v53, 9  ;;  %6282 = vmatprep.subr.bf16.mxu0 %v6758_v45  ;;  %v5397_v55 = vld [vmem:[%s6994_s8 + $0x74] sm:$0x1]  ;;  %v5468_v24 = vld [vmem:[%s6994_s8 + $0x78] sm:$0xe] }
  0x80   : > { %v5208_v28 = vcombine.low %v603_v56, %v613_v1  ;;  %v631_v8 = vor.u32 %v630_v6, %v626_v61  ;;  %v636_v15 = vrot.slane %v634_v63, 5  ;;  %v2994_v32 = vrot.slane %v7210_v0, 5 }
  0x81   : > { %6247 = vmatmul.mubr.bf16.gmra.mrb[8].mxu0 %v5512_v7  ;;  %v622_v36 = vrot.slane %v621_v10, 4  ;;  %v2997_v62 = vrot.slane %v7222_v20, 5  ;;  %v639_v18 = vshrl.u32 %v7431_v41, 16  ;;  %v642_v26 = vshll.u32 %v7431_v41, 16 }
  0x82   : > { %6023 = vmatmul.mubr.bf16.gmra.mrb[24].mxu1 %v5208_v28  ;;  %v632_v34 = vrot.slane %v631_v8, 4  ;;  %v2995_v33 = vsel %vm7272_vm5, %v5481_v11, %v2994_v32  ;;  %v2996_v46 = vrot.slane %v2994_v32, 4  ;;  %v648_v38 = vshll.u32 %v7436_v12, 16  ;;  %6283 = vmatpush3.bf16.msra.mxu0 %v6758_v45  ;;  %v7471_v11 = vld [vmem:[%s6994_s8 + $0x7c] sm:$0xf] }
  0x83   : > { %v627_v0 = vsel %vm7026_vm2, %v622_v36, %v626_v61  ;;  %v641_v20 = vrot.slane %v639_v18, 4  ;;  %v644_v23 = vrot.slane %v642_v26, 5  ;;  %v652_v42 = vshrl.u32 %v7436_v12, 16  ;;  %6284 = vmatprep.subr.bf16.mxu0 %v6762_v13  ;;  %v6831_v36 = vld [vmem:[%s6994_s8] sm:$0xf] }
  0x84   : > { %v637_v49 = vsel %vm7026_vm2, %v632_v34, %v636_v15  ;;  %v2998_v50 = vsel %vm7272_vm5, %v2996_v46, %v2997_v62  ;;  %v650_v52 = vrot.slane %v648_v38, 5  ;;  %v658_v53 = vshll.u32 %v274_v19, 16  ;;  %v5402_v15 = vld [vmem:[%s6994_s8 + $0x88] sm:$0xf]  ;;  %v7486_v62 = vld [vmem:[%s6994_s8 + $0x4] sm:$0xf] }
  0x85   : > { %v5209_v45 = vcombine.low %v627_v0, %v637_v49  ;;  %v5513_v14 = vcombine.low %v2995_v33, %v2998_v50  ;;  %v645_v22 = vor.u32 %v644_v23, %v641_v20  ;;  %v654_v51 = vrot.slane %v652_v42, 4  ;;  %v5403_v26 = vld [vmem:[%s6994_s8 + $0x8c] sm:$0x1]  ;;  %v5406_v23 = vld [vmem:[%s6994_s8 + $0x98] sm:$0x1] }
  0x86   : > { %v660_v56 = vrot.slane %v658_v53, 5  ;;  %v5482_v57 = vrot.slane %v5466_v30, 9  ;;  %v3001_v58 = vrot.slane %v7237_v60, 5  ;;  %v3004_v59 = vrot.slane %v7246_v17, 5  ;;  %6285 = vmatpush3.bf16.msra.mxu0 %v6762_v13  ;;  %v7474_v17 = vld [vmem:[%s6994_s8 + $0x80] sm:$0x1] }
  0x87   : > { %6026 = vmatprep.mubr.bf16.mxu1 %v5209_v45  ;;  %6250 = vmatprep.mubr.bf16.mxu0 %v5513_v14  ;;  %v646_v61 = vrot.slane %v645_v22, 4  ;;  %v655_v6 = vor.u32 %v654_v51, %v650_v52  ;;  %v5483_v63 = vrot.slane %v5467_v43, 9  ;;  %v3008_v1 = vrot.slane %v5396_v39, 5  ;;  %v5469_v30 = vld [vmem:[%s6994_s8 + $0x84] sm:$0xe] }
  0x88   : > { %v3002_v7 = vsel %vm7272_vm5, %v5482_v57, %v3001_v58  ;;  %v3003_v10 = vrot.slane %v3001_v58, 4  ;;  %v3011_v60 = vrot.slane %v5397_v55, 5  ;;  %6318 = vmatprep.subr.bf16.mxu0 %v7458_v44  ;;  %v5219_v18 = vcombine.low %v6831_v36, %v7486_v62  ;;  %v5405_v39 = vld [vmem:[%s6994_s8 + $0x94] sm:$0xf]  ;;  %v5470_v42 = vld [vmem:[%s6994_s8 + $0x90] sm:$0xe] }
  0x89   : > { %v651_v19 = vsel %vm7026_vm2, %v646_v61, %v650_v52  ;;  %v656_v13 = vrot.slane %v655_v6, 4  ;;  %v3009_v28 = vsel %vm7272_vm5, %v5483_v63, %v3008_v1  ;;  %v3010_v8 = vrot.slane %v3008_v1, 4  ;;  %v5471_v50 = vld [vmem:[%s6994_s8 + $0x9c] sm:$0xe]  ;;  %v5408_v14 = vld [vmem:[%s6994_s8 + $0xa0] sm:$0xf] }
  0x8a   : > { %v3005_v32 = vsel %vm7272_vm5, %v3003_v10, %v3004_v59  ;;  %v5484_v38 = vrot.slane %v5468_v24, 9  ;;  %v3015_v43 = vrot.slane %v7471_v11, 5  ;;  %v3018_v49 = vrot.slane %v7474_v17, 5  ;;  %v5409_v22 = vld [vmem:[%s6994_s8 + $0xa4] sm:$0x1] }
  0x8b   : > { %v661_v34 = vsel %vm7026_vm2, %v656_v13, %v660_v56  ;;  %v5514_v33 = vcombine.low %v3002_v7, %v3005_v32  ;;  %v3012_v46 = vsel %vm7272_vm5, %v3010_v8, %v3011_v60  ;;  %v5485_v52 = vrot.slane %v5469_v30, 9  ;;  %v5411_v59 = vld [vmem:[%s6994_s8 + $0xac] sm:$0xf]  ;;  %v7510_v61 = vld [vmem:[%s6994_s8 + $0x10] sm:$0xf] }
  0x8c   : > { %v5210_v0 = vcombine.low %v651_v19, %v661_v34  ;;  %v5515_v20 = vcombine.low %v3009_v28, %v3012_v46  ;;  %v3022_v53 = vrot.slane %v5402_v15, 5  ;;  %v3025_v45 = vrot.slane %v5403_v26, 5  ;;  %v6833_v24 = vld [vmem:[%s6994_s8 + $0xc] sm:$0xf]  ;;  %v6835_v8 = vld [vmem:[%s6994_s8 + $0x18] sm:$0xf] }
  0x8d   : > { %6251 = vmatmul.mubr.bf16.gmra.mrb[12].mxu0 %v5514_v33  ;;  %v3016_v51 = vsel %vm7272_vm5, %v5484_v38, %v3015_v43  ;;  %v3017_v55 = vrot.slane %v3015_v43, 4  ;;  %v3029_v58 = vrot.slane %v5405_v39, 5  ;;  %v5220_v6 = vcombine.low %v6833_v24, %v7510_v61  ;;  %v6753_v19 = vld [vmem:[%s8770_s1 + $0x88] sm:$0xff]   ;;  %v7522_v15 = vld [vmem:[%s6994_s8 + $0x1c] sm:$0xf] }
  0x8e   : > { %6027 = vmatmul.mubr.bf16.gmra.mrb[28].mxu1 %v5210_v0  ;;  %6254 = vmatprep.mubr.bf16.mxu0 %v5515_v20  ;;  %v3023_v56 = vsel %vm7272_vm5, %v5485_v52, %v3022_v53  ;;  %v3024_v57 = vrot.slane %v3022_v53, 4  ;;  %v5486_v1 = vrot.slane %v5470_v42, 9  ;;  %v3032_v7 = vrot.slane %v5406_v23, 5  ;;  %v5412_v30 = vld [vmem:[%s6994_s8 + $0xb0] sm:$0x1] }
  0x8f   : > { %6046 = vmatprep.mubr.bf16.mxu1 %v5219_v18  ;;  %v3019_v63 = vsel %vm7272_vm5, %v3017_v55, %v3018_v49  ;;  %v3031_v13 = vrot.slane %v3029_v58, 4  ;;  %v5487_v28 = vrot.slane %v5471_v50, 9  ;;  %v5221_v32 = vcombine.low %v6835_v8, %v7522_v15  ;;  %v5472_v34 = vld [vmem:[%s6994_s8 + $0xa8] sm:$0xe]  ;;  %v5414_v33 = vld [vmem:[%s6994_s8 + $0xb8] sm:$0xf] }
  0x90   : > { %v5516_v10 = vcombine.low %v3016_v51, %v3019_v63  ;;  %v3026_v60 = vsel %vm7272_vm5, %v3024_v57, %v3025_v45  ;;  %v3036_v18 = vrot.slane %v5408_v14, 5  ;;  %v3039_v26 = vrot.slane %v5409_v22, 5  ;;  %v5415_v20 = vld [vmem:[%s6994_s8 + $0xbc] sm:$0x1]  ;;  %v5473_v23 = vld [vmem:[%s6994_s8 + $0xb4] sm:$0xe] }
  0x91   : > { %v5517_v36 = vcombine.low %v3023_v56, %v3026_v60  ;;  %v3043_v38 = vrot.slane %v5411_v59, 5  ;;  %v3030_v39 = vsel %vm7272_vm5, %v5486_v1, %v3029_v58  ;;  %v3033_v0 = vsel %vm7272_vm5, %v3031_v13, %v3032_v7  ;;  %v6757_v50 = vld [vmem:[%s8770_s1 + $0x90] sm:$0xff]   ;;  %v5417_v53 = vld [vmem:[%s6994_s8 + $0xc4] sm:$0xf]  ;;  %v7545_v51 = vld [vmem:[%s6994_s8 + $0x28] sm:$0xf] }
  0x92   : > { %v3038_v46 = vrot.slane %v3036_v18, 4  ;;  %v3037_v42 = vsel %vm7272_vm5, %v5487_v28, %v3036_v18  ;;  %v3050_v49 = vrot.slane %v5414_v33, 5  ;;  %v5488_v52 = vrot.slane %v5472_v34, 9  ;;  %v6837_v22 = vld [vmem:[%s6994_s8 + $0x24] sm:$0xf]  ;;  %v6761_v1 = vld [vmem:[%s8770_s1 + $0x98] sm:$0xff]  }
  0x93   : > { %v5518_v45 = vcombine.low %v3030_v39, %v3033_v0  ;;  %v3045_v14 = vrot.slane %v3043_v38, 4  ;;  %v5222_v55 = vcombine.low %v6837_v22, %v7545_v51  ;;  %v6839_v57 = vld [vmem:[%s6994_s8 + $0x30] sm:$0xf]  ;;  %v7550_v58 = vld [vmem:[%s6994_s8 + $0x34] sm:$0xf]  ;;  %v5489_v24 = vrot.slane %v5473_v23, 9 }
  0x94   : > { %v3040_v43 = vsel %vm7272_vm5, %v3038_v46, %v3039_v26  ;;  %v5223_v59 = vcombine.low %v6839_v57, %v7550_v58  ;;  %v3053_v63 = vrot.slane %v5415_v20, 5  ;;  %v5474_v7 = vld [vmem:[%s6994_s8 + $0xc0] sm:$0xe]  ;;  %v3044_v60 = vsel %vm7272_vm5, %v5488_v52, %v3043_v38  ;;  %v5418_v8 = vld [vmem:[%s6994_s8 + $0xc8] sm:$0x1]  ;;  %v6764_v22 = vld [vmem:[%s6994_s8 + $0x18] sm:$0xff]  }
  0x95   : > { %6255 = vmatmul.mubr.bf16.gmra.mrb[16].mxu0 %v5516_v10  ;;  %v5519_v56 = vcombine.low %v3037_v42, %v3040_v43  ;;  %v3057_v10 = vrot.slane %v5417_v53, 5  ;;  %v3051_v13 = vsel %vm7272_vm5, %v5489_v24, %v3050_v49  ;;  %v5490_v18 = vrot.slane %v5474_v7, 9  ;;  %v6841_v26 = vld [vmem:[%s6994_s8 + $0x3c] sm:$0xf]  ;;  %v6843_v39 = vld [vmem:[%s6994_s8 + $0x48] sm:$0xf] }
  0x96   : > { %6047 = vmatmul.mubr.bf16.vlgmr.msra.gmra.mrb[0].mxu1 %v5220_v6  ;;  %6258 = vmatprep.mubr.bf16.mxu0 %v5517_v36  ;;  %v3052_v6 = vrot.slane %v3050_v49, 4  ;;  %v3060_v38 = vrot.slane %v5418_v8, 5  ;;  %v7576_v0 = vld [vmem:[%s6994_s8 + $0x4c] sm:$0xf]  ;;  %v6778_v49 = vld [vmem:[%s8770_s1 + $0xb0] sm:$0xff]   ;;  %v2410_v52 = vshrl.u32 %v7471_v11, 16 }
  0x97   : > { %6079 = vmatpush3.bf16.msra.mxu1 %v7196_v4  ;;  %6050 = vmatprep.mubr.bf16.mxu1 %v5221_v32  ;;  %v3046_v4 = vrot.slane %v5412_v30, 5  ;;  %v6766_v32 = vld [vmem:[%s8770_s1 + $0xa0] sm:$0xff]   ;;  %v3059_v46 = vrot.slane %v3057_v10, 4  ;;  %v5225_v20 = vcombine.low %v6843_v39, %v7576_v0  ;;  %v6772_v23 = vld [vmem:[%s8770_s1 + $0xa8] sm:$0xff]   ;;  %v3058_v42 = vsel %vm7272_vm5, %v5490_v18, %v3057_v10  ;;  %v6770_v18 = vld [vmem:[%s6994_s8 + $0x30] sm:$0xff]  }
  0x98   : > { %6080 = vmatprep.subr.bf16.mxu1 %v6753_v19  ;;  %v3054_v28 = vsel %vm7272_vm5, %v3052_v6, %v3053_v63  ;;  %v7571_v30 = vld [vmem:[%s6994_s8 + $0x40] sm:$0xf]  ;;  %v7604_v57 = vrot.slane %v2410_v52, 4  ;;  %v6767_v6 = vld [vmem:[%s6994_s8 + $0x24] sm:$0xff]   ;;  %v1317_v7 = vrot.slane %v7510_v61, 5  ;;  %v2416_v8 = vshll.u32 %v7474_v17, 16 }
  0x99   : > { %v5224_v34 = vcombine.low %v6841_v26, %v7571_v30  ;;  %v5521_v33 = vcombine.low %v3051_v13, %v3054_v28  ;;  %v3061_v43 = vsel %vm7272_vm5, %v3059_v46, %v3060_v38  ;;  %v1257_v63 = vld [vmem:[%s6994_s8] sm:$0xe]  ;;  %v1258_v10 = vld [vmem:[%s6994_s8 + $0xc] sm:$0xe]  ;;  %v1324_v13 = vrot.slane %v7522_v15, 5 }
  0x9a   : > { %v5522_v53 = vcombine.low %v3058_v42, %v3061_v43  ;;  %v1260_v61 = vld [vmem:[%s6994_s8 + $0x24] sm:$0xe]  ;;  %v5230_v15 = vcombine.low %v7324_v16, %v7332_v40  ;;  %v5231_v26 = vcombine.low %v7353_v2, %v7356_v3  ;;  %v5243_v17 = vrot.slane %v1257_v63, 9  ;;  %v6849_v38 = vld [vmem:[%s6994_s8 + $0x20] sm:$0x1]  ;;  %v6779_v2 = vld [vmem:[%s6994_s8 + $0x54] sm:$0xff]  }
  0x9b   : > { %6081 = vmatpush3.bf16.msra.mxu1 %v6753_v19  ;;  %v3047_v19 = vsel %vm7272_vm5, %v3045_v14, %v3046_v4  ;;  %v7593_v14 = vld [vmem:[%s6994_s8 + $0x58] sm:$0xf]  ;;  %v1326_v46 = vrot.slane %v1324_v13, 4  ;;  %v1327_v39 = vrot.slane %v6849_v38, 5  ;;  %v6850_v43 = vld [vmem:[%s6994_s8 + $0x2c] sm:$0x1] }
  0x9c   : > { %6082 = vmatprep.subr.bf16.mxu1 %v6757_v50  ;;  %v5520_v36 = vcombine.low %v3044_v60, %v3047_v19  ;;  %v7619_v60 = vld [vmem:[%s8770_s1 + $0xc0] sm:$0xff]   ;;  %v1259_v19 = vld [vmem:[%s6994_s8 + $0x18] sm:$0xe]  ;;  %v6853_v38 = vld [vmem:[%s6994_s8 + $0x50] sm:$0x1]  ;;  %v1359_v16 = vrot.slane %v7593_v14, 5 }
  0x9d   : > { %6259 = vmatmul.mubr.bf16.gmra.mrb[20].mxu0 %v5518_v45  ;;  %v6845_v45 = vld [vmem:[%s6994_s8 + $0x54] sm:$0xf]  ;;  %v7742_v40 = vld [vmem:[%s6994_s8 + $0x64] sm:$0xf] }
  0x9e   : > { %6051 = vmatmul.mubr.bf16.gmra.mrb[4].mxu1 %v5222_v55  ;;  %6262 = vmatprep.mubr.bf16.mxu0 %v5519_v56  ;;  %v5226_v4 = vcombine.low %v6845_v45, %v7593_v14  ;;  %v5227_v55 = vcombine.low %v7250_v25, %v7253_v35  ;;  %v6784_v56 = vld [vmem:[%s8770_s1 + $0xb8] sm:$0xff]   ;;  %v6848_v25 = vld [vmem:[%s6994_s8 + $0x14] sm:$0x1]  ;;  %v6782_v3 = vld [vmem:[%s6994_s8 + $0x60] sm:$0xff]  }
  0x9f   : > { %6054 = vmatprep.mubr.bf16.mxu1 %v5223_v59  ;;  %6083 = vmatpush3.bf16.msra.mxu1 %v6757_v50  ;;  %v2406_v50 = vshll.u32 %v7471_v11, 16  ;;  %v7607_v59 = vld [vmem:[%s6994_s8 + $0x8] sm:$0x1]  ;;  %v1320_v35 = vrot.slane %v6848_v25, 5 }
  0xa0   : > { %6084 = vmatprep.subr.bf16.mxu1 %v6761_v1  ;;  %v1313_v24 = vrot.slane %v7607_v59, 5 }
  0xa1   : > { %v7602_v11 = vrot.slane %v2406_v50, 5 }
  0xa3   : > { %6085 = vmatpush3.bf16.msra.mxu1 %v6761_v1  ;;  %v1310_v1 = vrot.slane %v7486_v62, 5  ;;  %v5228_v62 = vcombine.low %v7268_v5, %v7280_v21  ;;  %v5244_v21 = vrot.slane %v1258_v10, 9  ;;  %v5603_v10 = vld [vmem:[%s6994_s8 + $0x18] sm:$0xf] }
  0xa4   : > { %6086 = vmatprep.subr.bf16.mxu1 %v6766_v32 }
  0xa5   : > { %6263 = vmatmul.mubr.bf16.gmra.mrb[24].mxu0 %v5520_v36  ;;  %v5229_v36 = vcombine.low %v7291_v47, %v7302_v54  ;;  %v1312_v5 = vrot.slane %v1310_v1, 4  ;;  %v6774_v47 = vld [vmem:[%s8770_s1 + $0x1c8] sm:$0xff]   ;;  %v5245_v54 = vrot.slane %v1259_v19, 9  ;;  %v7662_v59 = vsel %vm7272_vm5, %v5243_v17, %v1310_v1  ;;  %v5604_v19 = vld [vmem:[%s6994_s8 + $0x1c] sm:$0xf] }
  0xa6   : > { %6055 = vmatmul.mubr.bf16.gmra.mrb[8].mxu1 %v5224_v34  ;;  %6266 = vmatprep.mubr.bf16.mxu0 %v5521_v33  ;;  %v1338_v34 = vrot.slane %v7550_v58, 5  ;;  %v1319_v33 = vrot.slane %v1317_v7, 4  ;;  %v5246_v58 = vrot.slane %v1260_v61, 9  ;;  %v1352_v1 = vrot.slane %v7576_v0, 5  ;;  %v6776_v0 = vld [vmem:[%s6994_s8 + $0x48] sm:$0xff]  }
  0xa7   : > { %6058 = vmatprep.mubr.bf16.mxu1 %v5225_v20  ;;  %6087 = vmatpush3.bf16.msra.mxu1 %v6766_v32  ;;  %v1331_v32 = vrot.slane %v7545_v51, 5  ;;  %v1261_v51 = vld [vmem:[%s6994_s8 + $0x30] sm:$0xe]  ;;  %v5232_v20 = vcombine.low %v7374_v31, %v7383_v48  ;;  %v7670_v25 = vsel %vm7272_vm5, %v1312_v5, %v1313_v24  ;;  %v7678_v63 = vsel %vm7272_vm5, %v5245_v54, %v1324_v13  ;;  %v1263_v13 = vld [vmem:[%s6994_s8 + $0x48] sm:$0xe] }
  0xa8   : > { %6088 = vmatprep.subr.bf16.mxu1 %v6772_v23  ;;  %v5247_v50 = vrot.slane %v1261_v51, 9  ;;  %v1340_v52 = vrot.slane %v1338_v34, 4  ;;  %v3823_v5 = vshrl.u32 %v5603_v10, 16  ;;  %v3836_v51 = vshrl.u32 %v5604_v19, 16  ;;  %v6785_v48 = vld [vmem:[%s6994_s8 + $0x6c] sm:$0xff]  }
  0xa9   : > { %v1333_v42 = vrot.slane %v1331_v32, 4  ;;  %v7690_v24 = vsel %vm7272_vm5, %v5246_v58, %v1331_v32  ;;  %v6852_v32 = vld [vmem:[%s6994_s8 + $0x44] sm:$0x1]  ;;  %v5249_v54 = vrot.slane %v1263_v13, 9  ;;  %v5607_v13 = vld [vmem:[%s6994_s8 + $0x28] sm:$0xf] }
  0xaa   : > { %v7700_v61 = vsel %vm7272_vm5, %v5247_v50, %v1338_v34  ;;  %v1348_v17 = vrot.slane %v6852_v32, 5  ;;  %v5605_v50 = vld [vmem:[%s6994_s8 + $0x20] sm:$0x1]  ;;  %v1265_v32 = vld [vmem:[%s6994_s8 + $0x60] sm:$0xe] }
  0xab   : > { %6089 = vmatpush3.bf16.msra.mxu1 %v6772_v23  ;;  %v5233_v23 = vcombine.low %v7408_v27, %v7411_v29 }
  0xac   : > { %6090 = vmatprep.subr.bf16.mxu1 %v6778_v49 }
  0xad   : > { %6267 = vmatmul.mubr.bf16.gmra.mrb[28].mxu0 %v5522_v53  ;;  %v6851_v53 = vld [vmem:[%s6994_s8 + $0x38] sm:$0x1] }
  0xae   : > { %6059 = vmatmul.mubr.bf16.gmra.mrb[12].mxu1 %v5226_v4  ;;  %6286 = vmatprep.mubr.bf16.mxu0 %v6764_v22  ;;  %v1341_v45 = vrot.slane %v6851_v53, 5  ;;  %v1262_v4 = vld [vmem:[%s6994_s8 + $0x3c] sm:$0xe]  ;;  %v1345_v22 = vrot.slane %v7571_v30, 5  ;;  %v7666_v30 = vsel %vm7272_vm5, %v5244_v21, %v1317_v7  ;;  %v3826_v21 = vshll.u32 %v5603_v10, 16  ;;  %v6790_v53 = vld [vmem:[%s8770_s1 + $0x1e0] sm:$0xff]  }
  0xaf   : > { %6062 = vmatprep.mubr.bf16.mxu1 %v5227_v55  ;;  %6091 = vmatpush3.bf16.msra.mxu1 %v6778_v49  ;;  %v1334_v49 = vrot.slane %v6850_v43, 5  ;;  %v7653_v55 = vrot.slane %v2416_v8, 5  ;;  %v6773_v7 = vld [vmem:[%s6994_s8 + $0x3c] sm:$0xff]   ;;  %v7686_v8 = vsel %vm7272_vm5, %v1326_v46, %v1327_v39  ;;  %v1354_v46 = vrot.slane %v1352_v1, 4  ;;  %v5609_v43 = vld [vmem:[%s6994_s8 + $0x30] sm:$0xf] }
  0xb0   : > { %6092 = vmatprep.subr.bf16.mxu1 %v6784_v56  ;;  %v1355_v39 = vrot.slane %v6853_v38, 5  ;;  %v3825_v10 = vrot.slane %v3823_v5, 4 }
  0xb1   : > { %8790 = vst [vmem:[#allocation2_spill] sm:$0xff] %v7653_v55 }
  0xb3   : > { %6093 = vmatpush3.bf16.msra.mxu1 %v6784_v56  ;;  %v6780_v56 = vld [vmem:[%s8770_s1 + $0x1d0] sm:$0xff]  }
  0xb4   : > { %6126 = vmatprep.subr.bf16.mxu1 %v7619_v60 }
  0xb5   : > { %6287 = vmatmul.mubr.bf16.vlgmr.msra.gmra.mrb[0].mxu0 %v6767_v6  ;;  %v7674_v6 = vsel %vm7272_vm5, %v1319_v33, %v1320_v35  ;;  %v7694_v35 = vsel %vm7272_vm5, %v1333_v42, %v1334_v49  ;;  %v3832_v33 = vshll.u32 %v5604_v19, 16  ;;  %v3828_v19 = vrot.slane %v3826_v21, 5  ;;  %v1266_v21 = vld [vmem:[%s6994_s8 + $0x6c] sm:$0xe] }
  0xb6   : > { %6063 = vmatmul.mubr.bf16.gmra.mrb[16].mxu1 %v5228_v62  ;;  %6319 = vmatpush3.bf16.msra.mxu0 %v7458_v44  ;;  %v5248_v62 = vrot.slane %v1262_v4, 9  ;;  %v5252_v58 = vrot.slane %v1266_v21, 9 }
  0xb7   : > { %6066 = vmatprep.mubr.bf16.mxu1 %v5229_v36  ;;  %6290 = vmatprep.mubr.bf16.mxu0 %v6770_v18  ;;  %v7704_v36 = vsel %vm7272_vm5, %v1340_v52, %v1341_v45  ;;  %v1347_v18 = vrot.slane %v1345_v22, 4  ;;  %v5606_v52 = vld [vmem:[%s6994_s8 + $0x24] sm:$0xf]  ;;  %v3860_v45 = vshrl.u32 %v5607_v13, 16 }
  0xb8   : > { %6320 = vmatprep.subr.bf16.mxu0 %v6774_v47  ;;  %v7721_v49 = vsel %vm7272_vm5, %v5248_v62, %v1345_v22  ;;  %v7738_v22 = vld [vmem:[%s6994_s8 + $0x54] sm:$0xe]  ;;  %v3838_v62 = vrot.slane %v3836_v51, 4  ;;  %v3847_v38 = vshrl.u32 %v5606_v52, 16  ;;  %v3850_v28 = vshll.u32 %v5606_v52, 16 }
  0xb9   : > { %v7735_v4 = vsel %vm7272_vm5, %v1347_v18, %v1348_v17  ;;  %v3842_v17 = vshll.u32 %v5605_v50, 16  ;;  %v5250_v5 = vrot.slane %v7738_v22, 9  ;;  %v6794_v50 = vld [vmem:[%s8770_s1 + $0x1e8] sm:$0xff]   ;;  %v1361_v52 = vrot.slane %v1359_v16, 4 }
  0xba   : > { %6321 = vmatpush3.bf16.msra.mxu0 %v6774_v47  ;;  %v6786_v47 = vld [vmem:[%s8770_s1 + $0x1d8] sm:$0xff]   ;;  %v3829_v22 = vor.u32 %v3828_v19, %v3825_v10  ;;  %v3849_v34 = vrot.slane %v3847_v38, 4  ;;  %v3852_v44 = vrot.slane %v3850_v28, 5  ;;  %v6858_v10 = vld [vmem:[%s6994_s8 + $0x74] sm:$0x1]  ;;  %v3862_v28 = vrot.slane %v3860_v45, 4 }
  0xbb   : > { %6322 = vmatprep.subr.bf16.mxu0 %v6780_v56  ;;  %v7776_v42 = vrot.slane %v3842_v17, 5  ;;  %v1376_v19 = vrot.slane %v6858_v10, 5  ;;  %v3871_v38 = vshrl.u32 %v5609_v43, 16  ;;  %v7801_v27 = vsel %vm7272_vm5, %v5250_v5, %v1359_v16 }
  0xbc   : > { %v3830_v21 = vrot.slane %v3829_v22, 4 }
  0xbd   : > { %6291 = vmatmul.mubr.bf16.gmra.mrb[4].mxu0 %v6773_v7  ;;  %v7748_v7 = vrot.slane %v3832_v33, 5  ;;  %v6856_v33 = vld [vmem:[%s6994_s8 + $0x70] sm:$0xf] }
  0xbe   : > { %6067 = vmatmul.mubr.bf16.gmra.mrb[20].mxu1 %v5230_v15  ;;  %6294 = vmatprep.mubr.bf16.mxu0 %v6776_v0  ;;  %v1366_v15 = vrot.slane %v7742_v40, 5  ;;  %v6855_v0 = vld [vmem:[%s6994_s8 + $0x5c] sm:$0x1]  ;;  %v1373_v51 = vrot.slane %v6856_v33, 5 }
  0xbf   : > { %6070 = vmatprep.mubr.bf16.mxu1 %v5231_v26  ;;  %6323 = vmatpush3.bf16.msra.mxu0 %v6780_v56  ;;  %v1362_v18 = vrot.slane %v6855_v0, 5  ;;  %v7757_v26 = vsel %vm7272_vm5, %v5249_v54, %v1352_v1  ;;  %v7761_v56 = vsel %vm7272_vm5, %v1354_v46, %v1355_v39  ;;  %v6857_v1 = vld [vmem:[%s6994_s8 + $0x68] sm:$0x1]  ;;  %v3856_v0 = vshll.u32 %v5607_v13, 16  ;;  %v6802_v40 = vld [vmem:[%s8770_s1 + $0x1f8] sm:$0xff]  }
  0xc0   : > { %6324 = vmatprep.subr.bf16.mxu0 %v6786_v47  ;;  %v1369_v54 = vrot.slane %v6857_v1, 5  ;;  %v5251_v46 = vrot.slane %v1265_v32, 9  ;;  %v1368_v39 = vrot.slane %v1366_v15, 4  ;;  %v3839_v33 = vor.u32 %v3838_v62, %v7748_v7  ;;  %v5610_v1 = vld [vmem:[%s6994_s8 + $0x34] sm:$0xf] }
  0xc1   : > { %v1375_v32 = vrot.slane %v1373_v51, 4  ;;  %v5608_v62 = vld [vmem:[%s6994_s8 + $0x2c] sm:$0x1]  ;;  %v7788_v17 = vrot.slane %v3856_v0, 5  ;;  %v3880_v13 = vshll.u32 %v5610_v1, 16  ;;  %v3884_v31 = vshrl.u32 %v5610_v1, 16 }
  0xc2   : > { %v3840_v10 = vrot.slane %v3839_v33, 4  ;;  %v7805_v29 = vsel %vm7272_vm5, %v1361_v52, %v1362_v18  ;;  %v7812_v45 = vsel %vm7272_vm5, %v5251_v46, %v1366_v15  ;;  %v7816_v14 = vsel %vm7272_vm5, %v1368_v39, %v1369_v54  ;;  %v1267_v18 = vld [vmem:[%s6994_s8 + $0x78] sm:$0xe] }
  0xc3   : > { %6325 = vmatpush3.bf16.msra.mxu0 %v6786_v47  ;;  %v7820_v16 = vsel %vm7272_vm5, %v5252_v58, %v1373_v51  ;;  %v7830_v15 = vsel %vm7272_vm5, %v1375_v32, %v1376_v19  ;;  %v3863_v5 = vor.u32 %v3862_v28, %v7788_v17  ;;  %v3873_v52 = vrot.slane %v3871_v38, 4  ;;  %v5612_v58 = vld [vmem:[%s6994_s8 + $0x3c] sm:$0xf]  ;;  %v5613_v51 = vld [vmem:[%s6994_s8 + $0x40] sm:$0xf] }
  0xc4   : > { %6326 = vmatprep.subr.bf16.mxu0 %v6790_v53  ;;  %v3835_v0 = vsel %vm7026_vm2, %v3830_v21, %v7748_v7  ;;  %v3845_v46 = vsel %vm7026_vm2, %v3840_v10, %v7776_v42  ;;  %v7841_v39 = vrot.slane %v3880_v13, 5  ;;  %v3886_v22 = vrot.slane %v3884_v31, 4  ;;  %v6860_v19 = vld [vmem:[%s6994_s8 + $0x80] sm:$0x1]  ;;  %v8000_v47 = vld [vmem:[%s6994_s8 + $0x68] sm:$0x1] }
  0xc5   : > { %6295 = vmatmul.mubr.bf16.gmra.mrb[8].mxu0 %v6779_v2  ;;  %v3874_v2 = vshll.u32 %v5609_v43, 16  ;;  %v3866_v43 = vshll.u32 %v5608_v62, 16  ;;  %v5253_v32 = vrot.slane %v1267_v18, 9  ;;  %v1268_v62 = vld [vmem:[%s6994_s8 + $0x84] sm:$0xe]  ;;  %v3895_v28 = vshrl.u32 %v5612_v58, 16 }
  0xc6   : > { %6071 = vmatmul.mubr.bf16.gmra.mrb[24].mxu1 %v5232_v20  ;;  %6298 = vmatprep.mubr.bf16.mxu0 %v6782_v3  ;;  %v6798_v20 = vld [vmem:[%s8770_s1 + $0x1f0] sm:$0xff]   ;;  %v6859_v3 = vld [vmem:[%s6994_s8 + $0x7c] sm:$0xf]  ;;  %v3898_v7 = vshll.u32 %v5612_v58, 16  ;;  %v3904_v38 = vshll.u32 %v5613_v51, 16  ;;  %v8791_v42 = vcombine.low %v7431_v41, %v7436_v12  ;;  %v7852_v13 = vrot.slane %v3863_v5, 4 }
  0xc7   : > { %6074 = vmatprep.mubr.bf16.mxu1 %v5233_v23  ;;  %6327 = vmatpush3.bf16.msra.mxu0 %v6790_v53  ;;  %v3853_v23 = vor.u32 %v3852_v44, %v3849_v34  ;;  %v6787_v53 = vld [vmem:[%s6994_s8 + $0x78] sm:$0xff]   ;;  %v1380_v44 = vrot.slane %v6859_v3, 5  ;;  %v3876_v54 = vrot.slane %v3874_v2, 5  ;;  %v7845_v1 = vrot.slane %v3866_v43, 5  ;;  %v7857_v21 = vld [vmem:[%s8770_s1 + $0x200] sm:$0xff]   ;;  %8799 = vst [vmem:[#allocation5_spill] sm:$0xff] %v8000_v47 }
  0xc8   : > { %6328 = vmatprep.subr.bf16.mxu0 %v6794_v50  ;;  %v5611_v34 = vld [vmem:[%s6994_s8 + $0x38] sm:$0x1]  ;;  %v3908_v2 = vshrl.u32 %v5613_v51, 16  ;;  %v6789_v43 = vld [vmem:[%s6994_s8 + $0x84] sm:$0xff]   ;;  %v3887_v12 = vor.u32 %v3886_v22, %v7841_v39  ;;  %v3900_v58 = vrot.slane %v3898_v7, 5  ;;  %v7879_v51 = vrot.slane %v3904_v38, 5 }
  0xc9   : > { %v7843_v33 = vrot.slane %v3853_v23, 4  ;;  %v1382_v10 = vrot.slane %v1380_v44, 4  ;;  %v3877_v31 = vor.u32 %v3876_v54, %v3873_v52  ;;  %v8792_v23 = vcombine.low %v7662_v59, %v7670_v25  ;;  %v6861_v18 = vld [vmem:[%s6994_s8 + $0x88] sm:$0xf]  ;;  %v5614_v5 = vld [vmem:[%s6994_s8 + $0x44] sm:$0x1] }
  0xca   : > { %v1387_v3 = vrot.slane %v6861_v18, 5  ;;  %v7870_v59 = vcombine.low %v3835_v0, %v3845_v46  ;;  %v5615_v52 = vld [vmem:[%s6994_s8 + $0x48] sm:$0xf]  ;;  %v3897_v54 = vrot.slane %v3895_v28, 4  ;;  %v3910_v22 = vrot.slane %v3908_v2, 4 }
  0xcb   : > { %6329 = vmatpush3.bf16.msra.mxu0 %v6794_v50  ;;  %v1383_v50 = vrot.slane %v6860_v19, 5  ;;  %v6791_v19 = vld [vmem:[%s6994_s8 + $0x90] sm:$0xff]   ;;  %v3859_v0 = vsel %vm7026_vm2, %v7843_v33, %v7788_v17  ;;  %v3878_v46 = vrot.slane %v3877_v31, 4  ;;  %v3869_v28 = vsel %vm7026_vm2, %v7852_v13, %v7845_v1  ;;  %v7901_v33 = vld [vmem:[%s6994_s8 + $0x58] sm:$0xf]  ;;  %v6792_v31 = vld [vmem:[%s8770_s1 + $0xc8] sm:$0xff]  }
  0xcc   : > { %6330 = vmatprep.subr.bf16.mxu0 %v6798_v20  ;;  %v3888_v38 = vrot.slane %v3887_v12, 4  ;;  %v1389_v2 = vrot.slane %v1387_v3, 4  ;;  %v5618_v17 = vld [vmem:[%s6994_s8 + $0x54] sm:$0xf]  ;;  %v3914_v1 = vshll.u32 %v5614_v5, 16  ;;  %v3919_v13 = vshrl.u32 %v5615_v52, 16 }
  0xcd   : > { %6299 = vmatmul.mubr.bf16.gmra.mrb[12].mxu0 %v6785_v48  ;;  %v3890_v48 = vshll.u32 %v5611_v34, 16  ;;  %v7897_v7 = vsel %vm7272_vm5, %v1382_v10, %v1383_v50  ;;  %v3922_v50 = vshll.u32 %v5615_v52, 16  ;;  %v3901_v10 = vor.u32 %v3900_v58, %v3897_v54  ;;  %v6793_v54 = vld [vmem:[%s6994_s8 + $0x9c] sm:$0xff]   ;;  %v6867_v41 = vld [vmem:[%s6994_s8 + $0xac] sm:$0xf] }
  0xce   : > { %6075 = vmatmul.mubr.bf16.gmra.mrb[28].mxu1 %v8791_v42  ;;  %6302 = vmatprep.mubr.bf16.mxu0 %v6787_v53  ;;  %v5254_v53 = vrot.slane %v1268_v62, 9  ;;  %v6862_v42 = vld [vmem:[%s6994_s8 + $0x8c] sm:$0x1]  ;;  %v3952_v5 = vshll.u32 %v7901_v33, 16  ;;  %v8794_v52 = vcombine.low %v7678_v63, %v7686_v8  ;;  %v7937_v63 = vld [vmem:[%s6994_s8 + $0x50] sm:$0x1] }
  0xcf   : > { %6094 = vmatprep.mubr.bf16.mxu1 %v8792_v23  ;;  %6331 = vmatpush3.bf16.msra.mxu0 %v6798_v20  ;;  %v7876_v20 = vsel %vm7272_vm5, %v5253_v32, %v1380_v44  ;;  %v3892_v62 = vrot.slane %v3890_v48, 5  ;;  %v1390_v23 = vrot.slane %v6862_v42, 5  ;;  %v1269_v44 = vld [vmem:[%s6994_s8 + $0x90] sm:$0xe]  ;;  %v7889_v32 = vld [vmem:[%s6994_s8 + $0x4c] sm:$0xf]  ;;  %v3911_v48 = vor.u32 %v3910_v22, %v7879_v51 }
  0xd0   : > { %6332 = vmatprep.subr.bf16.mxu0 %v6802_v40  ;;  %v3928_v12 = vshll.u32 %v7889_v32, 16  ;;  %v3932_v18 = vshrl.u32 %v7889_v32, 16  ;;  %v8793_v42 = vcombine.low %v7666_v30, %v7674_v6  ;;  %v6796_v30 = vld [vmem:[%s8770_s1 + $0xd0] sm:$0xff]   ;;  %v3883_v6 = vsel %vm7026_vm2, %v3878_v46, %v7841_v39  ;;  %v6795_v8 = vld [vmem:[%s6994_s8 + $0xa8] sm:$0xff]   ;;  %v7944_v39 = vld [vmem:[%s6994_s8 + $0x5c] sm:$0x1] }
  0xd1   : > { %v3893_v58 = vsel %vm7026_vm2, %v3888_v38, %v3892_v62  ;;  %v5255_v22 = vrot.slane %v1269_v44, 9  ;;  %v3924_v25 = vrot.slane %v3922_v50, 5  ;;  %8795 = vst [vmem:[#allocation3_spill] sm:$0xff] %v7944_v39  ;;  %v3902_v46 = vrot.slane %v3901_v10, 4 }
  0xd2   : > { %v3912_v62 = vrot.slane %v3911_v48, 4  ;;  %v7946_v38 = vrot.slane %v3928_v12, 5  ;;  %v7948_v34 = vrot.slane %v3952_v5, 5  ;;  %v7953_v50 = vcombine.low %v3859_v0, %v3869_v28  ;;  %v5621_v28 = vld [vmem:[%s6994_s8 + $0x60] sm:$0xf] }
  0xd3   : > { %6333 = vmatpush3.bf16.msra.mxu0 %v6802_v40  ;;  %v7909_v40 = vsel %vm7272_vm5, %v5254_v53, %v1387_v3  ;;  %v3943_v53 = vshrl.u32 %v5618_v17, 16  ;;  %v3946_v3 = vshll.u32 %v5618_v17, 16  ;;  %v6863_v17 = vld [vmem:[%s6994_s8 + $0x94] sm:$0xf]  ;;  %v7957_v48 = vcombine.low %v3883_v6, %v3893_v58 }
  0xd4   : > { %6366 = vmatprep.subr.bf16.mxu0 %v7857_v21  ;;  %v3938_v0 = vshll.u32 %v7937_v63, 16  ;;  %v3907_v6 = vsel %vm7026_vm2, %v3902_v46, %v7879_v51  ;;  %v8798_v46 = vcombine.low %v7700_v61, %v7704_v36 }
  0xd5   : > { %6303 = vmatmul.mubr.bf16.gmra.mrb[16].mxu0 %v6789_v43  ;;  %v3956_v43 = vshrl.u32 %v7901_v33, 16  ;;  %v3945_v44 = vrot.slane %v3943_v53, 4  ;;  %v6864_v53 = vld [vmem:[%s6994_s8 + $0x98] sm:$0x1] }
  0xd6   : > { %6095 = vmatmul.mubr.bf16.vlgmr.msra.gmra.mrb[0].mxu1 %v8793_v42  ;;  %6306 = vmatprep.mubr.bf16.mxu0 %v6791_v19  ;;  %v7940_v19 = vrot.slane %v3914_v1, 5  ;;  %v1394_v42 = vrot.slane %v6863_v17, 5  ;;  %v6865_v17 = vld [vmem:[%s6994_s8 + $0xa0] sm:$0xf]  ;;  %v3940_v36 = vrot.slane %v3938_v0, 5 }
  0xd7   : > { %6127 = vmatpush3.bf16.msra.mxu1 %v7619_v60  ;;  %6098 = vmatprep.mubr.bf16.mxu1 %v8794_v52  ;;  %v7934_v60 = vsel %vm7272_vm5, %v1389_v2, %v1390_v23  ;;  %v3921_v52 = vrot.slane %v3919_v13, 4  ;;  %v3934_v23 = vrot.slane %v3932_v18, 4  ;;  %v3948_v2 = vrot.slane %v3946_v3, 5  ;;  %v6800_v13 = vld [vmem:[%s8770_s1 + $0xd8] sm:$0xff]  }
  0xd8   : > { %6128 = vmatprep.subr.bf16.mxu1 %v6792_v31  ;;  %v3958_v1 = vrot.slane %v3956_v43, 4  ;;  %v1270_v18 = vld [vmem:[%s6994_s8 + $0x9c] sm:$0xe]  ;;  %v1397_v3 = vrot.slane %v6864_v53, 5  ;;  %v7970_v43 = vld [vmem:[%s6994_s8 + $0x64] sm:$0xf] }
  0xd9   : > { %v3925_v5 = vor.u32 %v3924_v25, %v3921_v52  ;;  %8796 = vst [vmem:[#allocation4_spill] sm:$0xff] %v7970_v43  ;;  %v3935_v58 = vor.u32 %v3934_v23, %v7946_v38  ;;  %v1401_v12 = vrot.slane %v6865_v17, 5  ;;  %v8797_v25 = vcombine.low %v7690_v24, %v7694_v35  ;;  %v6797_v23 = vld [vmem:[%s6994_s8 + $0xb4] sm:$0xff]   ;;  %v6803_v24 = vld [vmem:[%s8770_s1 + $0xe0] sm:$0xff]   ;;  %v5624_v17 = vld [vmem:[%s6994_s8 + $0x6c] sm:$0xf] }
  0xda   : > { %v1396_v52 = vrot.slane %v1394_v42, 4  ;;  %v3949_v53 = vor.u32 %v3948_v2, %v3945_v44  ;;  %v3959_v51 = vor.u32 %v3958_v1, %v7948_v34  ;;  %v3967_v35 = vshrl.u32 %v5621_v28, 16  ;;  %v6866_v2 = vld [vmem:[%s6994_s8 + $0xa4] sm:$0x1] }
  0xdb   : > { %6129 = vmatpush3.bf16.msra.mxu1 %v6792_v31  ;;  %v7964_v31 = vsel %vm7272_vm5, %v5255_v22, %v1394_v42  ;;  %v3962_v22 = vshll.u32 %v7944_v39, 16  ;;  %v3980_v42 = vshrl.u32 %v7970_v43, 16  ;;  %v3926_v61 = vrot.slane %v3925_v5, 4  ;;  %v8139_v39 = vld [vmem:[%s6994_s8 + $0x98] sm:$0x1] }
  0xdc   : > { %6130 = vmatprep.subr.bf16.mxu1 %v6796_v30  ;;  %v5256_v44 = vrot.slane %v1270_v18, 9  ;;  %v1404_v1 = vrot.slane %v6866_v2, 5  ;;  %v3950_v5 = vrot.slane %v3949_v53, 4  ;;  %v3960_v18 = vrot.slane %v3959_v51, 4  ;;  %8812 = vst [vmem:[#allocation14_spill] sm:$0xff] %v8139_v39 }
  0xdd   : > { %6307 = vmatmul.mubr.bf16.gmra.mrb[20].mxu0 %v6793_v54  ;;  %v3917_v54 = vsel %vm7026_vm2, %v3912_v62, %v7940_v19  ;;  %v3976_v19 = vshll.u32 %v7970_v43, 16  ;;  %v6799_v62 = vld [vmem:[%s6994_s8 + $0xc0] sm:$0xff]   ;;  %v3964_v10 = vrot.slane %v3962_v22, 5  ;;  %v8006_v43 = vsel %vm7272_vm5, %v1396_v52, %v1397_v3 }
  0xde   : > { %6099 = vmatmul.mubr.bf16.gmra.mrb[4].mxu1 %v8797_v25  ;;  %6310 = vmatprep.mubr.bf16.mxu0 %v6795_v8  ;;  %v3970_v8 = vshll.u32 %v5621_v28, 16  ;;  %v3936_v25 = vrot.slane %v3935_v58, 4  ;;  %v1408_v28 = vrot.slane %v6867_v41, 5  ;;  %v8002_v55 = vcombine.low %v3907_v6, %v3917_v54  ;;  %v6805_v41 = vld [vmem:[%s8770_s1 + $0xe8] sm:$0xff]  }
  0xdf   : > { %6102 = vmatprep.mubr.bf16.mxu1 %v8798_v46  ;;  %6131 = vmatpush3.bf16.msra.mxu1 %v6796_v30  ;;  %v1271_v30 = vld [vmem:[%s6994_s8 + $0xa8] sm:$0xe]  ;;  %v1403_v46 = vrot.slane %v1401_v12, 4  ;;  %v3969_v0 = vrot.slane %v3967_v35, 4  ;;  %v8008_v58 = vrot.slane %v3976_v19, 5  ;;  %v3982_v22 = vrot.slane %v3980_v42, 4 }
  0xe0   : > { %6132 = vmatprep.subr.bf16.mxu1 %v6800_v13  ;;  %v3972_v2 = vrot.slane %v3970_v8, 5  ;;  %v3931_v3 = vsel %vm7026_vm2, %v3926_v61, %v7946_v38  ;;  %v8018_v6 = vsel %vm7272_vm5, %v5256_v44, %v1401_v12  ;;  %v3991_v54 = vshrl.u32 %v5624_v17, 16  ;;  %v6868_v38 = vld [vmem:[%s6994_s8 + $0xb0] sm:$0x1]  ;;  %v1272_v19 = vld [vmem:[%s6994_s8 + $0xb4] sm:$0xe] }
  0xe1   : > { %v3994_v52 = vshll.u32 %v5624_v17, 16  ;;  %v3941_v53 = vsel %vm7026_vm2, %v3936_v25, %v3940_v36  ;;  %v8027_v51 = vsel %vm7272_vm5, %v1403_v46, %v1404_v1  ;;  %v5257_v35 = vrot.slane %v1271_v30, 9  ;;  %v8049_v30 = vld [vmem:[%s6994_s8 + $0x74] sm:$0x1]  ;;  %v6869_v25 = vld [vmem:[%s6994_s8 + $0xb8] sm:$0xf] }
  0xe2   : > { %v1411_v8 = vrot.slane %v6868_v38, 5  ;;  %v8801_v12 = vcombine.low %v7721_v49, %v7735_v4  ;;  %v3955_v42 = vsel %vm7026_vm2, %v3950_v5, %v7948_v34  ;;  %v3965_v61 = vsel %vm7026_vm2, %v3960_v18, %v3964_v10  ;;  %v6801_v4 = vld [vmem:[%s6994_s8 + $0xcc] sm:$0xff]   ;;  %8803 = vst [vmem:[#allocation7_spill] sm:$0xff] %v8049_v30  ;;  %v5630_v38 = vld [vmem:[%s6994_s8 + $0x84] sm:$0xf] }
  0xe3   : > { %6133 = vmatpush3.bf16.msra.mxu1 %v6800_v13  ;;  %v8021_v13 = vld [vmem:[%s6994_s8 + $0x70] sm:$0xf]  ;;  %v1410_v36 = vrot.slane %v1408_v28, 4  ;;  %v3986_v44 = vshll.u32 %v8000_v47, 16  ;;  %v8802_v49 = vcombine.low %v7757_v26, %v7761_v56  ;;  %v3983_v1 = vor.u32 %v3982_v22, %v8008_v58  ;;  %v8066_v22 = vld [vmem:[%s6994_s8 + $0x7c] sm:$0xf] }
  0xe4   : > { %6134 = vmatprep.subr.bf16.mxu1 %v6803_v24  ;;  %8800 = vst [vmem:[#allocation6_spill] sm:$0xff] %v8021_v13  ;;  %v4000_v34 = vshll.u32 %v8021_v13, 16  ;;  %v4004_v10 = vshrl.u32 %v8021_v13, 16  ;;  %v5258_v17 = vrot.slane %v1272_v19, 9  ;;  %v1415_v46 = vrot.slane %v6869_v25, 5  ;;  %8804 = vst [vmem:[#allocation8_spill] sm:$0xff] %v8066_v22 }
  0xe5   : > { %6311 = vmatmul.mubr.bf16.gmra.mrb[24].mxu0 %v6797_v23  ;;  %v6807_v23 = vld [vmem:[%s8770_s1 + $0xf0] sm:$0xff]   ;;  %v3993_v26 = vrot.slane %v3991_v54, 4  ;;  %v3996_v56 = vrot.slane %v3994_v52, 5  ;;  %v8057_v18 = vcombine.low %v3931_v3, %v3941_v53  ;;  %v8069_v19 = vcombine.low %v3955_v42, %v3965_v61  ;;  %v6870_v3 = vld [vmem:[%s6994_s8 + $0xbc] sm:$0x1] }
  0xe6   : > { %6103 = vmatmul.mubr.bf16.gmra.mrb[8].mxu1 %v8801_v12  ;;  %6314 = vmatprep.mubr.bf16.mxu0 %v6799_v62  ;;  %v3973_v62 = vor.u32 %v3972_v2, %v3969_v0  ;;  %v8063_v2 = vsel %vm7272_vm5, %v5257_v35, %v1408_v28  ;;  %v8073_v54 = vsel %vm7272_vm5, %v1410_v36, %v1411_v8  ;;  %v8075_v52 = vrot.slane %v3986_v44, 5  ;;  %v6809_v12 = vld [vmem:[%s8770_s1 + $0xf8] sm:$0xff]   ;;  %v8082_v28 = vld [vmem:[%s6994_s8 + $0x88] sm:$0xf] }
  0xe7   : > { %6106 = vmatprep.mubr.bf16.mxu1 %v8802_v49  ;;  %6135 = vmatpush3.bf16.msra.mxu1 %v6803_v24  ;;  %v5627_v24 = vld [vmem:[%s6994_s8 + $0x78] sm:$0xf]  ;;  %v1418_v53 = vrot.slane %v6870_v3, 5  ;;  %8805 = vst [vmem:[#allocation9_spill] sm:$0xff] %v8082_v28  ;;  %v8086_v42 = vrot.slane %v3983_v1, 4  ;;  %v8088_v61 = vrot.slane %v4000_v34, 5  ;;  %v8092_v36 = vsel %vm7272_vm5, %v5258_v17, %v1415_v46 }
  0xe8   : > { %6136 = vmatprep.subr.bf16.mxu1 %v6805_v41  ;;  %v8084_v35 = vrot.slane %v3973_v62, 4  ;;  %v4006_v8 = vrot.slane %v4004_v10, 4  ;;  %v1417_v44 = vrot.slane %v1415_v46, 4  ;;  %v3997_v49 = vor.u32 %v3996_v56, %v3993_v26  ;;  %v5633_v3 = vld [vmem:[%s6994_s8 + $0x90] sm:$0xf] }
  0xe9   : > { %v4010_v25 = vshll.u32 %v8049_v30, 16  ;;  %v4018_v0 = vshll.u32 %v5627_v24, 16  ;;  %v4024_v62 = vshll.u32 %v8066_v22, 16  ;;  %v4028_v1 = vshrl.u32 %v8066_v22, 16  ;;  %v8099_v34 = vld [vmem:[%s6994_s8 + $0x94] sm:$0xf] }
  0xea   : > { %8806 = vst [vmem:[#allocation10_spill] sm:$0xff] %v8099_v34  ;;  %v8807_v10 = vcombine.low %v7801_v27, %v7805_v29  ;;  %v4039_v17 = vshrl.u32 %v5630_v38, 16  ;;  %v4042_v46 = vshll.u32 %v5630_v38, 16  ;;  %v4052_v26 = vshrl.u32 %v8082_v28, 16  ;;  %v5636_v38 = vld [vmem:[%s6994_s8 + $0x9c] sm:$0xf] }
  0xeb   : > { %6137 = vmatpush3.bf16.msra.mxu1 %v6805_v41  ;;  %v4015_v41 = vshrl.u32 %v5627_v24, 16  ;;  %v8808_v56 = vcombine.low %v7812_v45, %v7816_v14  ;;  %v4007_v29 = vor.u32 %v4006_v8, %v8088_v61  ;;  %v4066_v24 = vshll.u32 %v5633_v3, 16  ;;  %v8121_v45 = vld [vmem:[%s6994_s8 + $0x80] sm:$0x1] }
  0xec   : > { %6138 = vmatprep.subr.bf16.mxu1 %v6807_v23  ;;  %v8118_v5 = vrot.slane %v4010_v25, 5  ;;  %8809 = vst [vmem:[#allocation11_spill] sm:$0xff] %v8121_v45  ;;  %v4072_v14 = vshll.u32 %v8099_v34, 16  ;;  %v4020_v27 = vrot.slane %v4018_v0, 5  ;;  %v4030_v8 = vrot.slane %v4028_v1, 4 }
  0xed   : > { %6315 = vmatmul.mubr.bf16.gmra.mrb[28].mxu0 %v6801_v4  ;;  %v4048_v4 = vshll.u32 %v8082_v28, 16  ;;  %v8125_v28 = vrot.slane %v4024_v62, 5  ;;  %v8131_v22 = vld [vmem:[%s6994_s8 + $0xa0] sm:$0xf]  ;;  %v4041_v25 = vrot.slane %v4039_v17, 4  ;;  %v4044_v30 = vrot.slane %v4042_v46, 5 }
  0xee   : > { %6107 = vmatmul.mubr.bf16.gmra.mrb[12].mxu1 %v8807_v10  ;;  %6334 = vmatprep.mubr.bf16.mxu0 %v7870_v59  ;;  %v4063_v59 = vshrl.u32 %v5633_v3, 16  ;;  %v8116_v10 = vrot.slane %v3997_v49, 4  ;;  %v8128_v3 = vld [vmem:[%s6994_s8 + $0x8c] sm:$0x1]  ;;  %8811 = vst [vmem:[#allocation13_spill] sm:$0xff] %v8131_v22  ;;  %v4054_v47 = vrot.slane %v4052_v26, 4  ;;  %v8148_v62 = vsel %vm7272_vm5, %v1417_v44, %v1418_v53 }
  0xef   : > { %6110 = vmatprep.mubr.bf16.mxu1 %v8808_v56  ;;  %6139 = vmatpush3.bf16.msra.mxu1 %v6807_v23  ;;  %v4076_v23 = vshrl.u32 %v8099_v34, 16  ;;  %v4017_v56 = vrot.slane %v4015_v41, 4  ;;  %8810 = vst [vmem:[#allocation12_spill] sm:$0xff] %v8128_v3  ;;  %v6806_v49 = vld [vmem:[%s8770_s1 + $0x208] sm:$0xff]   ;;  %v8136_v13 = vrot.slane %v4048_v4, 5  ;;  %v4068_v34 = vrot.slane %v4066_v24, 5 }
  0xf0   : > { %6140 = vmatprep.subr.bf16.mxu1 %v6809_v12  ;;  %v5639_v41 = vld [vmem:[%s6994_s8 + $0xa8] sm:$0xf]  ;;  %v4065_v1 = vrot.slane %v4063_v59, 4  ;;  %v8153_v17 = vld [vmem:[%s8770_s1 + $0x100] sm:$0xff]   ;;  %v8156_v46 = vrot.slane %v4072_v14, 5  ;;  %v4087_v26 = vshrl.u32 %v5636_v38, 16  ;;  %v8814_v24 = vcombine.low %v7820_v16, %v7830_v15 }
  0xf1   : > { %8813 = vst [vmem:[#allocation15_spill] sm:$0xff] %v8153_v17  ;;  %v4078_v4 = vrot.slane %v4076_v23, 4  ;;  %v4090_v0 = vshll.u32 %v5636_v38, 16  ;;  %v8159_v53 = vrot.slane %v4007_v29, 4  ;;  %v4096_v44 = vshll.u32 %v8131_v22, 16  ;;  %v6808_v16 = vld [vmem:[%s8770_s1 + $0x210] sm:$0xff]  }
  0xf2   : > { %v4100_v59 = vshrl.u32 %v8131_v22, 16  ;;  %v4021_v14 = vor.u32 %v4020_v27, %v4017_v56  ;;  %v4031_v38 = vor.u32 %v4030_v8, %v8125_v28  ;;  %v4045_v23 = vor.u32 %v4044_v30, %v4041_v25  ;;  %v8171_v29 = vld [vmem:[%s6994_s8 + $0xac] sm:$0xf]  ;;  %v8184_v25 = vld [vmem:[%s6994_s8 + $0xa4] sm:$0x1] }
  0xf3   : > { %6141 = vmatpush3.bf16.msra.mxu1 %v6809_v12  ;;  %v4034_v12 = vshll.u32 %v8121_v45, 16  ;;  %8815 = vst [vmem:[#allocation16_spill] sm:$0xff] %v8171_v29  ;;  %v4055_v15 = vor.u32 %v4054_v47, %v8136_v13  ;;  %v4111_v27 = vshrl.u32 %v5639_v41, 16  ;;  %v4114_v30 = vshll.u32 %v5639_v41, 16 }
  0xf4   : > { %6414 = vmatprep.subr.bf16.mxu1 %v8153_v17  ;;  %v8816_v17 = vcombine.low %v7876_v20, %v7897_v7  ;;  %v4069_v56 = vor.u32 %v4068_v34, %v4065_v1  ;;  %v4079_v8 = vor.u32 %v4078_v4, %v8156_v46  ;;  %v4089_v20 = vrot.slane %v4087_v26, 4 }
  0xf5   : > { %6335 = vmatmul.mubr.bf16.vlgmr.msra.gmra.mrb[0].mxu0 %v7953_v50  ;;  %v4058_v50 = vshll.u32 %v8128_v3, 16  ;;  %v4092_v7 = vrot.slane %v4090_v0, 5  ;;  %v4124_v22 = vshrl.u32 %v8171_v29, 16  ;;  %v4022_v47 = vrot.slane %v4021_v14, 4  ;;  %v6810_v0 = vld [vmem:[%s8770_s1 + $0x218] sm:$0xff]  }
  0xf6   : > { %6111 = vmatmul.mubr.bf16.gmra.mrb[16].mxu1 %v8814_v24  ;;  %6367 = vmatpush3.bf16.msra.mxu0 %v7857_v21  ;;  %v4082_v21 = vshll.u32 %v8139_v39, 16  ;;  %v4120_v24 = vshll.u32 %v8171_v29, 16  ;;  %v4032_v39 = vrot.slane %v4031_v38, 4  ;;  %v4036_v3 = vrot.slane %v4034_v12, 5 }
  0xf7   : > { %6114 = vmatprep.mubr.bf16.mxu1 %v8816_v17  ;;  %6338 = vmatprep.mubr.bf16.mxu0 %v7957_v48  ;;  %v8186_v17 = vrot.slane %v4096_v44, 5  ;;  %v4102_v48 = vrot.slane %v4100_v59, 4  ;;  %v4060_v41 = vrot.slane %v4058_v50, 5  ;;  %v4046_v34 = vrot.slane %v4045_v23, 4 }
  0xf8   : > { %6368 = vmatprep.subr.bf16.mxu0 %v6806_v49  ;;  %v4056_v1 = vrot.slane %v4055_v15, 4  ;;  %v4113_v4 = vrot.slane %v4111_v27, 4  ;;  %v4116_v45 = vrot.slane %v4114_v30, 5  ;;  %v4070_v26 = vrot.slane %v4069_v56, 4  ;;  %v8252_v27 = vld [vmem:[%s6994_s8 + $0xbc] sm:$0x1] }
  0xf9   : > { %v4084_v44 = vrot.slane %v4082_v21, 5  ;;  %v4093_v59 = vor.u32 %v4092_v7, %v4089_v20  ;;  %v4106_v29 = vshll.u32 %v8184_v25, 16  ;;  %v4103_v12 = vor.u32 %v4102_v48, %v8186_v17  ;;  %v8219_v21 = vld [vmem:[%s6994_s8 + $0xb0] sm:$0x1] }
  0xfa   : > { %6369 = vmatpush3.bf16.msra.mxu0 %v6806_v49  ;;  %v4080_v49 = vrot.slane %v4079_v8, 4  ;;  %v8196_v14 = vrot.slane %v4120_v24, 5  ;;  %v4126_v38 = vrot.slane %v4124_v22, 4  ;;  %v8817_v23 = vor.u32 %v7604_v57, %v7602_v11 }
  0xfb   : > { %6370 = vmatprep.subr.bf16.mxu0 %v6808_v16  ;;  %v8818_v15 = vcombine.low %v7909_v40, %v7934_v60  ;;  %v4013_v22 = vsel %vm7026_vm2, %v8159_v53, %v8118_v5  ;;  %v4027_v57 = vsel %vm7026_vm2, %v4022_v47, %v8125_v28  ;;  %v8819_v40 = vcombine.low %v7964_v31, %v8006_v43  ;;  %v6813_v31 = vld [vmem:[%s8770_s1 + $0x220] sm:$0xff]  }
  0xfc   : > { %v8201_v50 = vrot.slane %v8817_v23, 4  ;;  %v4037_v60 = vsel %vm7026_vm2, %v4032_v39, %v4036_v3  ;;  %v4117_v5 = vor.u32 %v4116_v45, %v4113_v4  ;;  %v4061_v28 = vsel %vm7026_vm2, %v4056_v1, %v4060_v41  ;;  %v5695_v41 = vld [vmem:[%s6994_s8 + $0x48] sm:$0xe] }
  0xfd   : > { %6339 = vmatmul.mubr.bf16.gmra.mrb[4].mxu0 %v8002_v55  ;;  %v4003_v55 = vsel %vm7026_vm2, %v8116_v10, %v8088_v61  ;;  %v5642_v61 = vld [vmem:[%s6994_s8 + $0xb4] sm:$0xf]  ;;  %v8231_v10 = vld [vmem:[%s6994_s8 + $0xb8] sm:$0xf]  ;;  %v4075_v39 = vsel %vm7026_vm2, %v4070_v26, %v8156_v46  ;;  %v8241_v43 = vrot.slane %v4093_v59, 4  ;;  %v8243_v3 = vrot.slane %v4106_v29, 5 }
  0xfe   : > { %6115 = vmatmul.mubr.bf16.gmra.mrb[20].mxu1 %v8818_v15  ;;  %6342 = vmatprep.mubr.bf16.mxu0 %v8057_v18  ;;  %v4051_v18 = vsel %vm7026_vm2, %v4046_v34, %v8136_v13  ;;  %v4085_v13 = vsel %vm7026_vm2, %v4080_v49, %v4084_v44  ;;  %v8247_v45 = vrot.slane %v4103_v12, 4  ;;  %v4127_v53 = vor.u32 %v4126_v38, %v8196_v14  ;;  %v5696_v26 = vld [vmem:[%s6994_s8 + $0x54] sm:$0xe] }
  0xff   : > { %6118 = vmatprep.mubr.bf16.mxu1 %v8819_v40  ;;  %6371 = vmatpush3.bf16.msra.mxu0 %v6808_v16  ;;  %v4130_v16 = vshll.u32 %v8219_v21, 16  ;;  %v8820_v46 = vsel %vm7026_vm2, %v8086_v42, %v8075_v52  ;;  %v8821_v29 = vsel %vm7026_vm2, %v8084_v35, %v8008_v58  ;;  %v4135_v56 = vshrl.u32 %v5642_v61, 16 }
 0x100   : > { %6372 = vmatprep.subr.bf16.mxu0 %v6810_v0  ;;  %v5673_v30 = vcombine.low %v8821_v29, %v8820_v46  ;;  %v4138_v8 = vshll.u32 %v5642_v61, 16  ;;  %v4144_v20 = vshll.u32 %v8231_v10, 16  ;;  %v5289_v7 = vcombine.low %v8063_v2, %v8073_v54  ;;  %v6816_v2 = vld [vmem:[%s8770_s1 + $0x228] sm:$0xff]   ;;  %v5645_v54 = vld [vmem:[%s6994_s8 + $0xc0] sm:$0xf]  ;;  %v8825_v29 = vld [vmem:[#allocation5_spill] sm:$0xff] }
 0x101   : > { %v5290_v48 = vcombine.low %v8092_v36, %v8148_v62  ;;  %v5674_v24 = vcombine.low %v4003_v55, %v4013_v22  ;;  %v8269_v52 = vrot.slane %v4117_v5, 4  ;;  %v5675_v42 = vcombine.low %v4027_v57, %v4037_v60 }
 0x102   : > { %v8271_v58 = vcombine.low %v4051_v18, %v4061_v28  ;;  %v8273_v35 = vcombine.low %v4075_v39, %v4085_v13  ;;  %v4099_v47 = vsel %vm7026_vm2, %v8241_v43, %v8186_v17  ;;  %v4109_v34 = vsel %vm7026_vm2, %v8247_v45, %v8243_v3  ;;  %v5698_v28 = vld [vmem:[%s6994_s8 + $0x6c] sm:$0xe] }
 0x103   : > { %6373 = vmatpush3.bf16.msra.mxu0 %v6810_v0  ;;  %v8289_v1 = vrot.slane %v4127_v53, 4  ;;  %v8291_v4 = vrot.slane %v4130_v16, 5  ;;  %v4148_v0 = vshrl.u32 %v8231_v10, 16  ;;  %v8822_v44 = vcombine.low %v8018_v6, %v8027_v51  ;;  %v6819_v6 = vld [vmem:[%s8770_s1 + $0x230] sm:$0xff]   ;;  %v8313_v51 = vld [vmem:[%s6994_s8 + $0xc4] sm:$0xf] }
 0x104   : > { %6374 = vmatprep.subr.bf16.mxu0 %v6813_v31  ;;  %v8298_v59 = vrot.slane %v4135_v56, 4  ;;  %v8302_v49 = vrot.slane %v4144_v20, 5  ;;  %v4154_v12 = vshll.u32 %v8252_v27, 16  ;;  %v4123_v38 = vsel %vm7026_vm2, %v8269_v52, %v8196_v14  ;;  %v5697_v14 = vld [vmem:[%s6994_s8 + $0x60] sm:$0xe]  ;;  %v8823_v39 = vld [vmem:[#allocation3_spill] sm:$0xff] }
 0x105   : > { %6343 = vmatmul.mubr.bf16.gmra.mrb[8].mxu0 %v8069_v19  ;;  %v8300_v19 = vrot.slane %v4138_v8, 5  ;;  %v4159_v23 = vshrl.u32 %v5645_v54, 16  ;;  %v5711_v15 = vrot.slane %v5695_v41, 9  ;;  %v4622_v55 = vrot.slane %v7889_v32, 5  ;;  %v6811_v13 = vld [vmem:[%s6994_s8 + $0xc] sm:$0xff]   ;;  %v6822_v56 = vld [vmem:[%s8770_s1 + $0x238] sm:$0xff]  }
 0x106   : > { %6119 = vmatmul.mubr.bf16.gmra.mrb[24].mxu1 %v8822_v44  ;;  %6346 = vmatprep.mubr.bf16.mxu0 %v5673_v30  ;;  %v4162_v22 = vshll.u32 %v5645_v54, 16  ;;  %v4625_v57 = vrot.slane %v7937_v63, 5  ;;  %v5712_v40 = vrot.slane %v5696_v26, 9  ;;  %v4629_v60 = vrot.slane %v7901_v33, 5  ;;  %v8824_v16 = vld [vmem:[#allocation4_spill] sm:$0xff]  ;;  %v8826_v52 = vld [vmem:[#allocation6_spill] sm:$0xff] }
 0x107   : > { %6122 = vmatprep.mubr.bf16.mxu1 %v5289_v7  ;;  %6375 = vmatpush3.bf16.msra.mxu0 %v6813_v31  ;;  %v4133_v18 = vsel %vm7026_vm2, %v8289_v1, %v8291_v4  ;;  %v8323_v5 = vrot.slane %v4148_v0, 4  ;;  %v8327_v61 = vsel %vm7272_vm5, %v5711_v15, %v4622_v55  ;;  %v4624_v32 = vrot.slane %v4622_v55, 4  ;;  %v8827_v4 = vld [vmem:[#allocation7_spill] sm:$0xff] }
 0x108   : > { %6376 = vmatprep.subr.bf16.mxu0 %v6816_v2  ;;  %v4168_v31 = vshll.u32 %v8313_v51, 16  ;;  %v8333_v63 = vsel %vm7272_vm5, %v5712_v40, %v4629_v60  ;;  %v4631_v33 = vrot.slane %v4629_v60, 4  ;;  %v4632_v3 = vrot.slane %v8823_v39, 5  ;;  %v8364_v26 = vld [vmem:[%s6994_s8 + $0xc8] sm:$0x1]  ;;  %v6812_v40 = vld [vmem:[%s6994_s8 + $0x18] sm:$0xff]  }
 0x109   : > { %v8339_v45 = vsel %vm7272_vm5, %v4624_v32, %v4625_v57  ;;  %v5713_v53 = vrot.slane %v5697_v14, 9  ;;  %v4636_v46 = vrot.slane %v8824_v16, 5  ;;  %v4639_v30 = vrot.slane %v8825_v29, 5  ;;  %v6814_v39 = vld [vmem:[%s6994_s8 + $0x24] sm:$0xff]  }
 0x10a   : > { %v5743_v8 = vcombine.low %v8327_v61, %v8339_v45  ;;  %v8350_v20 = vsel %vm7272_vm5, %v4631_v33, %v4632_v3  ;;  %v5714_v7 = vrot.slane %v5698_v28, 9  ;;  %v4646_v0 = vrot.slane %v8827_v4, 5  ;;  %v8829_v28 = vld [vmem:[#allocation11_spill] sm:$0xff]  ;;  %v5404_v61 = vld [vmem:[%s6994_s8 + $0x90] sm:$0xf] }
 0x10b   : > { %6377 = vmatpush3.bf16.msra.mxu0 %v6816_v2  ;;  %v4643_v2 = vrot.slane %v8826_v52, 5  ;;  %v5744_v54 = vcombine.low %v8333_v63, %v8350_v20  ;;  %v8357_v41 = vsel %vm7272_vm5, %v5713_v53, %v4636_v46  ;;  %v4638_v1 = vrot.slane %v4636_v46, 4  ;;  %v8830_v53 = vld [vmem:[#allocation2_spill] sm:$0xff]  ;;  %v6828_v45 = vld [vmem:[%s6994_s8 + $0xa8] sm:$0xff]  }
 0x10c   : > { %6378 = vmatprep.subr.bf16.mxu0 %v6819_v6  ;;  %v8366_v44 = vrot.slane %v4159_v23, 4  ;;  %v8379_v36 = vcombine.low %v4099_v47, %v4109_v34  ;;  %v4141_v62 = vor.u32 %v8300_v19, %v8298_v59  ;;  %v5699_v23 = vld [vmem:[%s6994_s8 + $0x78] sm:$0xe]  ;;  %v8391_v57 = vrot.slane %v4154_v12, 5  ;;  %v5648_v12 = vld [vmem:[%s6994_s8 + $0xcc] sm:$0xf] }
 0x10d   : > { %6347 = vmatmul.mubr.bf16.gmra.mrb[12].mxu0 %v5674_v24  ;;  %v8368_v24 = vrot.slane %v4162_v22, 5  ;;  %v8372_v15 = vsel %vm7272_vm5, %v5714_v7, %v4643_v2  ;;  %v4645_v55 = vrot.slane %v4643_v2, 4  ;;  %v8389_v22 = vcombine.low %v4123_v38, %v4133_v18  ;;  %v5398_v47 = vld [vmem:[%s6994_s8 + $0x78] sm:$0xf]  ;;  %v8828_v18 = vld [vmem:[#allocation8_spill] sm:$0xff] }
 0x10e   : > { %6123 = vmatmul.mubr.bf16.gmra.mrb[28].mxu1 %v5290_v48  ;;  %6350 = vmatprep.mubr.bf16.mxu0 %v5675_v42  ;;  %v4172_v48 = vshrl.u32 %v8313_v51, 16  ;;  %v8386_v42 = vsel %vm7272_vm5, %v4638_v1, %v4639_v30  ;;  %v4151_v34 = vor.u32 %v8323_v5, %v8302_v49  ;;  %v8402_v59 = vrot.slane %v4168_v31, 5  ;;  %v8416_v31 = vld [vmem:[%s6994_s8 + $0xd0] sm:$0xf]  ;;  %v8831_v1 = vld [vmem:[#allocation9_spill] sm:$0xff] }
 0x10f   : > { %6142 = vmatprep.mubr.bf16.mxu1 %v6811_v13  ;;  %6379 = vmatpush3.bf16.msra.mxu0 %v6819_v6  ;;  %v5745_v17 = vcombine.low %v8357_v41, %v8386_v42  ;;  %v8397_v43 = vsel %vm7272_vm5, %v4645_v55, %v4646_v0  ;;  %v4178_v19 = vshll.u32 %v8364_v26, 16  ;;  %v5700_v6 = vld [vmem:[%s6994_s8 + $0x84] sm:$0xe]  ;;  %v4165_v60 = vor.u32 %v8368_v24, %v8366_v44  ;;  %v8832_v24 = vld [vmem:[#allocation12_spill] sm:$0xff]  ;;  %v6892_v63 = vld [vmem:[%s6994_s8 + $0x8c] sm:$0x1] }
 0x110   : > { %6380 = vmatprep.subr.bf16.mxu0 %v6822_v56  ;;  %v5746_v38 = vcombine.low %v8372_v15, %v8397_v43  ;;  %v5715_v14 = vrot.slane %v5699_v23, 9  ;;  %v4650_v32 = vrot.slane %v8828_v18, 5  ;;  %v4653_v33 = vrot.slane %v8829_v28, 5 }
 0x111   : > { %v4174_v5 = vrot.slane %v4172_v48, 4  ;;  %v2397_v3 = vshrl.u32 %v5398_v47, 16  ;;  %v2400_v13 = vshll.u32 %v5398_v47, 16  ;;  %v2419_v16 = vsel %vm7026_vm2, %v8201_v50, %v8830_v53 }
 0x112   : > { %v4183_v46 = vshrl.u32 %v5648_v12, 16  ;;  %v8424_v29 = vsel %vm7272_vm5, %v5715_v14, %v4650_v32  ;;  %v4652_v30 = vrot.slane %v4650_v32, 4  ;;  %v5716_v7 = vrot.slane %v5700_v6, 9  ;;  %v6872_v6 = vld [vmem:[%s8770_s1 + $0x108] sm:$0xff]  }
 0x113   : > { %6381 = vmatpush3.bf16.msra.mxu0 %v6822_v56  ;;  %v4186_v52 = vshll.u32 %v5648_v12, 16  ;;  %v2399_v2 = vrot.slane %v2397_v3, 4  ;;  %v2402_v56 = vrot.slane %v2400_v13, 5  ;;  %v4657_v4 = vrot.slane %v8831_v1, 5  ;;  %v5701_v12 = vld [vmem:[%s6994_s8 + $0x90] sm:$0xe] }
 0x114   : > { %v4192_v50 = vshll.u32 %v8416_v31, 16  ;;  %v4196_v0 = vshrl.u32 %v8416_v31, 16  ;;  %v8433_v44 = vsel %vm7272_vm5, %v4652_v30, %v4653_v33  ;;  %v4660_v55 = vrot.slane %v8832_v24, 5  ;;  %v6815_v3 = vld [vmem:[%s6994_s8 + $0x30] sm:$0xff]  }
 0x115   : > { %6351 = vmatmul.mubr.bf16.gmra.mrb[16].mxu0 %v8271_v58  ;;  %v8833_v58 = vld [vmem:[#allocation15_spill] sm:$0xff]  ;;  %v4175_v48 = vor.u32 %v4174_v5, %v8402_v59  ;;  %v2403_v23 = vor.u32 %v2402_v56, %v2399_v2  ;;  %v4659_v47 = vrot.slane %v4657_v4, 4  ;;  %v4152_v14 = vrot.slane %v4151_v34, 4  ;;  %v8454_v13 = vld [vmem:[%s6994_s8 + $0xd4] sm:$0x1]  ;;  %v8834_v2 = vld [vmem:[#allocation10_spill] sm:$0xff] }
 0x116   : > { %6143 = vmatmul.mubr.bf16.vlgmr.msra.gmra.mrb[0].mxu1 %v6812_v40  ;;  %6354 = vmatprep.mubr.bf16.mxu0 %v8273_v35  ;;  %v5747_v35 = vcombine.low %v8424_v29, %v8433_v44  ;;  %v4142_v40 = vrot.slane %v4141_v62, 4  ;;  %v4180_v18 = vrot.slane %v4178_v19, 5  ;;  %v8446_v32 = vsel %vm7272_vm5, %v5716_v7, %v4657_v4  ;;  %v6817_v19 = vld [vmem:[%s6994_s8 + $0x3c] sm:$0xff]   ;;  %v6873_v1 = vld [vmem:[%s8770_s1 + $0x110] sm:$0xff]  }
 0x117   : > { %6422 = vmatpush3.bf16.msra.mxu1 %v8833_v58  ;;  %6146 = vmatprep.mubr.bf16.mxu1 %v6814_v39  ;;  %v4185_v28 = vrot.slane %v4183_v46, 4  ;;  %v4188_v33 = vrot.slane %v4186_v52, 5  ;;  %v2404_v39 = vrot.slane %v2403_v23, 4  ;;  %v8450_v5 = vsel %vm7272_vm5, %v4659_v47, %v4660_v55  ;;  %v6874_v47 = vld [vmem:[%s6994_s8 + $0x1c] sm:$0xf] }
 0x118   : > { %6415 = vmatprep.subr.bf16.mxu1 %v6872_v6  ;;  %v8456_v53 = vrot.slane %v4192_v50, 5  ;;  %v4198_v30 = vrot.slane %v4196_v0, 4  ;;  %v5748_v62 = vcombine.low %v8446_v32, %v8450_v5  ;;  %v5717_v34 = vrot.slane %v5701_v12, 9 }
 0x119   : > { %v4166_v7 = vrot.slane %v4165_v60, 4  ;;  %v4176_v46 = vrot.slane %v4175_v48, 4  ;;  %v2409_v52 = vsel %vm7026_vm2, %v2404_v39, %v7602_v11  ;;  %v4664_v56 = vrot.slane %v8834_v2, 5  ;;  %v8835_v11 = vld [vmem:[#allocation14_spill] sm:$0xff]  ;;  %v6818_v39 = vld [vmem:[%s6994_s8 + $0x48] sm:$0xff]  }
 0x11a   : > { %v4147_v4 = vsel %vm7026_vm2, %v4142_v40, %v8302_v49  ;;  %v4157_v60 = vsel %vm7026_vm2, %v4152_v14, %v8391_v57  ;;  %v8474_v50 = vcombine.low %v2409_v52, %v2419_v16  ;;  %v4667_v0 = vrot.slane %v8835_v11, 5  ;;  %v5691_v57 = vld [vmem:[%s6994_s8 + $0x18] sm:$0xe]  ;;  %v5702_v16 = vld [vmem:[%s6994_s8 + $0x9c] sm:$0xe] }
 0x11b   : > { %6423 = vmatpush3.bf16.msra.mxu1 %v6872_v6  ;;  %v4189_v24 = vor.u32 %v4188_v33, %v4185_v28  ;;  %v4202_v55 = vshll.u32 %v8454_v13, 16  ;;  %v8481_v58 = vsel %vm7272_vm5, %v5717_v34, %v4664_v56  ;;  %v4666_v48 = vrot.slane %v4664_v56, 4  ;;  %v6875_v40 = vld [vmem:[%s8770_s1 + $0x118] sm:$0xff]   ;;  %v6876_v2 = vld [vmem:[%s6994_s8 + $0x20] sm:$0x1] }
 0x11c   : > { %6416 = vmatprep.subr.bf16.mxu1 %v6873_v1  ;;  %v4199_v49 = vor.u32 %v4198_v30, %v8456_v53  ;;  %v4181_v23 = vsel %vm7026_vm2, %v4176_v46, %v4180_v18  ;;  %v4594_v12 = vrot.slane %v6874_v47, 5  ;;  %v5680_v6 = vcombine.low %v4147_v4, %v4157_v60  ;;  %v8836_v34 = vld [vmem:[#allocation13_spill] sm:$0xff]  ;;  %v5703_v11 = vld [vmem:[%s6994_s8 + $0xa8] sm:$0xe] }
 0x11d   : > { %6355 = vmatmul.mubr.bf16.gmra.mrb[20].mxu0 %v8379_v36  ;;  %v4171_v36 = vsel %vm7026_vm2, %v4166_v7, %v8402_v59  ;;  %v4190_v14 = vrot.slane %v4189_v24, 4  ;;  %v4204_v28 = vrot.slane %v4202_v55, 5  ;;  %v5707_v18 = vrot.slane %v5691_v57, 9  ;;  %v6820_v46 = vld [vmem:[%s6994_s8 + $0x54] sm:$0xff]   ;;  %v5692_v55 = vld [vmem:[%s6994_s8 + $0x24] sm:$0xe] }
 0x11e   : > { %6147 = vmatmul.mubr.bf16.gmra.mrb[4].mxu1 %v6815_v3  ;;  %6358 = vmatprep.mubr.bf16.mxu0 %v8389_v22  ;;  %v8495_v22 = vsel %vm7272_vm5, %v4666_v48, %v4667_v0  ;;  %v5718_v33 = vrot.slane %v5702_v16, 9  ;;  %v5681_v3 = vcombine.low %v4171_v36, %v4181_v23  ;;  %v4200_v30 = vrot.slane %v4199_v49, 4  ;;  %v6878_v48 = vld [vmem:[%s6994_s8 + $0x28] sm:$0xf]  ;;  %v6879_v36 = vld [vmem:[%s6994_s8 + $0x34] sm:$0xf] }
 0x11f   : > { %6150 = vmatprep.mubr.bf16.mxu1 %v6817_v19  ;;  %6424 = vmatpush3.bf16.msra.mxu1 %v6873_v1  ;;  %v5749_v59 = vcombine.low %v8481_v58, %v8495_v22  ;;  %v4671_v19 = vrot.slane %v8836_v34, 5  ;;  %v4674_v7 = vrot.slane %v8184_v25, 5  ;;  %v4596_v52 = vrot.slane %v4594_v12, 4  ;;  %v6877_v1 = vld [vmem:[%s8770_s1 + $0x120] sm:$0xff]  }
 0x120   : > { %6417 = vmatprep.subr.bf16.mxu1 %v6875_v40  ;;  %v4597_v56 = vrot.slane %v6876_v2, 5  ;;  %v4595_v25 = vsel %vm7272_vm5, %v5707_v18, %v4594_v12  ;;  %v4195_v0 = vsel %vm7026_vm2, %v4190_v14, %v8456_v53  ;;  %v4205_v24 = vsel %vm7026_vm2, %v4200_v30, %v4204_v28  ;;  %v5693_v12 = vld [vmem:[%s6994_s8 + $0x30] sm:$0xe]  ;;  %v6821_v30 = vld [vmem:[%s6994_s8 + $0x60] sm:$0xff]  }
 0x121   : > { %v8512_v4 = vsel %vm7272_vm5, %v5718_v33, %v4671_v19  ;;  %v4673_v60 = vrot.slane %v4671_v19, 4  ;;  %v4601_v49 = vrot.slane %v6878_v48, 5  ;;  %v4608_v23 = vrot.slane %v6879_v36, 5  ;;  %v6881_v33 = vld [vmem:[%s6994_s8 + $0x2c] sm:$0x1] }
 0x122   : > { %v4598_v16 = vsel %vm7272_vm5, %v4596_v52, %v4597_v56  ;;  %v5719_v47 = vrot.slane %v5703_v11, 9  ;;  %v5682_v28 = vcombine.low %v4195_v0, %v4205_v24  ;;  %v5708_v18 = vrot.slane %v5692_v55, 9  ;;  %v6823_v52 = vld [vmem:[%s6994_s8 + $0x6c] sm:$0xff]   ;;  %v5704_v11 = vld [vmem:[%s6994_s8 + $0xb4] sm:$0xe] }
 0x123   : > { %6425 = vmatpush3.bf16.msra.mxu1 %v6875_v40  ;;  %v8526_v57 = vsel %vm7272_vm5, %v4673_v60, %v4674_v7  ;;  %v8837_v40 = vld [vmem:[#allocation16_spill] sm:$0xff]  ;;  %v5739_v34 = vcombine.low %v4595_v25, %v4598_v16  ;;  %v4603_v19 = vrot.slane %v4601_v49, 4  ;;  %v5709_v2 = vrot.slane %v5693_v12, 9  ;;  %v5694_v0 = vld [vmem:[%s6994_s8 + $0x3c] sm:$0xe] }
 0x124   : > { %6418 = vmatprep.subr.bf16.mxu1 %v6877_v1  ;;  %v5750_v53 = vcombine.low %v8512_v4, %v8526_v57  ;;  %v4678_v14 = vrot.slane %v8837_v40, 5  ;;  %v4610_v56 = vrot.slane %v4608_v23, 4  ;;  %v6883_v24 = vld [vmem:[%s6994_s8 + $0x40] sm:$0xf]  ;;  %v4602_v48 = vsel %vm7272_vm5, %v5708_v18, %v4601_v49  ;;  %v6885_v18 = vld [vmem:[%s6994_s8 + $0x44] sm:$0x1] }
 0x125   : > { %6359 = vmatmul.mubr.bf16.gmra.mrb[24].mxu0 %v5680_v6  ;;  %v6880_v6 = vld [vmem:[%s8770_s1 + $0x128] sm:$0xff]   ;;  %v4615_v55 = vrot.slane %v6883_v24, 5  ;;  %v4685_v12 = vrot.slane %v8231_v10, 5  ;;  %v4609_v49 = vsel %vm7272_vm5, %v5709_v2, %v4608_v23  ;;  %v6886_v10 = vld [vmem:[%s8770_s1 + $0x138] sm:$0xff]   ;;  %v5705_v23 = vld [vmem:[%s6994_s8 + $0xc0] sm:$0xe] }
 0x126   : > { %6151 = vmatmul.mubr.bf16.gmra.mrb[8].mxu1 %v6818_v39  ;;  %6362 = vmatprep.mubr.bf16.mxu0 %v5681_v3  ;;  %v4604_v39 = vrot.slane %v6881_v33, 5  ;;  %v4681_v3 = vrot.slane %v8219_v21, 5  ;;  %v8543_v7 = vsel %vm7272_vm5, %v5719_v47, %v4678_v14  ;;  %v6884_v21 = vld [vmem:[%s8770_s1 + $0x130] sm:$0xff]   ;;  %v5720_v47 = vrot.slane %v5704_v11, 9 }
 0x127   : > { %6154 = vmatprep.mubr.bf16.mxu1 %v6820_v46  ;;  %6426 = vmatpush3.bf16.msra.mxu1 %v6877_v1  ;;  %v4680_v46 = vrot.slane %v4678_v14, 4  ;;  %v6882_v1 = vld [vmem:[%s6994_s8 + $0x38] sm:$0x1]  ;;  %v5710_v14 = vrot.slane %v5694_v0, 9  ;;  %v4618_v33 = vrot.slane %v6885_v18, 5  ;;  %v4692_v11 = vrot.slane %v8313_v51, 5 }
 0x128   : > { %6419 = vmatprep.subr.bf16.mxu1 %v6880_v6  ;;  %v4611_v60 = vrot.slane %v6882_v1, 5  ;;  %v4605_v36 = vsel %vm7272_vm5, %v4603_v19, %v4604_v39  ;;  %v4687_v39 = vrot.slane %v4685_v12, 4  ;;  %v5395_v19 = vld [vmem:[%s6994_s8 + $0x6c] sm:$0xf]  ;;  %v6826_v18 = vld [vmem:[%s6994_s8 + $0x90] sm:$0xff]   ;;  %v2440_v20 = vshll.u32 %v6892_v63, 16 }
 0x129   : > { %v8555_v25 = vsel %vm7272_vm5, %v4680_v46, %v4681_v3  ;;  %v5740_v3 = vcombine.low %v4602_v48, %v4605_v36  ;;  %v4616_v1 = vsel %vm7272_vm5, %v5710_v14, %v4615_v55  ;;  %v2373_v0 = vshrl.u32 %v5395_v19, 16  ;;  %v5706_v51 = vld [vmem:[%s6994_s8 + $0xcc] sm:$0xe] }
 0x12a   : > { %v5751_v16 = vcombine.low %v8543_v7, %v8555_v25  ;;  %v4612_v40 = vsel %vm7272_vm5, %v4610_v56, %v4611_v60  ;;  %v5721_v56 = vrot.slane %v5705_v23, 9  ;;  %v2376_v24 = vshll.u32 %v5395_v19, 16 }
 0x12b   : > { %6427 = vmatpush3.bf16.msra.mxu1 %v6880_v6  ;;  %v4688_v6 = vrot.slane %v8252_v27, 5  ;;  %v8575_v27 = vsel %vm7272_vm5, %v5720_v47, %v4685_v12  ;;  %v4695_v36 = vrot.slane %v8364_v26, 5  ;;  %v4694_v12 = vrot.slane %v4692_v11, 4 }
 0x12c   : > { %6420 = vmatprep.subr.bf16.mxu1 %v6884_v21  ;;  %v2378_v26 = vrot.slane %v2376_v24, 5  ;;  %v4702_v23 = vrot.slane %v8454_v13, 5 }
 0x12d   : > { %6363 = vmatmul.mubr.bf16.gmra.mrb[28].mxu0 %v5682_v28  ;;  %v4617_v28 = vrot.slane %v4615_v55, 4  ;;  %v8582_v46 = vsel %vm7272_vm5, %v4687_v39, %v4688_v6  ;;  %v8596_v55 = vsel %vm7272_vm5, %v5721_v56, %v4692_v11  ;;  %v4699_v39 = vrot.slane %v8416_v31, 5  ;;  %v6888_v56 = vld [vmem:[%s6994_s8 + $0x74] sm:$0x1] }
 0x12e   : > { %6155 = vmatmul.mubr.bf16.gmra.mrb[12].mxu1 %v6821_v30  ;;  %6382 = vmatprep.mubr.bf16.mxu0 %v5739_v34  ;;  %v6824_v30 = vld [vmem:[%s6994_s8 + $0x78] sm:$0xff]   ;;  %v5741_v34 = vcombine.low %v4609_v49, %v4612_v40  ;;  %v5752_v2 = vcombine.low %v8575_v27, %v8582_v46  ;;  %v8601_v49 = vsel %vm7272_vm5, %v4694_v12, %v4695_v36  ;;  %v2375_v40 = vrot.slane %v2373_v0, 4  ;;  %v6889_v0 = vld [vmem:[%s6994_s8 + $0x88] sm:$0xf] }
 0x12f   : > { %6158 = vmatprep.mubr.bf16.mxu1 %v6823_v52  ;;  %6428 = vmatpush3.bf16.msra.mxu1 %v6884_v21  ;;  %v6825_v52 = vld [vmem:[%s6994_s8 + $0x84] sm:$0xff]   ;;  %v4619_v60 = vsel %vm7272_vm5, %v4617_v28, %v4618_v33  ;;  %v6887_v21 = vld [vmem:[%s6994_s8 + $0x70] sm:$0xf]  ;;  %v5753_v28 = vcombine.low %v8596_v55, %v8601_v49  ;;  %v4701_v19 = vrot.slane %v4699_v39, 4  ;;  %v2430_v24 = vshll.u32 %v6889_v0, 16 }
 0x130   : > { %6421 = vmatprep.subr.bf16.mxu1 %v6886_v10  ;;  %v2382_v48 = vshll.u32 %v6887_v21, 16  ;;  %v2386_v47 = vshrl.u32 %v6887_v21, 16  ;;  %v5742_v6 = vcombine.low %v4616_v1, %v4619_v60  ;;  %v2392_v1 = vshll.u32 %v6888_v56, 16 }
 0x131   : > { %v8623_v11 = vsel %vm7272_vm5, %v4701_v19, %v4702_v23  ;;  %v2434_v21 = vshrl.u32 %v6889_v0, 16  ;;  %v6891_v19 = vld [vmem:[%s6994_s8 + $0xa0] sm:$0xf] }
 0x132   : > { %v8603_v14 = vrot.slane %v2382_v48, 5  ;;  %v2388_v33 = vrot.slane %v2386_v47, 4  ;;  %v2482_v56 = vshrl.u32 %v6891_v19, 16 }
 0x133   : > { %6429 = vmatpush3.bf16.msra.mxu1 %v6886_v10  ;;  %v5722_v10 = vrot.slane %v5706_v51, 9 }
 0x134   : > { %v2389_v31 = vor.u32 %v2388_v33, %v8603_v14  ;;  %v2448_v33 = vshll.u32 %v5404_v61, 16 }
 0x135   : > { %6383 = vmatmul.mubr.bf16.vlgmr.msra.gmra.mrb[0].mxu0 %v5740_v3  ;;  %v6827_v3 = vld [vmem:[%s6994_s8 + $0x9c] sm:$0xff]  }
 0x136   : > { %6159 = vmatmul.mubr.bf16.gmra.mrb[16].mxu1 %v6824_v30  ;;  %6386 = vmatprep.mubr.bf16.mxu0 %v5741_v34  ;;  %v5401_v30 = vld [vmem:[%s6994_s8 + $0x84] sm:$0xf]  ;;  %v8614_v34 = vsel %vm7272_vm5, %v5722_v10, %v4699_v39  ;;  %v2390_v47 = vrot.slane %v2389_v31, 4  ;;  %v6890_v10 = vld [vmem:[%s6994_s8 + $0x94] sm:$0xf]  ;;  %v2450_v0 = vrot.slane %v2448_v33, 5 }
 0x137   : > { %6162 = vmatprep.mubr.bf16.mxu1 %v6825_v52  ;;  %v2379_v52 = vor.u32 %v2378_v26, %v2375_v40  ;;  %v2421_v13 = vshrl.u32 %v5401_v30, 16  ;;  %v2424_v60 = vshll.u32 %v5401_v30, 16  ;;  %v5754_v48 = vcombine.low %v8614_v34, %v8623_v11 }
 0x138   : > { %v8632_v40 = vrot.slane %v2430_v24, 5  ;;  %v2436_v26 = vrot.slane %v2434_v21, 4  ;;  %v2454_v39 = vshll.u32 %v6890_v10, 16  ;;  %v2458_v23 = vshrl.u32 %v6890_v10, 16  ;;  %v6894_v10 = vld [vmem:[%s6994_s8 + $0xa4] sm:$0x1] }
 0x139   : > { %v2380_v36 = vrot.slane %v2379_v52, 4  ;;  %v2423_v12 = vrot.slane %v2421_v13, 4  ;;  %v2426_v51 = vrot.slane %v2424_v60, 5  ;;  %v2478_v52 = vshll.u32 %v6891_v19, 16  ;;  %v6895_v19 = vld [vmem:[%s6994_s8 + $0xac] sm:$0xf] }
 0x13a   : > { %v2437_v13 = vor.u32 %v2436_v26, %v8632_v40  ;;  %v8649_v41 = vrot.slane %v2454_v39, 5  ;;  %v2460_v42 = vrot.slane %v2458_v23, 4  ;;  %v2484_v21 = vrot.slane %v2482_v56, 4  ;;  %v5413_v23 = vld [vmem:[%s6994_s8 + $0xb4] sm:$0xf] }
 0x13b   : > { %v2488_v39 = vshll.u32 %v6894_v10, 16  ;;  %v2506_v15 = vshrl.u32 %v6895_v19, 16  ;;  %v2520_v63 = vshll.u32 %v5413_v23, 16 }
 0x13c   : > { %v2461_v26 = vor.u32 %v2460_v42, %v8649_v41 }
 0x13d   : > { %6387 = vmatmul.mubr.bf16.gmra.mrb[4].mxu0 %v5742_v6  ;;  %v5407_v6 = vld [vmem:[%s6994_s8 + $0x9c] sm:$0xf] }
 0x13e   : > { %6163 = vmatmul.mubr.bf16.gmra.mrb[20].mxu1 %v6826_v18  ;;  %6390 = vmatprep.mubr.bf16.mxu0 %v5743_v8  ;;  %v2394_v8 = vrot.slane %v2392_v1, 5  ;;  %v2445_v18 = vshrl.u32 %v5404_v61, 16  ;;  %v2472_v30 = vshll.u32 %v5407_v6, 16  ;;  %v2385_v1 = vsel %vm7026_vm2, %v2380_v36, %v8603_v14  ;;  %v6830_v61 = vld [vmem:[%s6994_s8 + $0xc0] sm:$0xff]  }
 0x13f   : > { %6166 = vmatprep.mubr.bf16.mxu1 %v6827_v3  ;;  %v2469_v3 = vshrl.u32 %v5407_v6, 16  ;;  %v8651_v14 = vrot.slane %v2478_v52, 5  ;;  %v2502_v52 = vshll.u32 %v6895_v19, 16 }
 0x140   : > { %v2395_v31 = vsel %vm7026_vm2, %v2390_v47, %v2394_v8  ;;  %v2447_v60 = vrot.slane %v2445_v18, 4  ;;  %v2474_v24 = vrot.slane %v2472_v30, 5  ;;  %v2442_v8 = vrot.slane %v2440_v20, 5  ;;  %v6896_v20 = vld [vmem:[%s6994_s8 + $0xb8] sm:$0xf] }
 0x141   : > { %v2438_v47 = vrot.slane %v2437_v13, 4  ;;  %v2485_v33 = vor.u32 %v2484_v21, %v8651_v14  ;;  %v2526_v29 = vshll.u32 %v6896_v20, 16  ;;  %v2530_v44 = vshrl.u32 %v6896_v20, 16 }
 0x143   : > { %v2486_v13 = vrot.slane %v2485_v33, 4 }
 0x145   : > { %6391 = vmatmul.mubr.bf16.gmra.mrb[8].mxu0 %v5744_v54  ;;  %v2427_v54 = vor.u32 %v2426_v51, %v2423_v12  ;;  %v2451_v12 = vor.u32 %v2450_v0, %v2447_v60  ;;  %v6893_v51 = vld [vmem:[%s6994_s8 + $0x98] sm:$0x1]  ;;  %v2490_v60 = vrot.slane %v2488_v39, 5 }
 0x146   : > { %6167 = vmatmul.mubr.bf16.gmra.mrb[24].mxu1 %v6828_v45  ;;  %6394 = vmatprep.mubr.bf16.mxu0 %v5745_v17  ;;  %v2471_v17 = vrot.slane %v2469_v3, 4  ;;  %v5443_v45 = vcombine.low %v2385_v1, %v2395_v31  ;;  %v2464_v6 = vshll.u32 %v6893_v51, 16  ;;  %v2517_v31 = vshrl.u32 %v5413_v23, 16 }
 0x147   : > { %6170 = vmatprep.mubr.bf16.mxu1 %v6829_v9  ;;  %v2428_v36 = vrot.slane %v2427_v54, 4  ;;  %v5410_v9 = vld [vmem:[%s6994_s8 + $0xa8] sm:$0xf]  ;;  %v2452_v56 = vrot.slane %v2451_v12, 4  ;;  %v2491_v32 = vsel %vm7026_vm2, %v2486_v13, %v2490_v60 }
 0x148   : > { %v2475_v18 = vor.u32 %v2474_v24, %v2471_v17  ;;  %v2493_v3 = vshrl.u32 %v5410_v9, 16  ;;  %v2496_v30 = vshll.u32 %v5410_v9, 16  ;;  %v2466_v1 = vrot.slane %v2464_v6, 5 }
 0x149   : > { %v2433_v43 = vsel %vm7026_vm2, %v2428_v36, %v8632_v40  ;;  %v2504_v17 = vrot.slane %v2502_v52, 5  ;;  %v2508_v24 = vrot.slane %v2506_v15, 4  ;;  %v2519_v21 = vrot.slane %v2517_v31, 4  ;;  %v5416_v36 = vld [vmem:[%s6994_s8 + $0xc0] sm:$0xf] }
 0x14a   : > { %v2476_v54 = vrot.slane %v2475_v18, 4  ;;  %v2495_v0 = vrot.slane %v2493_v3, 4  ;;  %v2498_v42 = vrot.slane %v2496_v30, 5  ;;  %v2541_v9 = vshrl.u32 %v5416_v36, 16  ;;  %v6898_v18 = vld [vmem:[%s6994_s8 + $0xc4] sm:$0xf] }
 0x14b   : > { %v2550_v33 = vshll.u32 %v6898_v18, 16 }
 0x14c   : > { %v2481_v51 = vsel %vm7026_vm2, %v2476_v54, %v8651_v14  ;;  %v2499_v5 = vor.u32 %v2498_v42, %v2495_v0  ;;  %v2554_v14 = vshrl.u32 %v6898_v18, 16  ;;  %v2543_v19 = vrot.slane %v2541_v9, 4 }
 0x14d   : > { %6395 = vmatmul.mubr.bf16.gmra.mrb[12].mxu0 %v5746_v38  ;;  %v2443_v38 = vsel %vm7026_vm2, %v2438_v47, %v2442_v8  ;;  %v2532_v8 = vrot.slane %v2530_v44, 4  ;;  %v2457_v47 = vsel %vm7026_vm2, %v2452_v56, %v8649_v41  ;;  %v6897_v41 = vld [vmem:[%s6994_s8 + $0xb0] sm:$0x1]  ;;  %v5447_v58 = vcombine.low %v2481_v51, %v2491_v32  ;;  %v6900_v44 = vld [vmem:[%s6994_s8 + $0xc8] sm:$0x1] }
 0x14e   : > { %6171 = vmatmul.mubr.bf16.gmra.mrb[28].mxu1 %v6830_v61  ;;  %6398 = vmatprep.mubr.bf16.mxu0 %v5747_v35  ;;  %v2462_v35 = vrot.slane %v2461_v26, 4  ;;  %v5445_v40 = vcombine.low %v2433_v43, %v2443_v38  ;;  %v2522_v61 = vrot.slane %v2520_v63, 5  ;;  %v2512_v6 = vshll.u32 %v6897_v41, 16 }
 0x14f   : > { %6206 = vmatprep.mubr.bf16.mxu1 %v5443_v45  ;;  %v2528_v45 = vrot.slane %v2526_v29, 5  ;;  %v2544_v26 = vshll.u32 %v5416_v36, 16  ;;  %v2500_v22 = vrot.slane %v2499_v5, 4  ;;  %v2552_v15 = vrot.slane %v2550_v33, 5 }
 0x150   : > { %v2467_v12 = vsel %vm7026_vm2, %v2462_v35, %v2466_v1  ;;  %v2523_v10 = vor.u32 %v2522_v61, %v2519_v21  ;;  %v2514_v30 = vrot.slane %v2512_v6, 5  ;;  %v2556_v43 = vrot.slane %v2554_v14, 4 }
 0x151   : > { %v2533_v39 = vor.u32 %v2532_v8, %v2528_v45  ;;  %v5446_v3 = vcombine.low %v2457_v47, %v2467_v12  ;;  %v2546_v52 = vrot.slane %v2544_v26, 5  ;;  %v2505_v31 = vsel %vm7026_vm2, %v2500_v22, %v2504_v17 }
 0x152   : > { %v2524_v38 = vrot.slane %v2523_v10, 4  ;;  %v2557_v29 = vor.u32 %v2556_v43, %v2552_v15  ;;  %v2560_v35 = vshll.u32 %v6900_v44, 16 }
 0x153   : > { %v2534_v56 = vrot.slane %v2533_v39, 4  ;;  %v2547_v20 = vor.u32 %v2546_v52, %v2543_v19 }
 0x154   : > { %v2529_v4 = vsel %vm7026_vm2, %v2524_v38, %v2528_v45  ;;  %v2562_v54 = vrot.slane %v2560_v35, 5 }
 0x155   : > { %6399 = vmatmul.mubr.bf16.gmra.mrb[16].mxu0 %v5748_v62  ;;  %v2509_v62 = vor.u32 %v2508_v24, %v2504_v17  ;;  %v2548_v25 = vrot.slane %v2547_v20, 4 }
 0x156   : > { %6207 = vmatmul.mubr.bf16.vlgmr.msra.gmra.mrb[16].mxu1 %v8474_v50  ;;  %6402 = vmatprep.mubr.bf16.mxu0 %v5749_v59  ;;  %v6899_v50 = vld [vmem:[%s6994_s8 + $0xbc] sm:$0x1]  ;;  %s5765_s8 = sshll.u32 %s8843_s9, 8 }
 0x157   : > { %6210 = vmatprep.mubr.bf16.mxu1 %v5445_v40  ;;  %v2536_v23 = vshll.u32 %v6899_v50, 16  ;;  %v2510_v59 = vrot.slane %v2509_v62, 4  ;;  %v2553_v13 = vsel %vm7026_vm2, %v2548_v25, %v2552_v15  ;;  %s8726_s17 = scalar_lea.vmem %s8771_s2, %s5765_s8 }
 0x159   : > { %v2538_v1 = vrot.slane %v2536_v23, 5  ;;  %v2515_v63 = vsel %vm7026_vm2, %v2510_v59, %v2514_v30 }
 0x15b   : > { %v2539_v57 = vsel %vm7026_vm2, %v2534_v56, %v2538_v1 }
 0x15c   : > { %v5449_v7 = vcombine.low %v2529_v4, %v2539_v57 }
 0x15d   : > { %6403 = vmatmul.mubr.bf16.gmra.mrb[20].mxu0 %v5750_v53  ;;  %v5448_v53 = vcombine.low %v2505_v31, %v2515_v63 }
 0x15e   : > { %6211 = vmatmul.mubr.bf16.gmra.mrb[20].mxu1 %v5446_v3  ;;  %6406 = vmatprep.mubr.bf16.mxu0 %v5751_v16  ;;  %v2558_v16 = vrot.slane %v2557_v29, 4 }
 0x15f   : > { %6214 = vmatprep.mubr.bf16.mxu1 %v5447_v58 }
 0x160   : > { %v2563_v60 = vsel %vm7026_vm2, %v2558_v16, %v2562_v54 }
 0x161   : > { %v5450_v0 = vcombine.low %v2553_v13, %v2563_v60 }
 0x165   : > { %6407 = vmatmul.mubr.bf16.gmra.mrb[24].mxu0 %v5752_v2 }
 0x166   : > { %6215 = vmatmul.mubr.bf16.gmra.mrb[24].mxu1 %v5448_v53  ;;  %6410 = vmatprep.mubr.bf16.mxu0 %v5753_v28 }
 0x167   : > { %6218 = vmatprep.mubr.bf16.mxu1 %v5449_v7 }
 0x16d   : > { %6411 = vmatmul.mubr.bf16.gmra.mrb[28].mxu0 %v5754_v48 }
 0x16e   : > { %6219 = vmatmul.mubr.bf16.gmra.mrb[28].mxu1 %v5450_v0 }
 0x1e9   : > { %v6144_v27 = vpop.f32.mrb[0].mxu1 }
 0x1ea   : > { %v1973_v46 = vpop.f32.mrb[1].mxu1 }
 0x1eb   : > { %v6145_v2 = vpop.f32.mrb[2].mxu1 }
 0x1ec   : > { %v1976_v42 = vpop.f32.mrb[3].mxu1 }
 0x1f1   : > { %v6148_v55 = vpop.f32.mrb[4].mxu1 }
 0x1f2   : > { %v1989_v49 = vpop.f32.mrb[5].mxu1 }
 0x1f3   : > { %v6149_v28 = vpop.f32.mrb[6].mxu1 }
 0x1f4   : > { %v1992_v17 = vpop.f32.mrb[7].mxu1 }
 0x1f9   : > { %v6152_v24 = vpop.f32.mrb[8].mxu1 }
 0x1fa   : > { %v2005_v40 = vpop.f32.mrb[9].mxu1 }
 0x1fb   : > { %v6153_v21 = vpop.f32.mrb[10].mxu1 }
 0x1fc   : > { %v2008_v37 = vpop.f32.mrb[11].mxu1 }
 0x201   : > { %v6156_v61 = vpop.f32.mrb[12].mxu1 }
 0x202   : > { %v2021_v45 = vpop.f32.mrb[13].mxu1 }
 0x203   : > { %v6157_v8 = vpop.f32.mrb[14].mxu1 }
 0x204   : > { %v2024_v36 = vpop.f32.mrb[15].mxu1 }
 0x208   : > { %v6384_v34 = vpop.f32.mrb[0].mxu0 }
 0x209   : > { %v6430_v11 = vadd.f32 %v6384_v34, %v6144_v27  ;;  %v4867_v48 = vpop.f32.mrb[1].mxu0 }
 0x20a   : > { %v6431_v47 = vadd.f32 %v4867_v48, %v1973_v46  ;;  %v6385_v12 = vpop.f32.mrb[2].mxu0 }
 0x20b   : > { %5028 = vst [vmem:[%s8726_s17 + $0x10] sm:$0xff] %v6430_v11  ;;  %v6432_v51 = vadd.f32 %v6385_v12, %v6145_v2  ;;  %v4870_v32 = vpop.f32.mrb[3].mxu0 }
 0x20c   : > { %5026 = vst [vmem:[%s8726_s17] sm:$0xff] %v6431_v47  ;;  %v6433_v5 = vadd.f32 %v4870_v32, %v1976_v42 }
 0x20d   : > { %5029 = vst [vmem:[%s8726_s17 + $0x18] sm:$0xff] %v6432_v51 }
 0x20e   : > { %5027 = vst [vmem:[%s8726_s17 + $0x8] sm:$0xff] %v6433_v5 }
 0x210   : > { %v6388_v62 = vpop.f32.mrb[4].mxu0 }
 0x211   : > { %v6434_v41 = vadd.f32 %v6388_v62, %v6148_v55  ;;  %v4883_v6 = vpop.f32.mrb[5].mxu0 }
 0x212   : > { %v6435_v9 = vadd.f32 %v4883_v6, %v1989_v49  ;;  %v6389_v26 = vpop.f32.mrb[6].mxu0 }
 0x213   : > { %5032 = vst [vmem:[%s8726_s17 + $0x30] sm:$0xff] %v6434_v41  ;;  %v6436_v18 = vadd.f32 %v6389_v26, %v6149_v28  ;;  %v4886_v33 = vpop.f32.mrb[7].mxu0 }
 0x214   : > { %5030 = vst [vmem:[%s8726_s17 + $0x20] sm:$0xff] %v6435_v9  ;;  %v6437_v14 = vadd.f32 %v4886_v33, %v1992_v17 }
 0x215   : > { %5033 = vst [vmem:[%s8726_s17 + $0x38] sm:$0xff] %v6436_v18 }
 0x216   : > { %5031 = vst [vmem:[%s8726_s17 + $0x28] sm:$0xff] %v6437_v14 }
 0x218   : > { %v6392_v10 = vpop.f32.mrb[8].mxu0 }
 0x219   : > { %v6438_v39 = vadd.f32 %v6392_v10, %v6152_v24  ;;  %v4899_v50 = vpop.f32.mrb[9].mxu0 }
 0x21a   : > { %v6439_v23 = vadd.f32 %v4899_v50, %v2005_v40  ;;  %v6393_v3 = vpop.f32.mrb[10].mxu0 }
 0x21b   : > { %5036 = vst [vmem:[%s8726_s17 + $0x50] sm:$0xff] %v6438_v39  ;;  %v6440_v58 = vadd.f32 %v6393_v3, %v6153_v21  ;;  %v4902_v22 = vpop.f32.mrb[11].mxu0 }
 0x21c   : > { %5034 = vst [vmem:[%s8726_s17 + $0x40] sm:$0xff] %v6439_v23  ;;  %v6441_v59 = vadd.f32 %v4902_v22, %v2008_v37 }
 0x21d   : > { %5037 = vst [vmem:[%s8726_s17 + $0x58] sm:$0xff] %v6440_v58 }
 0x21e   : > { %5035 = vst [vmem:[%s8726_s17 + $0x48] sm:$0xff] %v6441_v59 }
 0x220   : > { %v6396_v30 = vpop.f32.mrb[12].mxu0 }
 0x221   : > { %v6442_v19 = vadd.f32 %v6396_v30, %v6156_v61  ;;  %v4915_v52 = vpop.f32.mrb[13].mxu0 }
 0x222   : > { %v6443_v15 = vadd.f32 %v4915_v52, %v2021_v45  ;;  %v6397_v43 = vpop.f32.mrb[14].mxu0 }
 0x223   : > { %5040 = vst [vmem:[%s8726_s17 + $0x70] sm:$0xff] %v6442_v19  ;;  %v6444_v38 = vadd.f32 %v6397_v43, %v6157_v8  ;;  %v4918_v56 = vpop.f32.mrb[15].mxu0 }
 0x224   : > { %5038 = vst [vmem:[%s8726_s17 + $0x60] sm:$0xff] %v6443_v15  ;;  %v6445_v1 = vadd.f32 %v4918_v56, %v2024_v36 }
 0x225   : > { %5041 = vst [vmem:[%s8726_s17 + $0x78] sm:$0xff] %v6444_v38 }
 0x226   : > { %5039 = vst [vmem:[%s8726_s17 + $0x68] sm:$0xff] %v6445_v1 }
 0x228   : > { %v6400_v31 = vpop.f32.mrb[16].mxu0 }
 0x229   : > { %v6208_v63 = vpop.f32.mrb[16].mxu1  ;;  %v4931_v20 = vpop.f32.mrb[17].mxu0 }
 0x22a   : > { %v6446_v29 = vadd.f32 %v6400_v31, %v6208_v63  ;;  %v2791_v44 = vpop.f32.mrb[17].mxu1  ;;  %v6401_v35 = vpop.f32.mrb[18].mxu0 }
 0x22b   : > { %v6447_v4 = vadd.f32 %v4931_v20, %v2791_v44  ;;  %v6209_v57 = vpop.f32.mrb[18].mxu1  ;;  %v4934_v53 = vpop.f32.mrb[19].mxu0 }
 0x22c   : > { %5044 = vst [vmem:[%s8726_s17 + $0x90] sm:$0xff] %v6446_v29  ;;  %v6448_v7 = vadd.f32 %v6401_v35, %v6209_v57  ;;  %v2794_v25 = vpop.f32.mrb[19].mxu1 }
 0x22d   : > { %5042 = vst [vmem:[%s8726_s17 + $0x80] sm:$0xff] %v6447_v4  ;;  %v6449_v16 = vadd.f32 %v4934_v53, %v2794_v25 }
 0x22e   : > { %5045 = vst [vmem:[%s8726_s17 + $0x98] sm:$0xff] %v6448_v7 }
 0x22f   : > { %5043 = vst [vmem:[%s8726_s17 + $0x88] sm:$0xff] %v6449_v16 }
 0x230   : > { %v6404_v54 = vpop.f32.mrb[20].mxu0 }
 0x231   : > { %v6212_v13 = vpop.f32.mrb[20].mxu1  ;;  %v4947_v60 = vpop.f32.mrb[21].mxu0 }
 0x232   : > { %v6450_v0 = vadd.f32 %v6404_v54, %v6212_v13  ;;  %v2807_v27 = vpop.f32.mrb[21].mxu1  ;;  %v6405_v46 = vpop.f32.mrb[22].mxu0 }
 0x233   : > { %v6451_v2 = vadd.f32 %v4947_v60, %v2807_v27  ;;  %v6213_v42 = vpop.f32.mrb[22].mxu1  ;;  %v4950_v55 = vpop.f32.mrb[23].mxu0 }
 0x234   : > { %5048 = vst [vmem:[%s8726_s17 + $0xb0] sm:$0xff] %v6450_v0  ;;  %v6452_v49 = vadd.f32 %v6405_v46, %v6213_v42  ;;  %v2810_v28 = vpop.f32.mrb[23].mxu1 }
 0x235   : > { %5046 = vst [vmem:[%s8726_s17 + $0xa0] sm:$0xff] %v6451_v2  ;;  %v6453_v17 = vadd.f32 %v4950_v55, %v2810_v28 }
 0x236   : > { %5049 = vst [vmem:[%s8726_s17 + $0xb8] sm:$0xff] %v6452_v49 }
 0x237   : > { %5047 = vst [vmem:[%s8726_s17 + $0xa8] sm:$0xff] %v6453_v17 }
 0x238   : > { %v6408_v24 = vpop.f32.mrb[24].mxu0 }
 0x239   : > { %v6216_v40 = vpop.f32.mrb[24].mxu1  ;;  %v4963_v21 = vpop.f32.mrb[25].mxu0 }
 0x23a   : > { %v6454_v37 = vadd.f32 %v6408_v24, %v6216_v40  ;;  %v2823_v61 = vpop.f32.mrb[25].mxu1  ;;  %v6409_v45 = vpop.f32.mrb[26].mxu0 }
 0x23b   : > { %v6455_v8 = vadd.f32 %v4963_v21, %v2823_v61  ;;  %v6217_v36 = vpop.f32.mrb[26].mxu1  ;;  %v4966_v34 = vpop.f32.mrb[27].mxu0 }
 0x23c   : > { %5052 = vst [vmem:[%s8726_s17 + $0xd0] sm:$0xff] %v6454_v37  ;;  %v6456_v11 = vadd.f32 %v6409_v45, %v6217_v36  ;;  %v2826_v48 = vpop.f32.mrb[27].mxu1 }
 0x23d   : > { %5050 = vst [vmem:[%s8726_s17 + $0xc0] sm:$0xff] %v6455_v8  ;;  %v6457_v47 = vadd.f32 %v4966_v34, %v2826_v48 }
 0x23e   : > { %5053 = vst [vmem:[%s8726_s17 + $0xd8] sm:$0xff] %v6456_v11 }
 0x23f   : > { %5051 = vst [vmem:[%s8726_s17 + $0xc8] sm:$0xff] %v6457_v47 }
 0x240   : > { %v6412_v12 = vpop.f32.mrb[28].mxu0 }
 0x241   : > { %v6220_v51 = vpop.f32.mrb[28].mxu1  ;;  %v4979_v32 = vpop.f32.mrb[29].mxu0 }
 0x242   : > { %v6458_v5 = vadd.f32 %v6412_v12, %v6220_v51  ;;  %v2839_v62 = vpop.f32.mrb[29].mxu1  ;;  %v6413_v41 = vpop.f32.mrb[30].mxu0 }
 0x243   : > { %v6459_v6 = vadd.f32 %v4979_v32, %v2839_v62  ;;  %v6221_v9 = vpop.f32.mrb[30].mxu1  ;;  %v4982_v26 = vpop.f32.mrb[31].mxu0 }
 0x244   : > { %5056 = vst [vmem:[%s8726_s17 + $0xf0] sm:$0xff] %v6458_v5  ;;  %v6460_v18 = vadd.f32 %v6413_v41, %v6221_v9  ;;  %v2842_v33 = vpop.f32.mrb[31].mxu1 }
 0x245   : > { %5054 = vst [vmem:[%s8726_s17 + $0xe0] sm:$0xff] %v6459_v6  ;;  %v6461_v14 = vadd.f32 %v4982_v26, %v2842_v33 }
 0x246   : > { %5057 = vst [vmem:[%s8726_s17 + $0xf8] sm:$0xff] %v6460_v18 }
 0x247   : > { %5055 = vst [vmem:[%s8726_s17 + $0xe8] sm:$0xff] %v6461_v14 }
 0x248 PF: > { %s12_s11 = sadd.s32 1, %s6923_s11   ;;  %s8838_s9 = smov %s6919_s10 }
 0x249   : > { %p9_p5 = scmp.ge.s32.totalorder %s12_s11, 4   ;;  %s8839_s10 = smov %s8841_s12 }
 0x24b   :  { %11 = sbr.rel (!%p9_p5) target bundleno = 2 (0x2), region = 72 }

</bundles_post_ra>
